<compile_context>
chip_gen: v5e
topology: v5e:2x2
jax: 0.10.0
libtpu: 0.0.40
codegen_flags: <defaults>
</compile_context>

<pallas_src>
import functools

import jax
import jax.numpy as jnp
from jax import lax
from jax.experimental import pallas as pl
from jax.experimental.pallas import tpu as pltpu

GROUP = 16   # samples packed per lane-row: 16 samples x 8 features = 128 lanes
IN_F = 8     # input feature count of the first Linear layer


def _round_up(a, m):
    return ((a + m - 1) // m) * m


def _sigmoid(h):
    # EUP-friendly sigmoid: tanh uses the EUP slot; only mul/add stay on the VPU.
    return 0.5 * (jnp.tanh(0.5 * h) + 1.0)


def _dnn_kernel(x_ref,
                w1_ref, b1_ref,
                w2_ref, b2_ref,
                w3_ref, b3_ref,
                w4_ref, b4_ref,
                o_ref):
    """Full MLP forward for one batch tile in group-packed layout.

    x_ref : [tb//16, 128]  lane l = 8*j + f -> feature f of sample (16*r + j)
    w*_ref: block-diagonal expanded weights, kron(I_16, W.T)
    b*_ref: [1, 16*out]    bias tiled once per sample group
    o_ref : [tb//16, 16]   lane j -> y of sample (16*r + j)
    """
    hp = lax.Precision.HIGHEST  # pinned: exact f32 matmuls (multi-pass MXU)

    def layer(h, w_ref, b_ref):
        pre = jnp.dot(h, w_ref[...],
                      preferred_element_type=jnp.float32,
                      precision=hp) + b_ref[...]
        return _sigmoid(pre)

    h = x_ref[...]                 # [tb//16, 128]
    h = layer(h, w1_ref, b1_ref)   # [tb//16, 512]
    h = layer(h, w2_ref, b2_ref)   # [tb//16, 128]
    h = layer(h, w3_ref, b3_ref)   # [tb//16,  64]
    h = layer(h, w4_ref, b4_ref)   # [tb//16,  16]
    o_ref[...] = h.astype(o_ref.dtype)


@functools.partial(jax.jit, static_argnames=("tile_b",))
def dnn_forward(x, params, tile_b=32768):
    """x: [B, 8] float32. params: w_i [out, in] and b_i [out, 1] (PyTorch layout).

    Returns y: [B, 1] float32, matching PyTorch DNN.forward semantics.
    """
    B, F = x.shape
    assert F == IN_F
    assert tile_b % 128 == 0 and tile_b >= 128, "tile_b must be a lane multiple (128)"

    # ---- tile-size / grid selection (shapes are static under jit) ----------
    B128 = _round_up(B, 128)
    if B128 <= 128:
        tb = 128                                    # cannot split a single lane-block
    else:
        # Guarantee >= 2 grid steps so the "parallel" axis can shard across
        # both v7x TensorCores; cap at tile_b so per-step VMEM stays bounded.
        tb = min(tile_b, _round_up(pl.cdiv(B128, 2), 128))
    B_pad = _round_up(B, tb)
    grid = (B_pad // tb,)
    rows = tb // GROUP                              # sublane rows per tile

    # ---- group-packed input: free reshape, no wrapper-side transpose pass --
    x_pad = jnp.pad(x, ((0, B_pad - B), (0, 0)))              # [B_pad, 8]
    x_packed = x_pad.reshape(B_pad // GROUP, GROUP * IN_F)    # [B_pad/16, 128]

    # ---- block-diagonal expanded params (tiny; ~0.6 MiB total) -------------
    eye = jnp.eye(GROUP, dtype=x.dtype)

    def expand(w, b):
        wb = jnp.kron(eye, w.T.astype(x.dtype))                        # [16*in, 16*out]
        bb = jnp.tile(b.reshape(1, -1).astype(x.dtype), (1, GROUP))    # [1, 16*out]
        return wb, bb

    w1b, b1b = expand(params["w1"], params["b1"])   # [128, 512], [1, 512]
    w2b, b2b = expand(params["w2"], params["b2"])   # [512, 128], [1, 128]
    w3b, b3b = expand(params["w3"], params["b3"])   # [128,  64], [1,  64]
    w4b, b4b = expand(params["w4"], params["b4"])   # [ 64,  16], [1,  16]

    def x_map(i):
        return (i, 0)

    def rep_map(i):      # weights/biases: constant block -> DMA'd once, stay resident
        return (0, 0)

    out = pl.pallas_call(
        _dnn_kernel,
        out_shape=jax.ShapeDtypeStruct((B_pad // GROUP, GROUP), x.dtype),
        grid_spec=pltpu.PrefetchScalarGridSpec(
            num_scalar_prefetch=0,
            grid=grid,
            in_specs=[
                pl.BlockSpec((rows, GROUP * IN_F), x_map),        # x tile [rows, 128]
                pl.BlockSpec((GROUP * 8, GROUP * 32), rep_map),   # W1_big [128, 512]
                pl.BlockSpec((1, GROUP * 32), rep_map),           # b1_big [1, 512]
                pl.BlockSpec((GROUP * 32, GROUP * 8), rep_map),   # W2_big [512, 128]
                pl.BlockSpec((1, GROUP * 8), rep_map),            # b2_big [1, 128]
                pl.BlockSpec((GROUP * 8, GROUP * 4), rep_map),    # W3_big [128, 64]
                pl.BlockSpec((1, GROUP * 4), rep_map),            # b3_big [1, 64]
                pl.BlockSpec((GROUP * 4, GROUP * 1), rep_map),    # W4_big [64, 16]
                pl.BlockSpec((1, GROUP * 1), rep_map),            # b4_big [1, 16]
            ],
            out_specs=pl.BlockSpec((rows, GROUP), x_map),         # y tile [rows, 16]
        ),
        compiler_params=pltpu.CompilerParams(
            dimension_semantics=("parallel",),
            vmem_limit_bytes=48 * 1024 * 1024,   # ~14 MiB used at tile_b=32768; v7x-safe
        ),
    )(x_packed, w1b, b1b, w2b, b2b, w3b, b3b, w4b, b4b)

    # Packed output row r, lane j  ==  sample 16*r + j  -> free reshape back.
    return out.reshape(B_pad, 1)[:B]


def init_params(key):
    """Deterministic init mimicking PyTorch nn.Linear default U(-1/sqrt(in), 1/sqrt(in)).

    Weights are stored in PyTorch-native [out, in]; biases as [out, 1].
    """
    dims = [(8, 32), (32, 8), (8, 4), (4, 1)]  # (fan_in, fan_out) per layer
    params = {}
    keys = jax.random.split(key, 2 * len(dims))
    for idx, (fan_in, fan_out) in enumerate(dims):
        bound = 1.0 / jnp.sqrt(float(fan_in))
        w = jax.random.uniform(keys[2 * idx], (fan_out, fan_in),
                               minval=-bound, maxval=bound, dtype=jnp.float32)
        b = jax.random.uniform(keys[2 * idx + 1], (fan_out, 1),
                               minval=-bound, maxval=bound, dtype=jnp.float32)
        params[f"w{idx + 1}"] = w
        params[f"b{idx + 1}"] = b
    return params


def _ref_forward(x, params):
    """Pure-JAX reference matching PyTorch: y = sigmoid(x @ W.T + b) per layer."""
    h = x
    for i in range(1, 5):
        w = params[f"w{i}"]  # [out, in]
        b = params[f"b{i}"]  # [out, 1]
        h = jax.nn.sigmoid(h @ w.T + b.T)
    return h


if __name__ == "__main__":
    key = jax.random.PRNGKey(0)
    k_x, k_p = jax.random.split(key)

    # Small deterministic example. B is deliberately NOT a multiple of 128 so the
    # pad/slice path is exercised, and it pads to 256 -> a 2-step grid, which
    # also exercises the megacore ("parallel") split path.
    B = 200
    x = jax.random.normal(k_x, (B, 8), dtype=jnp.float32)
    params = init_params(k_p)

    y = dnn_forward(x, params)
    y = jax.block_until_ready(y)

    y_ref = _ref_forward(x, params)
    assert y.shape == (B, 1)
    assert jnp.allclose(y, y_ref, atol=1e-5, rtol=1e-5)

    print("KERNEL_OK")
</pallas_src>

<mosaic_0001>
module attributes {stable_mosaic.version = 11 : i64} {
  func.func @_dnn_kernel(%arg0: i32, %arg1: memref<8x128xf32, #tpu.memory_space<vmem>>, %arg2: memref<128x512xf32, #tpu.memory_space<vmem>>, %arg3: memref<1x512xf32, #tpu.memory_space<vmem>>, %arg4: memref<512x128xf32, #tpu.memory_space<vmem>>, %arg5: memref<1x128xf32, #tpu.memory_space<vmem>>, %arg6: memref<128x64xf32, #tpu.memory_space<vmem>>, %arg7: memref<1x64xf32, #tpu.memory_space<vmem>>, %arg8: memref<64x16xf32, #tpu.memory_space<vmem>>, %arg9: memref<1x16xf32, #tpu.memory_space<vmem>>, %arg10: memref<8x16xf32, #tpu.memory_space<vmem>>) attributes {dimension_semantics = [#tpu.dimension_semantics<parallel>], iteration_bounds = array<i64: 2>, scalar_prefetch = 0 : i64, scratch_operands = 0 : i64, tpu.core_type = #tpu.core_type<tc>, window_params = [{transform_indices = @transform_0, window_bounds = array<i64: 8, 128>}, {pipeline_mode = #tpu.pipeline_mode<synchronous>, transform_indices = @transform_1, window_bounds = array<i64: 128, 512>}, {pipeline_mode = #tpu.pipeline_mode<synchronous>, transform_indices = @transform_2, window_bounds = array<i64: 1, 512>}, {pipeline_mode = #tpu.pipeline_mode<synchronous>, transform_indices = @transform_3, window_bounds = array<i64: 512, 128>}, {pipeline_mode = #tpu.pipeline_mode<synchronous>, transform_indices = @transform_4, window_bounds = array<i64: 1, 128>}, {pipeline_mode = #tpu.pipeline_mode<synchronous>, transform_indices = @transform_5, window_bounds = array<i64: 128, 64>}, {pipeline_mode = #tpu.pipeline_mode<synchronous>, transform_indices = @transform_6, window_bounds = array<i64: 1, 64>}, {pipeline_mode = #tpu.pipeline_mode<synchronous>, transform_indices = @transform_7, window_bounds = array<i64: 64, 16>}, {pipeline_mode = #tpu.pipeline_mode<synchronous>, transform_indices = @transform_8, window_bounds = array<i64: 1, 16>}, {transform_indices = @transform_9, window_bounds = array<i64: 8, 16>}]} {
    %c0 = arith.constant 0 : index
    %c0_0 = arith.constant 0 : index
    %0 = vector.load %arg1[%c0, %c0_0] : memref<8x128xf32, #tpu.memory_space<vmem>>, vector<8x128xf32>
    %c0_1 = arith.constant 0 : index
    %c0_2 = arith.constant 0 : index
    %1 = vector.load %arg2[%c0_1, %c0_2] : memref<128x512xf32, #tpu.memory_space<vmem>>, vector<128x512xf32>
    %cst = arith.constant dense<0.000000e+00> : vector<8x512xf32>
    %2 = tpu.matmul %0, %1, %cst {dimension_numbers = #tpu.dot_dimension_numbers<[1], [0], [0], [1], [0, 0, 1, 1], [], []>, precision = #tpu.contract_precision<fp32>} : vector<8x128xf32>, vector<128x512xf32>, vector<8x512xf32> -> vector<8x512xf32>
    %c0_3 = arith.constant 0 : index
    %c0_4 = arith.constant 0 : index
    %3 = vector.load %arg3[%c0_3, %c0_4] : memref<1x512xf32, #tpu.memory_space<vmem>>, vector<1x512xf32>
    %4 = vector.broadcast %3 : vector<1x512xf32> to vector<8x512xf32>
    %5 = arith.addf %2, %4 : vector<8x512xf32>
    %cst_5 = arith.constant 5.000000e-01 : f32
    %6 = vector.broadcast %cst_5 : f32 to vector<8x512xf32>
    %7 = arith.mulf %6, %5 : vector<8x512xf32>
    %8 = math.tanh %7 : vector<8x512xf32>
    %cst_6 = arith.constant 1.000000e+00 : f32
    %9 = vector.broadcast %cst_6 : f32 to vector<8x512xf32>
    %10 = arith.addf %8, %9 : vector<8x512xf32>
    %cst_7 = arith.constant 5.000000e-01 : f32
    %11 = vector.broadcast %cst_7 : f32 to vector<8x512xf32>
    %12 = arith.mulf %11, %10 : vector<8x512xf32>
    %c0_8 = arith.constant 0 : index
    %c0_9 = arith.constant 0 : index
    %13 = vector.load %arg4[%c0_8, %c0_9] : memref<512x128xf32, #tpu.memory_space<vmem>>, vector<512x128xf32>
    %cst_10 = arith.constant dense<0.000000e+00> : vector<8x128xf32>
    %14 = tpu.matmul %12, %13, %cst_10 {dimension_numbers = #tpu.dot_dimension_numbers<[1], [0], [0], [1], [0, 0, 1, 1], [], []>, precision = #tpu.contract_precision<fp32>} : vector<8x512xf32>, vector<512x128xf32>, vector<8x128xf32> -> vector<8x128xf32>
    %c0_11 = arith.constant 0 : index
    %c0_12 = arith.constant 0 : index
    %15 = vector.load %arg5[%c0_11, %c0_12] : memref<1x128xf32, #tpu.memory_space<vmem>>, vector<1x128xf32>
    %16 = vector.broadcast %15 : vector<1x128xf32> to vector<8x128xf32>
    %17 = arith.addf %14, %16 : vector<8x128xf32>
    %cst_13 = arith.constant 5.000000e-01 : f32
    %18 = vector.broadcast %cst_13 : f32 to vector<8x128xf32>
    %19 = arith.mulf %18, %17 : vector<8x128xf32>
    %20 = math.tanh %19 : vector<8x128xf32>
    %cst_14 = arith.constant 1.000000e+00 : f32
    %21 = vector.broadcast %cst_14 : f32 to vector<8x128xf32>
    %22 = arith.addf %20, %21 : vector<8x128xf32>
    %cst_15 = arith.constant 5.000000e-01 : f32
    %23 = vector.broadcast %cst_15 : f32 to vector<8x128xf32>
    %24 = arith.mulf %23, %22 : vector<8x128xf32>
    %c0_16 = arith.constant 0 : index
    %c0_17 = arith.constant 0 : index
    %25 = vector.load %arg6[%c0_16, %c0_17] : memref<128x64xf32, #tpu.memory_space<vmem>>, vector<128x64xf32>
    %cst_18 = arith.constant dense<0.000000e+00> : vector<8x64xf32>
    %26 = tpu.matmul %24, %25, %cst_18 {dimension_numbers = #tpu.dot_dimension_numbers<[1], [0], [0], [1], [0, 0, 1, 1], [], []>, precision = #tpu.contract_precision<fp32>} : vector<8x128xf32>, vector<128x64xf32>, vector<8x64xf32> -> vector<8x64xf32>
    %c0_19 = arith.constant 0 : index
    %c0_20 = arith.constant 0 : index
    %27 = vector.load %arg7[%c0_19, %c0_20] : memref<1x64xf32, #tpu.memory_space<vmem>>, vector<1x64xf32>
    %28 = vector.broadcast %27 : vector<1x64xf32> to vector<8x64xf32>
    %29 = arith.addf %26, %28 : vector<8x64xf32>
    %cst_21 = arith.constant 5.000000e-01 : f32
    %30 = vector.broadcast %cst_21 : f32 to vector<8x64xf32>
    %31 = arith.mulf %30, %29 : vector<8x64xf32>
    %32 = math.tanh %31 : vector<8x64xf32>
    %cst_22 = arith.constant 1.000000e+00 : f32
    %33 = vector.broadcast %cst_22 : f32 to vector<8x64xf32>
    %34 = arith.addf %32, %33 : vector<8x64xf32>
    %cst_23 = arith.constant 5.000000e-01 : f32
    %35 = vector.broadcast %cst_23 : f32 to vector<8x64xf32>
    %36 = arith.mulf %35, %34 : vector<8x64xf32>
    %c0_24 = arith.constant 0 : index
    %c0_25 = arith.constant 0 : index
    %37 = vector.load %arg8[%c0_24, %c0_25] : memref<64x16xf32, #tpu.memory_space<vmem>>, vector<64x16xf32>
    %cst_26 = arith.constant dense<0.000000e+00> : vector<8x16xf32>
    %38 = tpu.matmul %36, %37, %cst_26 {dimension_numbers = #tpu.dot_dimension_numbers<[1], [0], [0], [1], [0, 0, 1, 1], [], []>, precision = #tpu.contract_precision<fp32>} : vector<8x64xf32>, vector<64x16xf32>, vector<8x16xf32> -> vector<8x16xf32>
    %c0_27 = arith.constant 0 : index
    %c0_28 = arith.constant 0 : index
    %39 = vector.load %arg9[%c0_27, %c0_28] : memref<1x16xf32, #tpu.memory_space<vmem>>, vector<1x16xf32>
    %40 = vector.broadcast %39 : vector<1x16xf32> to vector<8x16xf32>
    %41 = arith.addf %38, %40 : vector<8x16xf32>
    %cst_29 = arith.constant 5.000000e-01 : f32
    %42 = vector.broadcast %cst_29 : f32 to vector<8x16xf32>
    %43 = arith.mulf %42, %41 : vector<8x16xf32>
    %44 = math.tanh %43 : vector<8x16xf32>
    %cst_30 = arith.constant 1.000000e+00 : f32
    %45 = vector.broadcast %cst_30 : f32 to vector<8x16xf32>
    %46 = arith.addf %44, %45 : vector<8x16xf32>
    %cst_31 = arith.constant 5.000000e-01 : f32
    %47 = vector.broadcast %cst_31 : f32 to vector<8x16xf32>
    %48 = arith.mulf %47, %46 : vector<8x16xf32>
    %c0_32 = arith.constant 0 : index
    %c0_33 = arith.constant 0 : index
    %49 = vector.load %arg10[%c0_32, %c0_33] : memref<8x16xf32, #tpu.memory_space<vmem>>, vector<8x16xf32>
    tpu.vector_store %arg10[%c0_32, %c0_33], %48 {strides = array<i32>} : memref<8x16xf32, #tpu.memory_space<vmem>>, vector<8x16xf32>,
    return
  }
  func.func @transform_0(%arg0: i32) -> (i32, i32) {
    %c0_i32 = arith.constant 0 : i32
    %c0_i32_0 = arith.constant 0 : i32
    return %arg0, %c0_i32 : i32, i32
  }
  func.func @transform_1(%arg0: i32) -> (i32, i32) {
    %c0_i32 = arith.constant 0 : i32
    %c0_i32_0 = arith.constant 0 : i32
    %c0_i32_1 = arith.constant 0 : i32
    return %c0_i32, %c0_i32_0 : i32, i32
  }
  func.func @transform_2(%arg0: i32) -> (i32, i32) {
    %c0_i32 = arith.constant 0 : i32
    %c0_i32_0 = arith.constant 0 : i32
    %c0_i32_1 = arith.constant 0 : i32
    return %c0_i32, %c0_i32_0 : i32, i32
  }
  func.func @transform_3(%arg0: i32) -> (i32, i32) {
    %c0_i32 = arith.constant 0 : i32
    %c0_i32_0 = arith.constant 0 : i32
    %c0_i32_1 = arith.constant 0 : i32
    return %c0_i32, %c0_i32_0 : i32, i32
  }
  func.func @transform_4(%arg0: i32) -> (i32, i32) {
    %c0_i32 = arith.constant 0 : i32
    %c0_i32_0 = arith.constant 0 : i32
    %c0_i32_1 = arith.constant 0 : i32
    return %c0_i32, %c0_i32_0 : i32, i32
  }
  func.func @transform_5(%arg0: i32) -> (i32, i32) {
    %c0_i32 = arith.constant 0 : i32
    %c0_i32_0 = arith.constant 0 : i32
    %c0_i32_1 = arith.constant 0 : i32
    return %c0_i32, %c0_i32_0 : i32, i32
  }
  func.func @transform_6(%arg0: i32) -> (i32, i32) {
    %c0_i32 = arith.constant 0 : i32
    %c0_i32_0 = arith.constant 0 : i32
    %c0_i32_1 = arith.constant 0 : i32
    return %c0_i32, %c0_i32_0 : i32, i32
  }
  func.func @transform_7(%arg0: i32) -> (i32, i32) {
    %c0_i32 = arith.constant 0 : i32
    %c0_i32_0 = arith.constant 0 : i32
    %c0_i32_1 = arith.constant 0 : i32
    return %c0_i32, %c0_i32_0 : i32, i32
  }
  func.func @transform_8(%arg0: i32) -> (i32, i32) {
    %c0_i32 = arith.constant 0 : i32
    %c0_i32_0 = arith.constant 0 : i32
    %c0_i32_1 = arith.constant 0 : i32
    return %c0_i32, %c0_i32_0 : i32, i32
  }
  func.func @transform_9(%arg0: i32) -> (i32, i32) {
    %c0_i32 = arith.constant 0 : i32
    %c0_i32_0 = arith.constant 0 : i32
    return %arg0, %c0_i32 : i32, i32
  }
}

</mosaic_0001>

<bundles_post_ra>
// kernel: dnn_forward.1
= control target key start
LH: loop header
LB: loop body
LE: loop exit
PB: predicated region body
PF: predicated region fallthrough
CT: control target
= control target key end

     0   :  { %s3989_s30 = smov 0   ;;  %s6799_s0 = inlined_call_operand.vmem [shape: f32[16,128], index: 0, kind: input, shape index: {}]   ;;  %s6800_s1 = inlined_call_operand.vmem [shape: f32[128,512], index: 1, kind: input, shape index: {}]   ;;  %s6801_s2 = inlined_call_operand.vmem [shape: f32[1,512], index: 2, kind: input, shape index: {}]   ;;  %s6802_s3 = inlined_call_operand.vmem [shape: f32[512,128], index: 3, kind: input, shape index: {}]   ;;  %s6803_s4 = inlined_call_operand.vmem [shape: f32[1,128], index: 4, kind: input, shape index: {}]   ;;  %s6804_s5 = inlined_call_operand.vmem [shape: f32[128,64], index: 5, kind: input, shape index: {}]   ;;  %s6805_s6 = inlined_call_operand.vmem [shape: f32[1,64], index: 6, kind: input, shape index: {}]   ;;  %s6806_s7 = inlined_call_operand.vmem [shape: f32[64,16], index: 7, kind: input, shape index: {}]   ;;  %s6807_s8 = inlined_call_operand.vmem [shape: f32[1,16], index: 8, kind: input, shape index: {}]   ;;  %s6808_s9 = inlined_call_operand.vmem [shape: f32[16,16], index: 9, kind: output, shape index: {}]  }
   0x1 LB: > { %s3896_s10 = sadd.s32 4294967295, %s3937_s30   ;;  %p3900_p0 = scmp.ge.s32.totalorder %s3937_s30, 1  ;;  %s3937_s30 = sphi %s3989_s30, %s19_s30  }
   0x2   : > { %p286_p1 = scmp.lt.s32.totalorder %s3937_s30, 3 }
   0x4   : > { %p287_p2 = pnand %p3900_p0, %p286_p1 }
   0x6   : > { %290 = sbr.rel (%p287_p2) target bundleno = 907 (0x38b), region = 56 }
   0xb   : > { %v389_v0 = vld [vmem:[%s6800_s1 + $0x1e0] sm:$0xff]  ;;  %v390_v56 = vld [vmem:[%s6800_s1 + $0x1e8] sm:$0xff]  ;;  %p4297_p3 = scmp.lt.s32.totalorder %s3896_s10, 1  ;;  %vm3596_vm0 = vcmask 523264   ;;  %vm3841_vm1 = vcmask 130048  }
   0xc   : > { %v385_v1 = vld [vmem:[%s6800_s1 + $0x1c0] sm:$0xff]  ;;  %v4006_v3 = vand.u32 4294901760, %v389_v0  ;;  %v386_v60 = vld [vmem:[%s6800_s1 + $0x1c8] sm:$0xff] }
   0xd   : > { %v381_v2 = vld [vmem:[%s6800_s1 + $0x1a0] sm:$0xff]  ;;  %v4008_v4 = vand.u32 4294901760, %v385_v1  ;;  %s7123_s10 = smov (!%p4297_p3, %s3896_s10), 1 }
   0xe   : > { %v4010_v5 = vand.u32 4294901760, %v381_v2  ;;  %v377_v6 = vld [vmem:[%s6800_s1 + $0x180] sm:$0xff]  ;;  %404 = vmatpush.msra.mxu0 %v4006_v3  ;;  %600 = vmatpush.msra.mxu3 %v4006_v3  ;;  %v4036_v14 = vsub.f32 %v389_v0, %v4006_v3  ;;  %s3901_s13 = sshll.u32 %s7123_s10, 3 }
   0xf   : > { %v373_v7 = vld [vmem:[%s6800_s1 + $0x160] sm:$0xff]  ;;  %v4021_v9 = vand.u32 4294901760, %v377_v6  ;;  %v4039_v15 = vsub.f32 %v385_v1, %v4008_v4  ;;  %s323_s20 = scalar_lea.vmem %s6799_s0, %s3901_s13  ;;  %s327_s23 = scalar_lea.vmem %s6808_s9, %s3901_s13 }
  0x10   : > { %v369_v8 = vld [vmem:[%s6800_s1 + $0x140] sm:$0xff]  ;;  %v4023_v10 = vand.u32 4294901760, %v373_v7  ;;  %v4042_v16 = vsub.f32 %v381_v2, %v4010_v5  ;;  %406 = vmatpush.msra.mxu0 %v4008_v4  ;;  %547 = vmatpush.msra.mxu2 %v4036_v14  ;;  %v6824_v22 = vand.u32 4294901760, %v4036_v14 }
  0x11   : > { %v4025_v11 = vand.u32 4294901760, %v369_v8  ;;  %v365_v12 = vld [vmem:[%s6800_s1 + $0x120] sm:$0xff]  ;;  %v4050_v19 = vsub.f32 %v377_v6, %v4021_v9  ;;  %v6822_v23 = vand.u32 4294901760, %v4039_v15  ;;  %602 = vmatpush.msra.mxu3 %v4008_v4  ;;  %v4167_v6 = vand.u32 4294901760, %v390_v56 }
  0x12   : > { %v361_v13 = vld [vmem:[%s6800_s1 + $0x100] sm:$0xff]  ;;  %v4044_v17 = vand.u32 4294901760, %v365_v12  ;;  %v4053_v20 = vsub.f32 %v373_v7, %v4023_v10  ;;  %v6821_v24 = vand.u32 4294901760, %v4042_v16  ;;  %408 = vmatpush.msra.mxu0 %v4010_v5  ;;  %550 = vmatpush.msra.mxu2 %v4039_v15  ;;  %v447_v30 = vsub.f32 %v4036_v14, %v6824_v22  ;;  %v382_v7 = vld [vmem:[%s6800_s1 + $0x1a8] sm:$0xff] }
  0x13   : > { %v357_v18 = vld [vmem:[%s6800_s1 + $0xe0] sm:$0xff]  ;;  %v4056_v21 = vsub.f32 %v369_v8, %v4025_v11  ;;  %v4063_v25 = vand.u32 4294901760, %v361_v13  ;;  %v6819_v27 = vand.u32 4294901760, %v4050_v19  ;;  %v453_v31 = vsub.f32 %v4039_v15, %v6822_v23  ;;  %604 = vmatpush.msra.mxu3 %v4010_v5 }
  0x14   : > { %v353_v26 = vld [vmem:[%s6800_s1 + $0xc0] sm:$0xff]  ;;  %v4071_v28 = vsub.f32 %v365_v12, %v4044_v17  ;;  %v4073_v29 = vand.u32 4294901760, %v357_v18  ;;  %v459_v32 = vsub.f32 %v4042_v16, %v6821_v24  ;;  %v6818_v33 = vand.u32 4294901760, %v4053_v20  ;;  %410 = vmatpush.msra.mxu0 %v4021_v9  ;;  %553 = vmatpush.msra.mxu2 %v4042_v16 }
  0x15   : > { %v349_v34 = vld [vmem:[%s6800_s1 + $0xa0] sm:$0xff]  ;;  %v4091_v35 = vand.u32 4294901760, %v353_v26  ;;  %v6815_v36 = vand.u32 4294901760, %v4056_v21  ;;  %v448_v37 = vand.u32 4294901760, %v447_v30  ;;  %v454_v38 = vand.u32 4294901760, %v453_v31  ;;  %606 = vmatpush.msra.mxu3 %v4021_v9 }
  0x16   : > { %v465_v39 = vsub.f32 %v4050_v19, %v6819_v27  ;;  %v4100_v40 = vsub.f32 %v361_v13, %v4063_v25  ;;  %v4104_v41 = vsub.f32 %v357_v18, %v4073_v29  ;;  %v6814_v42 = vand.u32 4294901760, %v4071_v28  ;;  %v345_v43 = vld [vmem:[%s6800_s1 + $0x80] sm:$0xff]  ;;  %412 = vmatpush.msra.mxu0 %v4023_v10  ;;  %556 = vmatpush.msra.mxu2 %v4050_v19 }
  0x17   : > { %449 = vmatpush.msra.mxu1 %v448_v37  ;;  %v460_v44 = vand.u32 4294901760, %v459_v32  ;;  %v471_v45 = vsub.f32 %v4053_v20, %v6818_v33  ;;  %v4114_v46 = vand.u32 4294901760, %v349_v34  ;;  %608 = vmatpush.msra.mxu3 %v4023_v10  ;;  %v477_v47 = vsub.f32 %v4056_v21, %v6815_v36  ;;  %v341_v49 = vld [vmem:[%s6800_s1 + $0x60] sm:$0xff]  ;;  %v362_v36 = vld [vmem:[%s6800_s1 + $0x108] sm:$0xff] }
  0x18   : > { %v4122_v48 = vsub.f32 %v353_v26, %v4091_v35  ;;  %414 = vmatpush.msra.mxu0 %v4025_v11  ;;  %v466_v50 = vand.u32 4294901760, %v465_v39  ;;  %v4128_v51 = vand.u32 4294901760, %v345_v43  ;;  %v6813_v52 = vand.u32 4294901760, %v4100_v40  ;;  %559 = vmatpush.msra.mxu2 %v4053_v20  ;;  %v337_v55 = vld [vmem:[%s6800_s1 + $0x40] sm:$0xff] }
  0x19   : > { %455 = vmatpush.msra.mxu1 %v454_v38  ;;  %610 = vmatpush.msra.mxu3 %v4025_v11  ;;  %v483_v53 = vsub.f32 %v4071_v28, %v6814_v42  ;;  %v6811_v54 = vand.u32 4294901760, %v4104_v41  ;;  %v472_v57 = vand.u32 4294901760, %v471_v45  ;;  %v4145_v58 = vsub.f32 %v349_v34, %v4114_v46  ;;  %v333_v63 = vld [vmem:[%s6800_s1 + $0x20] sm:$0xff]  ;;  %v378_v34 = vld [vmem:[%s6800_s1 + $0x188] sm:$0xff] }
  0x1a   : > { %416 = vmatpush.msra.mxu0 %v4044_v17  ;;  %v4147_v59 = vand.u32 4294901760, %v341_v49  ;;  %562 = vmatpush.msra.mxu2 %v4056_v21  ;;  %v478_v61 = vand.u32 4294901760, %v477_v47  ;;  %v6810_v62 = vand.u32 4294901760, %v4122_v48  ;;  %v489_v0 = vsub.f32 %v4100_v40, %v6813_v52  ;;  %v329_v13 = vld [vmem:[%s6800_s1] sm:$0xff]  ;;  %v374_v47 = vld [vmem:[%s6800_s1 + $0x168] sm:$0xff] }
  0x1b   : > { %461 = vmatpush.msra.mxu1 %v460_v44  ;;  %612 = vmatpush.msra.mxu3 %v4044_v17  ;;  %v4163_v1 = vsub.f32 %v345_v43, %v4128_v51  ;;  %v4165_v2 = vand.u32 4294901760, %v337_v55  ;;  %v484_v8 = vand.u32 4294901760, %v483_v53  ;;  %v495_v12 = vsub.f32 %v4104_v41, %v6811_v54 }
  0x1c   : > { %418 = vmatpush.msra.mxu0 %v4063_v25  ;;  %565 = vmatpush.msra.mxu2 %v4071_v28  ;;  %v4180_v18 = vand.u32 4294901760, %v386_v60  ;;  %v4184_v26 = vsub.f32 %v341_v49, %v4147_v59  ;;  %v4186_v30 = vand.u32 4294901760, %v333_v63  ;;  %v6809_v31 = vand.u32 4294901760, %v4145_v58 }
  0x1d   : > { %467 = vmatpush.msra.mxu1 %v466_v50  ;;  %6929 = vst [vmem:[#allocation2_spill] sm:$0xff] %v4165_v2  ;;  %614 = vmatpush.msra.mxu3 %v4063_v25  ;;  %v4190_v32 = vsub.f32 %v390_v56, %v4167_v6  ;;  %v501_v37 = vsub.f32 %v4122_v48, %v6810_v62  ;;  %v4200_v38 = vand.u32 4294901760, %v382_v7  ;;  %v490_v39 = vand.u32 4294901760, %v489_v0 }
  0x1e   : > { %420 = vmatpush.msra.mxu0 %v4073_v29  ;;  %6930 = vst [vmem:[#allocation3_spill] sm:$0xff] %v4186_v30  ;;  %568 = vmatpush.msra.mxu2 %v4100_v40  ;;  %v4204_v43 = vsub.f32 %v337_v55, %v4165_v2  ;;  %v4206_v44 = vand.u32 4294901760, %v329_v13  ;;  %v6812_v45 = vand.u32 4294901760, %v4163_v1  ;;  %v496_v49 = vand.u32 4294901760, %v495_v12  ;;  %v370_v55 = vld [vmem:[%s6800_s1 + $0x148] sm:$0xff] }
  0x1f   : > { %473 = vmatpush.msra.mxu1 %v472_v57  ;;  %616 = vmatpush.msra.mxu3 %v4073_v29  ;;  %v4215_v50 = vsub.f32 %v386_v60, %v4180_v18  ;;  %v4217_v53 = vand.u32 4294901760, %v378_v34  ;;  %v507_v56 = vsub.f32 %v4145_v58, %v6809_v31  ;;  %v4227_v57 = vsub.f32 %v333_v63, %v4186_v30 }
  0x20   : > { %422 = vmatpush.msra.mxu0 %v4091_v35  ;;  %6931 = vst [vmem:[#allocation4_spill] sm:$0xff] %v4206_v44  ;;  %571 = vmatpush.msra.mxu2 %v4104_v41  ;;  %v6817_v60 = vand.u32 4294901760, %v4184_v26  ;;  %v502_v0 = vand.u32 4294901760, %v501_v37  ;;  %v4234_v12 = vsub.f32 %v382_v7, %v4200_v38  ;;  %v513_v63 = vsub.f32 %v4163_v1, %v6812_v45  ;;  %v366_v7 = vld [vmem:[%s6800_s1 + $0x128] sm:$0xff] }
  0x21   : > { %479 = vmatpush.msra.mxu1 %v478_v61  ;;  %618 = vmatpush.msra.mxu3 %v4091_v35  ;;  %v6816_v61 = vand.u32 4294901760, %v4190_v32  ;;  %v4243_v31 = vsub.f32 %v329_v13, %v4206_v44  ;;  %v6820_v62 = vand.u32 4294901760, %v4204_v43  ;;  %v4246_v54 = vand.u32 4294901760, %v370_v55 }
  0x22   : > { %424 = vmatpush.msra.mxu0 %v4114_v46  ;;  %574 = vmatpush.msra.mxu2 %v4122_v48  ;;  %6932 = vst [vmem:[#allocation5_spill] sm:$0xff] %v4234_v12  ;;  %v6823_v37 = vand.u32 4294901760, %v4215_v50  ;;  %v508_v13 = vand.u32 4294901760, %v507_v56  ;;  %v519_v52 = vsub.f32 %v4184_v26, %v6817_v60  ;;  %v6825_v42 = vand.u32 4294901760, %v4227_v57 }
  0x23   : > { %485 = vmatpush.msra.mxu1 %v484_v8  ;;  %620 = vmatpush.msra.mxu3 %v4114_v46  ;;  %v4236_v8 = vand.u32 4294901760, %v374_v47  ;;  %v788_v45 = vsub.f32 %v4190_v32, %v6816_v61  ;;  %v4274_v56 = vand.u32 4294901760, %v366_v7  ;;  %v514_v61 = vand.u32 4294901760, %v513_v63 }
  0x24   : > { %426 = vmatpush.msra.mxu0 %v4128_v51  ;;  %577 = vmatpush.msra.mxu2 %v4145_v58  ;;  %v525_v60 = vsub.f32 %v4204_v43, %v6820_v62  ;;  %v6831_v33 = vand.u32 4294901760, %v4243_v31  ;;  %v4282_v27 = vsub.f32 %v370_v55, %v4246_v54  ;;  %v4293_v62 = vand.u32 4294901760, %v362_v36 }
  0x25   : > { %491 = vmatpush.msra.mxu1 %v490_v39  ;;  %622 = vmatpush.msra.mxu3 %v4128_v51  ;;  %v4255_v39 = vsub.f32 %v378_v34, %v4217_v53  ;;  %v6826_v34 = vand.u32 4294901760, %v4234_v12  ;;  %v789_v55 = vand.u32 4294901760, %v788_v45  ;;  %v520_v24 = vand.u32 4294901760, %v519_v52 }
  0x26   : > { %428 = vmatpush.msra.mxu0 %v4147_v59  ;;  %580 = vmatpush.msra.mxu2 %v4163_v1  ;;  %v531_v23 = vsub.f32 %v4227_v57, %v6825_v42  ;;  %v4315_v45 = vsub.f32 %v366_v7, %v4274_v56  ;;  %v350_v42 = vld [vmem:[%s6800_s1 + $0xa8] sm:$0xff]  ;;  %v526_v63 = vand.u32 4294901760, %v525_v60  ;;  %v6936_v60 = vand.u32 4294901760, %v4036_v14 }
  0x27   : > { %6933 = vst [vmem:[#allocation6_spill] sm:$0xff] %v4255_v39  ;;  %497 = vmatpush.msra.mxu1 %v496_v49  ;;  %624 = vmatpush.msra.mxu3 %v4147_v59  ;;  %v4272_v49 = vsub.f32 %v374_v47, %v4236_v8  ;;  %v358_v47 = vld [vmem:[%s6800_s1 + $0xe8] sm:$0xff]  ;;  %v800_v22 = vsub.f32 %v4234_v12, %v6826_v34  ;;  %v6935_v52 = vand.u32 4294901760, %v4255_v39 }
  0x28   : > { %430 = vmatpush.msra.mxu0 %v4165_v2  ;;  %583 = vmatpush.msra.mxu2 %v4184_v26  ;;  %v537_v34 = vsub.f32 %v4243_v31, %v6831_v33  ;;  %v532_v33 = vand.u32 4294901760, %v531_v23  ;;  %v6938_v23 = vand.u32 4294901760, %v4039_v15 }
  0x29   : > { %503 = vmatpush.msra.mxu1 %v502_v0  ;;  %626 = vmatpush.msra.mxu3 %v4165_v2  ;;  %v794_v0 = vsub.f32 %v4215_v50, %v6823_v37  ;;  %v354_v37 = vld [vmem:[%s6800_s1 + $0xc8] sm:$0xff]  ;;  %v806_v12 = vsub.f32 %v4255_v39, %v6935_v52  ;;  %v4333_v2 = vsub.f32 %v362_v36, %v4293_v62  ;;  %v801_v36 = vand.u32 4294901760, %v800_v22 }
  0x2a   : > { %432 = vmatpush.msra.mxu0 %v4186_v30  ;;  %586 = vmatpush.msra.mxu2 %v4204_v43  ;;  %v6937_v52 = vand.u32 4294901760, %v4272_v49  ;;  %v342_v22 = vld [vmem:[%s6800_s1 + $0x68] sm:$0xff] }
  0x2b   : > { %509 = vmatpush.msra.mxu1 %v508_v13  ;;  %628 = vmatpush.msra.mxu3 %v4186_v30  ;;  %v4317_v13 = vand.u32 4294901760, %v358_v47  ;;  %v795_v7 = vand.u32 4294901760, %v794_v0  ;;  %v4345_v30 = vand.u32 4294901760, %v350_v42  ;;  %v346_v0 = vld [vmem:[%s6800_s1 + $0x88] sm:$0xff] }
  0x2c   : > { %434 = vmatpush.msra.mxu0 %v4206_v44  ;;  %589 = vmatpush.msra.mxu2 %v4227_v57  ;;  %v4371_v15 = vand.u32 4294901760, %v346_v0 }
  0x2d   : > { %515 = vmatpush.msra.mxu1 %v514_v61  ;;  %630 = vmatpush.msra.mxu3 %v4206_v44  ;;  %v4335_v61 = vand.u32 4294901760, %v354_v37  ;;  %v812_v44 = vsub.f32 %v4272_v49, %v6937_v52  ;;  %v807_v52 = vand.u32 4294901760, %v806_v12  ;;  %v338_v12 = vld [vmem:[%s6800_s1 + $0x48] sm:$0xff] }
  0x2e   : > { %641 = vmatpush.msrb.mxu0 %v6936_v60  ;;  %592 = vmatpush.msra.mxu2 %v4243_v31  ;;  %v538_v60 = vand.u32 4294901760, %v537_v34  ;;  %v6940_v34 = vand.u32 4294901760, %v4042_v16  ;;  %v4387_v16 = vand.u32 4294901760, %v342_v22 }
  0x2f   : > { %790 = vmatpush.msrb.mxu3 %v789_v55  ;;  %521 = vmatpush.msra.mxu1 %v520_v24  ;;  %v4356_v55 = vsub.f32 %v358_v47, %v4317_v13  ;;  %v6939_v24 = vand.u32 4294901760, %v4282_v27  ;;  %v6835_v47 = vand.u32 4294901760, %v4333_v2  ;;  %v4369_v14 = vsub.f32 %v354_v37, %v4335_v61 }
  0x30   : > { %645 = vmatpush.msrb.mxu0 %v6938_v23  ;;  %745 = vmatpush.msrb.mxu2 %v4167_v6  ;;  %v4378_v23 = vsub.f32 %v350_v42, %v4345_v30  ;;  %v813_v37 = vand.u32 4294901760, %v812_v44  ;;  %v4405_v44 = vsub.f32 %v346_v0, %v4371_v15  ;;  %v4418_v0 = vsub.f32 %v342_v22, %v4387_v16 }
  0x31   : > { %v818_v39 = vsub.f32 %v4282_v27, %v6939_v24  ;;  %796 = vmatpush.msrb.mxu3 %v795_v7  ;;  %527 = vmatpush.msra.mxu1 %v526_v63  ;;  %v6941_v63 = vand.u32 4294901760, %v4315_v45  ;;  %v6836_v24 = vand.u32 4294901760, %v4356_v55 }
  0x32   : > { %649 = vmatpush.msrb.mxu0 %v6940_v34  ;;  %747 = vmatpush.msrb.mxu2 %v4180_v18  ;;  %v6942_v34 = vand.u32 4294901760, %v4050_v19  ;;  %v328_v19 = vld [vmem:[%s323_s20] sm:$0xff] }
  0x33   : > { %802 = vmatpush.msrb.mxu3 %v801_v36  ;;  %533 = vmatpush.msra.mxu1 %v532_v33  ;;  %v824_v7 = vsub.f32 %v4315_v45, %v6941_v63  ;;  %v819_v42 = vand.u32 4294901760, %v818_v39  ;;  %v334_v36 = vld [vmem:[%s6800_s1 + $0x28] sm:$0xff]  ;;  %v830_v33 = vsub.f32 %v4333_v2, %v6835_v47  ;;  %v4407_v39 = vand.u32 4294901760, %v338_v12 }
  0x34   : > { %653 = vmatpush.msrb.mxu0 %v6942_v34  ;;  %749 = vmatpush.msrb.mxu2 %v4200_v38  ;;  %v6943_v63 = vand.u32 4294901760, %v4053_v20  ;;  %v4420_v47 = vand.u32 4294901760, %v334_v36  ;;  %v6944_v20 = vand.u32 4294901760, %v4056_v21  ;;  %v6946_v34 = vand.u32 4294901760, %v4071_v28 }
  0x35   : > { %808 = vmatpush.msrb.mxu3 %v807_v52  ;;  %539 = vmatpush.msra.mxu1 %v538_v60  ;;  %v825_v60 = vand.u32 4294901760, %v824_v7  ;;  %v836_v52 = vsub.f32 %v4356_v55, %v6836_v24  ;;  %v6945_v7 = vand.u32 4294901760, %v4369_v14  ;;  %v4434_v24 = vsub.f32 %v338_v12, %v4407_v39 }
  0x36   : > { %657 = vmatpush.msrb.mxu0 %v6943_v63  ;;  %751 = vmatpush.msrb.mxu2 %v4217_v53  ;;  %v853_v63 = vand.u32 4294901760, %v4405_v44  ;;  %v4439_v21 = vand.u32 4294901760, %v328_v19  ;;  %v859_v12 = vand.u32 4294901760, %v4418_v0  ;;  %v6949_v28 = vand.u32 4294901760, %v4100_v40 }
  0x37   : > { %708 = vmatpush.msrb.mxu1 %v4006_v3  ;;  %814 = vmatpush.msrb.mxu3 %v813_v37  ;;  %v330_v3 = vld [vmem:[%s6800_s1 + $0x8] sm:$0xff]  ;;  %v831_v37 = vand.u32 4294901760, %v830_v33  ;;  %v842_v22 = vsub.f32 %v4369_v14, %v6945_v7  ;;  %v6948_v33 = vand.u32 4294901760, %v4378_v23  ;;  %v4449_v7 = vsub.f32 %v334_v36, %v4420_v47 }
  0x38   : > { %661 = vmatpush.msrb.mxu0 %v6944_v20  ;;  %753 = vmatpush.msrb.mxu2 %v4236_v8  ;;  %6947 = vst [vmem:[#allocation7_spill] sm:$0xff] %v4439_v21  ;;  %v4463_v40 = vsub.f32 %v328_v19, %v4439_v21 }
  0x39   : > { %710 = vmatpush.msrb.mxu1 %v4008_v4  ;;  %820 = vmatpush.msrb.mxu3 %v819_v42  ;;  %v4441_v4 = vand.u32 4294901760, %v330_v3  ;;  %v837_v42 = vand.u32 4294901760, %v836_v52  ;;  %v848_v20 = vsub.f32 %v4378_v23, %v6948_v33  ;;  %v6950_v52 = vand.u32 4294901760, %v4104_v41 }
  0x3a   : > { %665 = vmatpush.msrb.mxu0 %v6946_v34  ;;  %755 = vmatpush.msrb.mxu2 %v4246_v54  ;;  %v854_v34 = vsub.f32 %v4405_v44, %v853_v63  ;;  %v6951_v41 = vand.u32 4294901760, %v4122_v48  ;;  %v4485_v48 = vand.u32 4294901760, %v4463_v40 }
  0x3b   : > { %712 = vmatpush.msrb.mxu1 %v4010_v5  ;;  %826 = vmatpush.msrb.mxu3 %v825_v60  ;;  %v843_v5 = vand.u32 4294901760, %v842_v22  ;;  %v865_v60 = vand.u32 4294901760, %v4434_v24  ;;  %v849_v36 = vand.u32 4294901760, %v848_v20  ;;  %v871_v22 = vand.u32 4294901760, %v4449_v7 }
  0x3c   : > { %669 = vmatpush.msrb.mxu0 %v6949_v28  ;;  %757 = vmatpush.msrb.mxu2 %v4274_v56  ;;  %v6953_v20 = vand.u32 4294901760, %v4163_v1  ;;  %v6955_v1 = vand.u32 4294901760, %v4204_v43  ;;  %v6957_v43 = vand.u32 4294901760, %v4243_v31  ;;  %v6961_v31 = vand.u32 4294901760, %v4215_v50 }
  0x3d   : > { %714 = vmatpush.msrb.mxu1 %v4021_v9  ;;  %832 = vmatpush.msrb.mxu3 %v831_v37  ;;  %v4466_v9 = vsub.f32 %v330_v3, %v4441_v4  ;;  %v860_v37 = vsub.f32 %v4418_v0, %v859_v12  ;;  %v866_v19 = vsub.f32 %v4434_v24, %v865_v60  ;;  %v6952_v3 = vand.u32 4294901760, %v4145_v58 }
  0x3e   : > { %673 = vmatpush.msrb.mxu0 %v6950_v52  ;;  %759 = vmatpush.msrb.mxu2 %v4293_v62  ;;  %v872_v33 = vsub.f32 %v4449_v7, %v871_v22  ;;  %v6954_v58 = vand.u32 4294901760, %v4184_v26 }
  0x3f   : > { %716 = vmatpush.msrb.mxu1 %v4023_v10  ;;  %838 = vmatpush.msrb.mxu3 %v837_v42  ;;  %v855_v10 = vand.u32 4294901760, %v854_v34  ;;  %v877_v42 = vand.u32 4294901760, %v4466_v9 }
  0x40   : > { %677 = vmatpush.msrb.mxu0 %v6951_v41  ;;  %761 = vmatpush.msrb.mxu2 %v4317_v13 }
  0x41   : > { %718 = vmatpush.msrb.mxu1 %v4025_v11  ;;  %844 = vmatpush.msrb.mxu3 %v843_v5  ;;  %v861_v11 = vand.u32 4294901760, %v860_v37  ;;  %v878_v28 = vsub.f32 %v4466_v9, %v877_v42  ;;  %v438_v5 = vsub.f32 %v4463_v40, %v4485_v48 }
  0x42   : > { %681 = vmatpush.msrb.mxu0 %v6952_v3  ;;  %763 = vmatpush.msrb.mxu2 %v4335_v61 }
  0x43   : > { %720 = vmatpush.msrb.mxu1 %v4044_v17  ;;  %850 = vmatpush.msrb.mxu3 %v849_v36  ;;  %v867_v17 = vand.u32 4294901760, %v866_v19  ;;  %v879_v26 = vand.u32 4294901760, %v878_v28  ;;  %v4511_v34 = vand.u32 4294901760, %v438_v5  ;;  %v6967_v36 = vand.u32 4294901760, %v4272_v49  ;;  %v351_v28 = vld [vmem:[%s6800_s1 + $0xb0] sm:$0xff] }
  0x44   : > { %685 = vmatpush.msrb.mxu0 %v6953_v20  ;;  %765 = vmatpush.msrb.mxu2 %v4345_v30 }
  0x45   : > { %722 = vmatpush.msrb.mxu1 %v4063_v25  ;;  %856 = vmatpush.msrb.mxu3 %v855_v10  ;;  %v873_v25 = vand.u32 4294901760, %v872_v33  ;;  %v359_v10 = vld [vmem:[%s6800_s1 + $0xf0] sm:$0xff] }
  0x46   : > { %689 = vmatpush.msrb.mxu0 %v6954_v58  ;;  %767 = vmatpush.msrb.mxu2 %v4371_v15 }
  0x47   : > { %724 = vmatpush.msrb.mxu1 %v4073_v29  ;;  %862 = vmatpush.msrb.mxu3 %v861_v11  ;;  %v6956_v29 = vand.u32 4294901760, %v4227_v57  ;;  %v6963_v57 = vld [vmem:[#allocation6_spill] sm:$0xff]  ;;  %v355_v11 = vld [vmem:[%s6800_s1 + $0xd0] sm:$0xff] }
  0x48   : > { %693 = vmatpush.msrb.mxu0 %v6955_v1  ;;  %769 = vmatpush.msrb.mxu2 %v4387_v16  ;;  %v4718_v1 = vand.u32 4294901760, %v355_v11 }
  0x49   : > { %726 = vmatpush.msrb.mxu1 %v4091_v35  ;;  %868 = vmatpush.msrb.mxu3 %v867_v17  ;;  %v6958_v35 = vand.u32 4294901760, %v4190_v32  ;;  %v4702_v17 = vand.u32 4294901760, %v359_v10 }
  0x4a   : > { %697 = vmatpush.msrb.mxu0 %v6956_v29  ;;  %771 = vmatpush.msrb.mxu2 %v4407_v39 }
  0x4b   : > { %728 = vmatpush.msrb.mxu1 %v4114_v46  ;;  %874 = vmatpush.msrb.mxu3 %v873_v25  ;;  %v6959_v46 = vld [vmem:[#allocation2_spill] sm:$0xff] }
  0x4c   : > { %595 = vmatmul.f32.vlgmr.msra.gmra.mxu2 %v4463_v40  ;;  %701 = vmatpush.msrb.mxu0 %v6957_v43 }
  0x4d   : > { %730 = vmatpush.msrb.mxu1 %v4128_v51  ;;  %773 = vmatpush.msrb.mxu2 %v4420_v47  ;;  %v6960_v51 = vld [vmem:[#allocation5_spill] sm:$0xff] }
  0x4e   : > { %880 = vmatpush.msrb.mxu3 %v879_v26  ;;  %440 = vmatmul.f32.vlgmr.msra.gmra.mxu0 %v4511_v34  ;;  %v6964_v52 = vand.u32 4294901760, %v6960_v51 }
  0x4f   : > { %634 = vmatmul.f32.vlgmr.msra.gmra.mxu3 %v4485_v48  ;;  %888 = vmatpush.msra.mxu0 %v4190_v32  ;;  %v6965_v32 = vld [vmem:[#allocation4_spill] sm:$0xff] }
  0x50   : > { %1049 = vmatpush.msra.mxu3 %v4167_v6  ;;  %732 = vmatpush.msrb.mxu1 %v4147_v59  ;;  %v6962_v59 = vld [vmem:[#allocation3_spill] sm:$0xff] }
  0x51   : > { %775 = vmatpush.msrb.mxu2 %v4441_v4  ;;  %541 = vmatmul.f32.vlgmr.msra.gmra.mxu1 %v4439_v21 }
  0x52   : > { %891 = vmatpush.msra.mxu0 %v4215_v50  ;;  %1051 = vmatpush.msra.mxu3 %v4180_v18  ;;  %v6966_v50 = vand.u32 4294901760, %v6963_v57 }
  0x53   : > { %982 = vmatpush.msra.mxu2 %v6958_v35  ;;  %734 = vmatpush.msrb.mxu1 %v6959_v46  ;;  %v4732_v46 = vsub.f32 %v359_v10, %v4702_v17 }
  0x54   : > { %894 = vmatpush.msra.mxu0 %v6960_v51  ;;  %1053 = vmatpush.msra.mxu3 %v4200_v38  ;;  %v4734_v51 = vand.u32 4294901760, %v351_v28 }
  0x55   : > { %986 = vmatpush.msra.mxu2 %v6961_v31  ;;  %736 = vmatpush.msrb.mxu1 %v6962_v59  ;;  %v392_v31 = vld [vmem:[%s6800_s1 + $0x1f8] sm:$0xff] }
  0x56   : > { %897 = vmatpush.msra.mxu0 %v6963_v57  ;;  %1055 = vmatpush.msra.mxu3 %v4217_v53  ;;  %v343_v57 = vld [vmem:[%s6800_s1 + $0x70] sm:$0xff] }
  0x57   : > { %990 = vmatpush.msra.mxu2 %v6964_v52  ;;  %738 = vmatpush.msrb.mxu1 %v6965_v32 }
  0x58   : > { %703 = vmatmul.f32.vlgmr.msrb.gmra.mxu0 %v4439_v21  ;;  %1057 = vmatpush.msra.mxu3 %v4236_v8 }
  0x59   : > { %941 = vmatpush.msra.mxu1 %v4167_v6  ;;  %900 = vmatpush.msra.mxu0 %v4272_v49  ;;  %v6968_v6 = vand.u32 4294901760, %v4282_v27 }
  0x5a   : > { %994 = vmatpush.msra.mxu2 %v6966_v50  ;;  %740 = vmatmul.f32.vlgmr.msrb.gmra.mxu1 %v4439_v21  ;;  %v4750_v50 = vsub.f32 %v355_v11, %v4718_v1 }
  0x5b   : > { %903 = vmatpush.msra.mxu0 %v4282_v27  ;;  %943 = vmatpush.msra.mxu1 %v4180_v18  ;;  %v6969_v18 = vand.u32 4294901760, %v4315_v45  ;;  %v6971_v27 = vand.u32 4294901760, %v4356_v55 }
  0x5c   : > { %998 = vmatpush.msra.mxu2 %v6967_v36  ;;  %1059 = vmatpush.msra.mxu3 %v4246_v54  ;;  %v6838_v10 = vand.u32 4294901760, %v4750_v50 }
  0x5d   : > { %906 = vmatpush.msra.mxu0 %v4315_v45  ;;  %945 = vmatpush.msra.mxu1 %v4200_v38  ;;  %v6970_v38 = vand.u32 4294901760, %v4333_v2  ;;  %v379_v45 = vld [vmem:[%s6800_s1 + $0x190] sm:$0xff] }
  0x5e   : > { %1002 = vmatpush.msra.mxu2 %v6968_v6  ;;  %1061 = vmatpush.msra.mxu3 %v4274_v56  ;;  %v388_v6 = vld [vmem:[%s6800_s1 + $0x1d8] sm:$0xff] }
  0x5f   : > { %909 = vmatpush.msra.mxu0 %v4333_v2  ;;  %947 = vmatpush.msra.mxu1 %v4217_v53  ;;  %v6972_v53 = vand.u32 4294901760, %v4369_v14  ;;  %v391_v2 = vld [vmem:[%s6800_s1 + $0x1f0] sm:$0xff] }
  0x60   : > { %1006 = vmatpush.msra.mxu2 %v6969_v18  ;;  %1063 = vmatpush.msra.mxu3 %v4293_v62  ;;  %v4591_v49 = vand.u32 4294901760, %v391_v2 }
  0x61   : > { %912 = vmatpush.msra.mxu0 %v4356_v55  ;;  %949 = vmatpush.msra.mxu1 %v4236_v8  ;;  %v387_v8 = vld [vmem:[%s6800_s1 + $0x1d0] sm:$0xff] }
  0x62   : > { %1010 = vmatpush.msra.mxu2 %v6970_v38  ;;  %1065 = vmatpush.msra.mxu3 %v4317_v13  ;;  %v339_v38 = vld [vmem:[%s6800_s1 + $0x50] sm:$0xff] }
  0x63   : > { %915 = vmatpush.msra.mxu0 %v4369_v14  ;;  %951 = vmatpush.msra.mxu1 %v4246_v54  ;;  %v6973_v54 = vand.u32 4294901760, %v4378_v23 }
  0x64   : > { %1014 = vmatpush.msra.mxu2 %v6971_v27  ;;  %1067 = vmatpush.msra.mxu3 %v4335_v61  ;;  %v4765_v27 = vand.u32 4294901760, %v392_v31 }
  0x65   : > { %918 = vmatpush.msra.mxu0 %v4378_v23  ;;  %953 = vmatpush.msra.mxu1 %v4274_v56  ;;  %v4601_v56 = vand.u32 4294901760, %v387_v8  ;;  %v4627_v23 = vand.u32 4294901760, %v379_v45 }
  0x66   : > { %1018 = vmatpush.msra.mxu2 %v6972_v53  ;;  %1069 = vmatpush.msra.mxu3 %v4345_v30 }
  0x67   : > { %921 = vmatpush.msra.mxu0 %v4405_v44  ;;  %955 = vmatpush.msra.mxu1 %v4293_v62  ;;  %v383_v62 = vld [vmem:[%s6800_s1 + $0x1b0] sm:$0xff]  ;;  %v4625_v55 = vsub.f32 %v387_v8, %v4601_v56  ;;  %v6837_v8 = vand.u32 4294901760, %v4732_v46 }
  0x68   : > { %1022 = vmatpush.msra.mxu2 %v6973_v54  ;;  %1071 = vmatpush.msra.mxu3 %v4371_v15  ;;  %v4614_v14 = vand.u32 4294901760, %v383_v62  ;;  %v4771_v54 = vand.u32 4294901760, %v343_v57 }
  0x69   : > { %924 = vmatpush.msra.mxu0 %v4418_v0  ;;  %957 = vmatpush.msra.mxu1 %v4317_v13  ;;  %v4612_v13 = vsub.f32 %v391_v2, %v4591_v49  ;;  %v4769_v2 = vsub.f32 %v351_v28, %v4734_v51  ;;  %v4805_v28 = vsub.f32 %v392_v31, %v4765_v27 }
  0x6a   : > { %1026 = vmatpush.msra.mxu2 %v853_v63  ;;  %1073 = vmatpush.msra.mxu3 %v4387_v16  ;;  %v4652_v63 = vsub.f32 %v379_v45, %v4627_v23  ;;  %6974 = vst [vmem:[#allocation2_spill] sm:$0xff] %v4771_v54 }
  0x6b   : > { %927 = vmatpush.msra.mxu0 %v4434_v24  ;;  %959 = vmatpush.msra.mxu1 %v4335_v61  ;;  %v375_v61 = vld [vmem:[%s6800_s1 + $0x170] sm:$0xff]  ;;  %v4638_v24 = vsub.f32 %v383_v62, %v4614_v14  ;;  %v6848_v0 = vand.u32 4294901760, %v4612_v13  ;;  %6977 = vst [vmem:[#allocation6_spill] sm:$0xff] %v4805_v28 }
  0x6c   : > { %1030 = vmatpush.msra.mxu2 %v859_v12  ;;  %1075 = vmatpush.msra.mxu3 %v4407_v39  ;;  %v4640_v44 = vand.u32 4294901760, %v375_v61  ;;  %v6844_v3 = vand.u32 4294901760, %v4652_v63  ;;  %v335_v62 = vld [vmem:[%s6800_s1 + $0x30] sm:$0xff] }
  0x6d   : > { %781 = vmatmul.f32.vlgmr.msrb.gmra.mxu2 %v4511_v34  ;;  %930 = vmatpush.msra.mxu0 %v4449_v7  ;;  %v6847_v7 = vand.u32 4294901760, %v4625_v55 }
  0x6e   : > { %961 = vmatpush.msra.mxu1 %v4345_v30  ;;  %1034 = vmatpush.msra.mxu2 %v865_v60  ;;  %v371_v30 = vld [vmem:[%s6800_s1 + $0x150] sm:$0xff]  ;;  %v1147_v25 = vsub.f32 %v4652_v63, %v6844_v3 }
  0x6f   : > { %1077 = vmatpush.msra.mxu3 %v4420_v47  ;;  %933 = vmatpush.msra.mxu0 %v4466_v9  ;;  %v4654_v12 = vand.u32 4294901760, %v371_v30  ;;  %v363_v60 = vld [vmem:[%s6800_s1 + $0x110] sm:$0xff]  ;;  %v4670_v9 = vsub.f32 %v375_v61, %v4640_v44  ;;  %v4782_v61 = vand.u32 4294901760, %v388_v6 }
  0x70   : > { %882 = vmatmul.f32.vlgmr.msrb.gmra.mxu3 %v4439_v21  ;;  %963 = vmatpush.msra.mxu1 %v4371_v15  ;;  %v367_v15 = vld [vmem:[%s6800_s1 + $0x130] sm:$0xff]  ;;  %v4675_v41 = vand.u32 4294901760, %v363_v60  ;;  %v1148_v52 = vand.u32 4294901760, %v1147_v25  ;;  %v4812_v25 = vsub.f32 %v343_v57, %v4771_v54  ;;  %v1183_v57 = vsub.f32 %v4750_v50, %v6838_v10 }
  0x71   : > { %1038 = vmatpush.msra.mxu2 %v871_v22  ;;  %1079 = vmatpush.msra.mxu3 %v4441_v4  ;;  %v4662_v37 = vand.u32 4294901760, %v367_v15  ;;  %v6845_v22 = vand.u32 4294901760, %v4638_v24  ;;  %v4686_v19 = vsub.f32 %v371_v30, %v4654_v12  ;;  %v384_v30 = vld [vmem:[%s6800_s1 + $0x1b8] sm:$0xff] }
  0x72   : > { %1086 = vmatpush.msrb.mxu0 %v4591_v49  ;;  %965 = vmatpush.msra.mxu1 %v4387_v16  ;;  %v1129_v16 = vsub.f32 %v4612_v13, %v6848_v0  ;;  %v4708_v58 = vsub.f32 %v363_v60, %v4675_v41 }
  0x73   : > { %1282 = vmatpush.msrb.mxu3 %v4591_v49  ;;  %1042 = vmatpush.msra.mxu2 %v877_v42  ;;  %v4692_v42 = vsub.f32 %v367_v15, %v4662_v37  ;;  %v1141_v20 = vsub.f32 %v4638_v24, %v6845_v22  ;;  %v6841_v29 = vand.u32 4294901760, %v4686_v19 }
  0x74   : > { %1088 = vmatpush.msrb.mxu0 %v4601_v56  ;;  %967 = vmatpush.msra.mxu1 %v4407_v39  ;;  %v1135_v39 = vsub.f32 %v4625_v55, %v6847_v7  ;;  %v1130_v33 = vand.u32 4294901760, %v1129_v16  ;;  %v6839_v59 = vand.u32 4294901760, %v4708_v58  ;;  %v4791_v16 = vand.u32 4294901760, %v339_v38 }
  0x75   : > { %1229 = vmatpush.msrb.mxu2 %v4612_v13  ;;  %1284 = vmatpush.msrb.mxu3 %v4601_v56  ;;  %v6840_v26 = vand.u32 4294901760, %v4692_v42  ;;  %v1142_v43 = vand.u32 4294901760, %v1141_v20  ;;  %v1159_v32 = vsub.f32 %v4686_v19, %v6841_v29  ;;  %v331_v20 = vld [vmem:[%s6800_s1 + $0x10] sm:$0xff] }
  0x76   : > { %1044 = vmatmul.f32.vlgmr.msra.gmra.mxu2 %v4439_v21  ;;  %1090 = vmatpush.msrb.mxu0 %v4614_v14  ;;  %v1136_v5 = vand.u32 4294901760, %v1135_v39  ;;  %v1171_v45 = vsub.f32 %v4708_v58, %v6839_v59  ;;  %6975 = vst [vmem:[#allocation5_spill] sm:$0xff] %v4791_v16  ;;  %v380_v39 = vld [vmem:[%s6800_s1 + $0x198] sm:$0xff] }
  0x77   : > { %1232 = vmatpush.msrb.mxu2 %v4625_v55  ;;  %1286 = vmatpush.msrb.mxu3 %v4614_v14  ;;  %v1165_v18 = vsub.f32 %v4692_v42, %v6840_v26  ;;  %v1160_v15 = vand.u32 4294901760, %v1159_v32  ;;  %v4825_v32 = vand.u32 4294901760, %v380_v39  ;;  %v6850_v26 = vand.u32 4294901760, %v4812_v25 }
  0x78   : > { %969 = vmatpush.msra.mxu1 %v4420_v47  ;;  %936 = vmatmul.f32.vlgmr.msra.gmra.mxu0 %v4463_v40  ;;  %v6842_v47 = vand.u32 4294901760, %v4670_v9  ;;  %v1172_v31 = vand.u32 4294901760, %v1171_v45 }
  0x79   : > { %1081 = vmatmul.f32.vlgmr.msra.gmra.mxu3 %v4439_v21  ;;  %1092 = vmatpush.msrb.mxu0 %v4627_v23  ;;  %v1166_v11 = vand.u32 4294901760, %v1165_v18  ;;  %v4832_v18 = vsub.f32 %v339_v38, %v4791_v16  ;;  %v1201_v7 = vsub.f32 %v4812_v25, %v6850_v26  ;;  %v360_v26 = vld [vmem:[%s6800_s1 + $0xf8] sm:$0xff] }
  0x7a   : > { %1235 = vmatpush.msrb.mxu2 %v4638_v24  ;;  %1288 = vmatpush.msrb.mxu3 %v4627_v23  ;;  %v1153_v35 = vsub.f32 %v4670_v9, %v6842_v47 }
  0x7b   : > { %971 = vmatpush.msra.mxu1 %v4441_v4  ;;  %1094 = vmatpush.msrb.mxu0 %v4640_v44  ;;  %v347_v4 = vld [vmem:[%s6800_s1 + $0x90] sm:$0xff] }
  0x7c   : > { %975 = vmatmul.f32.vlgmr.msra.gmra.mxu1 %v4485_v48  ;;  %1238 = vmatpush.msrb.mxu2 %v4652_v63  ;;  %v4752_v36 = vand.u32 4294901760, %v347_v4  ;;  %v1154_v53 = vand.u32 4294901760, %v1153_v35  ;;  %v376_v35 = vld [vmem:[%s6800_s1 + $0x178] sm:$0xff] }
  0x7d   : > { %1131 = vmatpush.msrb.mxu1 %v1130_v33  ;;  %1290 = vmatpush.msrb.mxu3 %v4640_v44  ;;  %v4799_v33 = vand.u32 4294901760, %v335_v62  ;;  %v4846_v10 = vand.u32 4294901760, %v376_v35 }
  0x7e   : > { %1096 = vmatpush.msrb.mxu0 %v4654_v12  ;;  %1241 = vmatpush.msrb.mxu2 %v4670_v9  ;;  %v4789_v60 = vsub.f32 %v347_v4, %v4752_v36  ;;  %v6843_v4 = vand.u32 4294901760, %v4769_v2 }
  0x7f   : > { %1137 = vmatpush.msrb.mxu1 %v1136_v5  ;;  %1292 = vmatpush.msrb.mxu3 %v4654_v12  ;;  %6976 = vst [vmem:[#allocation3_spill] sm:$0xff] %v4799_v33  ;;  %v1177_v5 = vsub.f32 %v4732_v46, %v6837_v8  ;;  %v4843_v45 = vsub.f32 %v335_v62, %v4799_v33 }
  0x80   : > { %1098 = vmatpush.msrb.mxu0 %v4662_v37  ;;  %1244 = vmatpush.msrb.mxu2 %v4686_v19  ;;  %v6846_v8 = vand.u32 4294901760, %v4789_v60  ;;  %v1189_v59 = vsub.f32 %v4769_v2, %v6843_v4 }
  0x81   : > { %1143 = vmatpush.msrb.mxu1 %v1142_v43  ;;  %1294 = vmatpush.msrb.mxu3 %v4662_v37  ;;  %v4815_v43 = vand.u32 4294901760, %v384_v30  ;;  %v1178_v38 = vand.u32 4294901760, %v1177_v5  ;;  %v368_v5 = vld [vmem:[%s6800_s1 + $0x138] sm:$0xff] }
  0x82   : > { %1100 = vmatpush.msrb.mxu0 %v4675_v41  ;;  %1247 = vmatpush.msrb.mxu2 %v4692_v42  ;;  %v1195_v4 = vsub.f32 %v4789_v60, %v6846_v8  ;;  %v1190_v8 = vand.u32 4294901760, %v1189_v59 }
  0x83   : > { %1149 = vmatpush.msrb.mxu1 %v1148_v52  ;;  %1296 = vmatpush.msrb.mxu3 %v4675_v41  ;;  %v4823_v52 = vsub.f32 %v388_v6, %v4782_v61  ;;  %v372_v6 = vld [vmem:[%s6800_s1 + $0x158] sm:$0xff]  ;;  %v4854_v29 = vsub.f32 %v384_v30, %v4815_v43  ;;  %v1184_v30 = vand.u32 4294901760, %v1183_v57  ;;  %v4882_v57 = vsub.f32 %v376_v35, %v4846_v10 }
  0x84   : > { %1102 = vmatpush.msrb.mxu0 %v4702_v17  ;;  %1250 = vmatpush.msrb.mxu2 %v4708_v58  ;;  %v4862_v47 = vand.u32 4294901760, %v372_v6  ;;  %v1196_v0 = vand.u32 4294901760, %v1195_v4  ;;  %v356_v4 = vld [vmem:[%s6800_s1 + $0xd8] sm:$0xff] }
  0x85   : > { %1155 = vmatpush.msrb.mxu1 %v1154_v53  ;;  %1298 = vmatpush.msrb.mxu3 %v4702_v17  ;;  %6978 = vst [vmem:[#allocation4_spill] sm:$0xff] %v4823_v52  ;;  %v4834_v53 = vand.u32 4294901760, %v331_v20  ;;  %v6852_v62 = vand.u32 4294901760, %v4823_v52  ;;  %v4947_v21 = vand.u32 4294901760, %v356_v4 }
  0x86   : > { %1104 = vmatpush.msrb.mxu0 %v4718_v1  ;;  %1253 = vmatpush.msrb.mxu2 %v4732_v46  ;;  %6980 = vst [vmem:[#allocation9_spill] sm:$0xff] %v4854_v29  ;;  %v4901_v59 = vsub.f32 %v372_v6, %v4862_v47 }
  0x87   : > { %1161 = vmatpush.msrb.mxu1 %v1160_v15  ;;  %1300 = vmatpush.msrb.mxu3 %v4718_v1  ;;  %6979 = vst [vmem:[#allocation8_spill] sm:$0xff] %v4834_v53  ;;  %v6849_v15 = vand.u32 4294901760, %v4805_v28  ;;  %v4872_v3 = vsub.f32 %v331_v20, %v4834_v53  ;;  %v364_v20 = vld [vmem:[%s6800_s1 + $0x118] sm:$0xff]  ;;  %v1476_v35 = vsub.f32 %v4823_v52, %v6852_v62 }
  0x88   : > { %1106 = vmatpush.msrb.mxu0 %v4734_v51  ;;  %1256 = vmatpush.msrb.mxu2 %v4750_v50  ;;  %v4911_v62 = vand.u32 4294901760, %v364_v20 }
  0x89   : > { %1167 = vmatpush.msrb.mxu1 %v1166_v11  ;;  %1302 = vmatpush.msrb.mxu3 %v4734_v51  ;;  %v4860_v11 = vsub.f32 %v380_v39, %v4825_v32  ;;  %v6854_v39 = vand.u32 4294901760, %v4832_v18 }
  0x8a   : > { %1108 = vmatpush.msrb.mxu0 %v4752_v36  ;;  %1259 = vmatpush.msrb.mxu2 %v4769_v2 }
  0x8b   : > { %6981 = vst [vmem:[#allocation10_spill] sm:$0xff] %v4860_v11  ;;  %1173 = vmatpush.msrb.mxu1 %v1172_v31  ;;  %1304 = vmatpush.msrb.mxu3 %v4752_v36  ;;  %v1470_v31 = vsub.f32 %v4805_v28, %v6849_v15  ;;  %v4892_v15 = vand.u32 4294901760, %v368_v5  ;;  %v1207_v22 = vsub.f32 %v4832_v18, %v6854_v39  ;;  %v1202_v39 = vand.u32 4294901760, %v1201_v7 }
  0x8c   : > { %1110 = vmatpush.msrb.mxu0 %v4771_v54  ;;  %1262 = vmatpush.msrb.mxu2 %v4789_v60  ;;  %v4929_v28 = vand.u32 4294901760, %v360_v26 }
  0x8d   : > { %1179 = vmatpush.msrb.mxu1 %v1178_v38  ;;  %1306 = vmatpush.msrb.mxu3 %v4771_v54  ;;  %v1471_v6 = vand.u32 4294901760, %v1470_v31  ;;  %v6982_v38 = vand.u32 4294901760, %v4843_v45  ;;  %v6983_v54 = vand.u32 4294901760, %v4854_v29  ;;  %v4927_v31 = vsub.f32 %v368_v5, %v4892_v15 }
  0x8e   : > { %1112 = vmatpush.msrb.mxu0 %v4791_v16  ;;  %1265 = vmatpush.msrb.mxu2 %v4812_v25  ;;  %v1208_v5 = vand.u32 4294901760, %v1207_v22  ;;  %v348_v22 = vld [vmem:[%s6800_s1 + $0x98] sm:$0xff] }
  0x8f   : > { %1185 = vmatpush.msrb.mxu1 %v1184_v30  ;;  %1308 = vmatpush.msrb.mxu3 %v4791_v16  ;;  %v1213_v30 = vsub.f32 %v4843_v45, %v6982_v38  ;;  %v1482_v52 = vsub.f32 %v4854_v29, %v6983_v54  ;;  %v1477_v38 = vand.u32 4294901760, %v1476_v35  ;;  %v6984_v16 = vand.u32 4294901760, %v4860_v11  ;;  %v352_v54 = vld [vmem:[%s6800_s1 + $0xb8] sm:$0xff] }
  0x90   : > { %1114 = vmatpush.msrb.mxu0 %v4799_v33  ;;  %1268 = vmatpush.msrb.mxu2 %v4832_v18  ;;  %v4945_v35 = vsub.f32 %v364_v20, %v4911_v62  ;;  %v4975_v20 = vsub.f32 %v356_v4, %v4947_v21 }
  0x91   : > { %1191 = vmatpush.msrb.mxu1 %v1190_v8  ;;  %1310 = vmatpush.msrb.mxu3 %v4799_v33  ;;  %v1488_v8 = vsub.f32 %v4860_v11, %v6984_v16  ;;  %v6985_v33 = vand.u32 4294901760, %v4872_v3  ;;  %v6986_v16 = vand.u32 4294901760, %v4612_v13  ;;  %v1214_v7 = vand.u32 4294901760, %v1213_v30 }
  0x92   : > { %1116 = vmatpush.msrb.mxu0 %v4834_v53  ;;  %1271 = vmatpush.msrb.mxu2 %v4843_v45  ;;  %v6987_v11 = vand.u32 4294901760, %v4882_v57  ;;  %v4962_v13 = vand.u32 4294901760, %v352_v54  ;;  %v6989_v30 = vand.u32 4294901760, %v4901_v59 }
  0x93   : > { %1197 = vmatpush.msrb.mxu1 %v1196_v0  ;;  %1312 = vmatpush.msrb.mxu3 %v4834_v53  ;;  %v1219_v29 = vsub.f32 %v4872_v3, %v6985_v33  ;;  %v1483_v33 = vand.u32 4294901760, %v1482_v52  ;;  %v4960_v53 = vsub.f32 %v360_v26, %v4929_v28  ;;  %v344_v52 = vld [vmem:[%s6800_s1 + $0x78] sm:$0xff] }
  0x94   : > { %1323 = vmatpush.msra.mxu0 %v6986_v16  ;;  %v1494_v0 = vsub.f32 %v4882_v57, %v6987_v11  ;;  %1274 = vmatpush.msrb.mxu2 %v4872_v3  ;;  %v1489_v11 = vand.u32 4294901760, %v1488_v8  ;;  %v6867_v16 = vand.u32 4294901760, %v4945_v35  ;;  %v6990_v8 = vand.u32 4294901760, %v4638_v24 }
  0x95   : > { %1472 = vmatpush.msra.mxu3 %v1471_v6  ;;  %1203 = vmatpush.msrb.mxu1 %v1202_v39  ;;  %v6988_v6 = vand.u32 4294901760, %v4625_v55  ;;  %v1500_v39 = vsub.f32 %v4901_v59, %v6989_v30  ;;  %v1220_v26 = vand.u32 4294901760, %v1219_v29  ;;  %v4977_v55 = vand.u32 4294901760, %v348_v22  ;;  %v340_v30 = vld [vmem:[%s6800_s1 + $0x58] sm:$0xff] }
  0x96   : > { %1427 = vmatpush.msra.mxu2 %v4765_v27  ;;  %v6991_v29 = vand.u32 4294901760, %v4927_v31  ;;  %v1517_v4 = vand.u32 4294901760, %v4960_v53  ;;  %v4992_v24 = vand.u32 4294901760, %v344_v52  ;;  %1122 = vmatmul.f32.vlgmr.msrb.gmra.mxu0 %v4511_v34 }
  0x97   : > { %1327 = vmatpush.msra.mxu0 %v6988_v6  ;;  %1478 = vmatpush.msra.mxu3 %v1477_v38  ;;  %v1495_v6 = vand.u32 4294901760, %v1494_v0  ;;  %v1501_v0 = vand.u32 4294901760, %v1500_v39 }
  0x98   : > { %1209 = vmatpush.msrb.mxu1 %v1208_v5  ;;  %1429 = vmatpush.msra.mxu2 %v4782_v61  ;;  %v1506_v38 = vsub.f32 %v4927_v31, %v6991_v29  ;;  %v4990_v5 = vsub.f32 %v352_v54, %v4962_v13  ;;  %v5002_v29 = vsub.f32 %v348_v22, %v4977_v55  ;;  %v5004_v54 = vand.u32 4294901760, %v340_v30 }
  0x99   : > { %1331 = vmatpush.msra.mxu0 %v6990_v8  ;;  %1484 = vmatpush.msra.mxu3 %v1483_v33  ;;  %v6992_v8 = vand.u32 4294901760, %v4652_v63  ;;  %v1523_v33 = vand.u32 4294901760, %v4975_v20  ;;  %v336_v63 = vld [vmem:[%s6800_s1 + $0x38] sm:$0xff]  ;;  %v1518_v22 = vsub.f32 %v4960_v53, %v1517_v4 }
  0x9a   : > { %1215 = vmatpush.msrb.mxu1 %v1214_v7  ;;  %1431 = vmatpush.msra.mxu2 %v4815_v43  ;;  %v1512_v7 = vsub.f32 %v4945_v35, %v6867_v16  ;;  %v1529_v39 = vand.u32 4294901760, %v4990_v5  ;;  %v6994_v16 = vand.u32 4294901760, %v4686_v19  ;;  %v5034_v19 = vsub.f32 %v340_v30, %v5004_v54 }
  0x9b   : > { %1335 = vmatpush.msra.mxu0 %v6992_v8  ;;  %1490 = vmatpush.msra.mxu3 %v1489_v11  ;;  %v6993_v8 = vand.u32 4294901760, %v4670_v9  ;;  %v1507_v11 = vand.u32 4294901760, %v1506_v38  ;;  %v5023_v9 = vand.u32 4294901760, %v336_v63  ;;  %v1535_v38 = vand.u32 4294901760, %v5002_v29 }
  0x9c   : > { %1221 = vmatpush.msrb.mxu1 %v1220_v26  ;;  %1433 = vmatpush.msra.mxu2 %v4825_v32  ;;  %v5018_v26 = vsub.f32 %v344_v52, %v4992_v24  ;;  %v1524_v52 = vsub.f32 %v4975_v20, %v1523_v33  ;;  %v6996_v30 = vand.u32 4294901760, %v4708_v58 }
  0x9d   : > { %1339 = vmatpush.msra.mxu0 %v6993_v8  ;;  %1496 = vmatpush.msra.mxu3 %v1495_v6  ;;  %v1513_v6 = vand.u32 4294901760, %v1512_v7 }
  0x9e   : > { %1390 = vmatpush.msra.mxu1 %v4591_v49  ;;  %v332_v49 = vld [vmem:[%s6800_s1 + $0x18] sm:$0xff]  ;;  %1435 = vmatpush.msra.mxu2 %v4846_v10  ;;  %v1541_v7 = vand.u32 4294901760, %v5018_v26 }
  0x9f   : > { %1343 = vmatpush.msra.mxu0 %v6994_v16  ;;  %1502 = vmatpush.msra.mxu3 %v1501_v0  ;;  %v1519_v16 = vand.u32 4294901760, %v1518_v22  ;;  %v1530_v0 = vsub.f32 %v4990_v5, %v1529_v39  ;;  %v5044_v8 = vand.u32 4294901760, %v332_v49  ;;  %v1547_v22 = vand.u32 4294901760, %v5034_v19 }
  0xa0   : > { %1392 = vmatpush.msra.mxu1 %v4601_v56  ;;  %v6995_v56 = vand.u32 4294901760, %v4692_v42  ;;  %1437 = vmatpush.msra.mxu2 %v4862_v47  ;;  %v5050_v42 = vsub.f32 %v336_v63, %v5023_v9  ;;  %v1542_v58 = vsub.f32 %v5018_v26, %v1541_v7 }
  0xa1   : > { %1508 = vmatpush.msra.mxu3 %v1507_v11  ;;  %v1536_v11 = vsub.f32 %v5002_v29, %v1535_v38  ;;  %v5065_v63 = vsub.f32 %v332_v49, %v5044_v8  ;;  %v7000_v49 = vand.u32 4294901760, %v4789_v60  ;;  %v7002_v60 = vand.u32 4294901760, %v4832_v18  ;;  %1277 = vmatmul.f32.vlgmr.msrb.gmra.mxu2 %v4463_v40  ;;  %v7005_v18 = vld [vmem:[#allocation7_spill] sm:$0xff] }
  0xa2   : > { %1347 = vmatpush.msra.mxu0 %v6995_v56  ;;  %1394 = vmatpush.msra.mxu1 %v4614_v14  ;;  %v1525_v14 = vand.u32 4294901760, %v1524_v52  ;;  %v6997_v56 = vand.u32 4294901760, %v4732_v46  ;;  %v1553_v46 = vand.u32 4294901760, %v5050_v42  ;;  %v1548_v52 = vsub.f32 %v5034_v19, %v1547_v22 }
  0xa3   : > { %1439 = vmatpush.msra.mxu2 %v4892_v15  ;;  %1514 = vmatpush.msra.mxu3 %v1513_v6  ;;  %v6998_v6 = vand.u32 4294901760, %v4750_v50  ;;  %v1543_v50 = vand.u32 4294901760, %v1542_v58 }
  0xa4   : > { %1351 = vmatpush.msra.mxu0 %v6996_v30  ;;  %1396 = vmatpush.msra.mxu1 %v4627_v23  ;;  %v1531_v23 = vand.u32 4294901760, %v1530_v0  ;;  %v1554_v0 = vsub.f32 %v5050_v42, %v1553_v46 }
  0xa5   : > { %1441 = vmatpush.msra.mxu2 %v4911_v62  ;;  %1520 = vmatpush.msra.mxu3 %v1519_v16  ;;  %v6999_v16 = vand.u32 4294901760, %v4769_v2  ;;  %v1549_v2 = vand.u32 4294901760, %v1548_v52 }
  0xa6   : > { %1355 = vmatpush.msra.mxu0 %v6997_v56  ;;  %1398 = vmatpush.msra.mxu1 %v4640_v44  ;;  %v1537_v44 = vand.u32 4294901760, %v1536_v11  ;;  %v1555_v30 = vand.u32 4294901760, %v1554_v0  ;;  %v7011_v11 = vld [vmem:[#allocation9_spill] sm:$0xff] }
  0xa7   : > { %1443 = vmatpush.msra.mxu2 %v4929_v28  ;;  %1526 = vmatpush.msra.mxu3 %v1525_v14  ;;  %v7008_v14 = vld [vmem:[#allocation4_spill] sm:$0xff]  ;;  %v7014_v58 = vand.u32 4294901760, %v7011_v11 }
  0xa8   : > { %1359 = vmatpush.msra.mxu0 %v6998_v6  ;;  %1400 = vmatpush.msra.mxu1 %v4654_v12  ;;  %v1559_v12 = vand.u32 4294901760, %v5065_v63  ;;  %v7012_v56 = vand.u32 4294901760, %v7008_v14  ;;  %v7015_v6 = vld [vmem:[#allocation10_spill] sm:$0xff] }
  0xa9   : > { %1445 = vmatpush.msra.mxu2 %v4947_v21  ;;  %1532 = vmatpush.msra.mxu3 %v1531_v23  ;;  %v7013_v23 = vld [vmem:[#allocation3_spill] sm:$0xff]  ;;  %v7017_v52 = vand.u32 4294901760, %v7015_v6 }
  0xaa   : > { %1363 = vmatpush.msra.mxu0 %v6999_v16  ;;  %1402 = vmatpush.msra.mxu1 %v4662_v37  ;;  %v7001_v37 = vand.u32 4294901760, %v4812_v25  ;;  %v7018_v16 = vand.u32 4294901760, %v4882_v57 }
  0xab   : > { %1447 = vmatpush.msra.mxu2 %v4962_v13  ;;  %1538 = vmatpush.msra.mxu3 %v1537_v44  ;;  %v7016_v44 = vld [vmem:[#allocation8_spill] sm:$0xff] }
  0xac   : > { %1367 = vmatpush.msra.mxu0 %v7000_v49  ;;  %1404 = vmatpush.msra.mxu1 %v4675_v41  ;;  %v1560_v41 = vsub.f32 %v5065_v63, %v1559_v12 }
  0xad   : > { %1449 = vmatpush.msra.mxu2 %v4977_v55  ;;  %1544 = vmatpush.msra.mxu3 %v1543_v50  ;;  %v7019_v50 = vand.u32 4294901760, %v4901_v59 }
  0xae   : > { %1371 = vmatpush.msra.mxu0 %v7001_v37  ;;  %1406 = vmatpush.msra.mxu1 %v4702_v17  ;;  %v7003_v17 = vand.u32 4294901760, %v4843_v45  ;;  %v1561_v25 = vand.u32 4294901760, %v1560_v41  ;;  %v7006_v45 = vld [vmem:[#allocation6_spill] sm:$0xff] }
  0xaf   : > { %1451 = vmatpush.msra.mxu2 %v4992_v24  ;;  %1550 = vmatpush.msra.mxu3 %v1549_v2  ;;  %v1792_v2 = vld [vmem:[%s6802_s3 + $0x48] sm:$0xff] }
  0xb0   : > { %1375 = vmatpush.msra.mxu0 %v7002_v60  ;;  %1408 = vmatpush.msra.mxu1 %v4718_v1  ;;  %v7004_v1 = vand.u32 4294901760, %v4872_v3  ;;  %v7009_v3 = vand.u32 4294901760, %v7006_v45 }
  0xb1   : > { %1453 = vmatpush.msra.mxu2 %v5004_v54  ;;  %1556 = vmatpush.msra.mxu3 %v1555_v30 }
  0xb2   : > { %1379 = vmatpush.msra.mxu0 %v7003_v17  ;;  %1410 = vmatpush.msra.mxu1 %v4734_v51  ;;  %v7007_v51 = vld [vmem:[#allocation2_spill] sm:$0xff]  ;;  %v1790_v17 = vld [vmem:[%s6802_s3 + $0x38] sm:$0xff] }
  0xb3   : > { %1316 = vmatmul.f32.vlgmr.msrb.gmra.mxu3 %v4485_v48  ;;  %1455 = vmatpush.msra.mxu2 %v5023_v9 }
  0xb4   : > { %1383 = vmatpush.msra.mxu0 %v7004_v1  ;;  %1412 = vmatpush.msra.mxu1 %v4752_v36  ;;  %v7010_v36 = vld [vmem:[#allocation5_spill] sm:$0xff] }
  0xb5   : > { %1562 = vmatpush.msra.mxu3 %v1561_v25  ;;  %1223 = vmatmul.f32.vlgmr.msrb.gmra.mxu1 %v7005_v18 }
  0xb6   : > { %1570 = vmatpush.msrb.mxu0 %v7006_v45  ;;  %1414 = vmatpush.msra.mxu1 %v7007_v51  ;;  %v1789_v51 = vld [vmem:[%s6802_s3 + $0x30] sm:$0xff] }
  0xb7   : > { %1731 = vmatpush.msrb.mxu3 %v4765_v27  ;;  %1457 = vmatpush.msra.mxu2 %v5044_v8 }
  0xb8   : > { %1573 = vmatpush.msrb.mxu0 %v7008_v14  ;;  %1416 = vmatpush.msra.mxu1 %v7010_v36 }
  0xb9   : > { %1664 = vmatpush.msrb.mxu2 %v7009_v3  ;;  %1733 = vmatpush.msrb.mxu3 %v4782_v61 }
  0xba   : > { %1576 = vmatpush.msrb.mxu0 %v7011_v11  ;;  %1418 = vmatpush.msra.mxu1 %v7013_v23  ;;  %v5296_v11 = vand.u32 4294901760, %v1790_v17 }
  0xbb   : > { %1668 = vmatpush.msrb.mxu2 %v7012_v56  ;;  %1735 = vmatpush.msrb.mxu3 %v4815_v43 }
  0xbc   : > { %1385 = vmatmul.f32.vlgmr.msra.gmra.mxu0 %v7005_v18  ;;  %1420 = vmatpush.msra.mxu1 %v7016_v44  ;;  %v1787_v44 = vld [vmem:[%s6802_s3 + $0x20] sm:$0xff] }
  0xbd   : > { %1672 = vmatpush.msrb.mxu2 %v7014_v58  ;;  %1579 = vmatpush.msrb.mxu0 %v7015_v6 }
  0xbe   : > { %1737 = vmatpush.msrb.mxu3 %v4825_v32  ;;  %1422 = vmatmul.f32.vlgmr.msra.gmra.mxu1 %v7005_v18 }
  0xbf   : > { %1676 = vmatpush.msrb.mxu2 %v7017_v52  ;;  %1582 = vmatpush.msrb.mxu0 %v4882_v57 }
  0xc0   : > { %1623 = vmatpush.msrb.mxu1 %v4765_v27  ;;  %1739 = vmatpush.msrb.mxu3 %v4846_v10  ;;  %v7020_v27 = vand.u32 4294901760, %v4927_v31 }
  0xc1   : > { %1585 = vmatpush.msrb.mxu0 %v4901_v59  ;;  %1680 = vmatpush.msrb.mxu2 %v7018_v16  ;;  %v1797_v59 = vld [vmem:[%s6802_s3 + $0x70] sm:$0xff] }
  0xc2   : > { %1625 = vmatpush.msrb.mxu1 %v4782_v61  ;;  %1741 = vmatpush.msrb.mxu3 %v4862_v47  ;;  %v5152_v61 = vld [vmem:[%s6801_s2] sm:$0xf] }
  0xc3   : > { %1588 = vmatpush.msrb.mxu0 %v4927_v31  ;;  %1684 = vmatpush.msrb.mxu2 %v7019_v50  ;;  %7021 = vst [vmem:[#allocation7_spill] sm:$0xff] %v5152_v61  ;;  %v395_v57 = vperm.slane %v5152_v61, 0 }
  0xc4   : > { %1627 = vmatpush.msrb.mxu1 %v4815_v43  ;;  %1743 = vmatpush.msrb.mxu3 %v4892_v15  ;;  %v7022_v43 = vand.u32 4294901760, %v4945_v35 }
  0xc5   : > { %1591 = vmatpush.msrb.mxu0 %v4945_v35  ;;  %1688 = vmatpush.msrb.mxu2 %v7020_v27  ;;  %v5327_v27 = vsub.f32 %v1790_v17, %v5296_v11 }
  0xc6   : > { %1629 = vmatpush.msrb.mxu1 %v4825_v32  ;;  %1745 = vmatpush.msrb.mxu3 %v4911_v62 }
  0xc7   : > { %1594 = vmatpush.msrb.mxu0 %v4960_v53  ;;  %1692 = vmatpush.msrb.mxu2 %v7022_v43 }
  0xc8   : > { %1631 = vmatpush.msrb.mxu1 %v4846_v10  ;;  %1747 = vmatpush.msrb.mxu3 %v4929_v28  ;;  %v1798_v10 = vld [vmem:[%s6802_s3 + $0x78] sm:$0xff] }
  0xc9   : > { %1597 = vmatpush.msrb.mxu0 %v4975_v20  ;;  %1696 = vmatpush.msrb.mxu2 %v1517_v4  ;;  %v5196_v20 = vand.u32 4294901760, %v1797_v59 }
  0xca   : > { %1633 = vmatpush.msrb.mxu1 %v4862_v47  ;;  %1749 = vmatpush.msrb.mxu3 %v4947_v21  ;;  %v5180_v47 = vand.u32 4294901760, %v1798_v10 }
  0xcb   : > { %1600 = vmatpush.msrb.mxu0 %v4990_v5  ;;  %1700 = vmatpush.msrb.mxu2 %v1523_v33  ;;  %v441_v32 = vpop.f32.mrf.mxu0  ;;  %v1795_v5 = vld [vmem:[%s6802_s3 + $0x60] sm:$0xff] }
  0xcc   : > { %1635 = vmatpush.msrb.mxu1 %v4892_v15  ;;  %1751 = vmatpush.msrb.mxu3 %v4962_v13  ;;  %v442_v53 = vadd.f32 %v441_v32, %v395_v57  ;;  %v5338_v32 = vand.u32 4294901760, %v1787_v44 }
  0xcd   : > { %1603 = vmatpush.msrb.mxu0 %v5002_v29  ;;  %1704 = vmatpush.msrb.mxu2 %v1529_v39 }
  0xce   : > { %1637 = vmatpush.msrb.mxu1 %v4911_v62  ;;  %1753 = vmatpush.msrb.mxu3 %v4977_v55  ;;  %v542_v31 = vpop.f32.mrf.mxu1  ;;  %v1796_v62 = vld [vmem:[%s6802_s3 + $0x68] sm:$0xff]  ;;  %7023 = vst [vmem:[#allocation6_spill] sm:$0xff] %v5338_v32 }
  0xcf   : > { %1606 = vmatpush.msrb.mxu0 %v5018_v26  ;;  %1708 = vmatpush.msrb.mxu2 %v1535_v38  ;;  %v543_v15 = vadd.f32 %v542_v31, %v442_v53  ;;  %v596_v35 = vpop.f32.mrf.mxu2  ;;  %v5208_v29 = vand.u32 4294901760, %v1796_v62  ;;  %v5221_v26 = vand.u32 4294901760, %v1795_v5  ;;  %v1786_v53 = vld [vmem:[%s6802_s3 + $0x18] sm:$0xff] }
  0xd0   : > { %1639 = vmatpush.msrb.mxu1 %v4929_v28  ;;  %1755 = vmatpush.msrb.mxu3 %v4992_v24  ;;  %v5201_v28 = vsub.f32 %v1798_v10, %v5180_v47 }
  0xd1   : > { %1609 = vmatpush.msrb.mxu0 %v5034_v19  ;;  %1712 = vmatpush.msrb.mxu2 %v1541_v7  ;;  %v597_v4 = vadd.f32 %v596_v35, %v543_v15  ;;  %v1793_v7 = vld [vmem:[%s6802_s3 + $0x50] sm:$0xff] }
  0xd2   : > { %1641 = vmatpush.msrb.mxu1 %v4947_v21  ;;  %1757 = vmatpush.msrb.mxu3 %v5004_v54  ;;  %v635_v33 = vpop.f32.mrf.mxu3  ;;  %v1794_v21 = vld [vmem:[%s6802_s3 + $0x58] sm:$0xff] }
  0xd3   : > { %1463 = vmatmul.f32.vlgmr.msra.gmra.mxu2 %v4511_v34  ;;  %1612 = vmatpush.msrb.mxu0 %v5050_v42  ;;  %v636_v39 = vadd.f32 %v635_v33, %v597_v4  ;;  %v5219_v34 = vsub.f32 %v1797_v59, %v5196_v20  ;;  %v5235_v49 = vand.u32 4294901760, %v1794_v21  ;;  %v5246_v42 = vsub.f32 %v1795_v5, %v5221_v26  ;;  %v1813_v5 = vld [vmem:[%s6802_s3 + $0xf0] sm:$0xff] }
  0xd4   : > { %1643 = vmatpush.msrb.mxu1 %v4962_v13  ;;  %1716 = vmatpush.msrb.mxu2 %v1547_v22  ;;  %v6881_v13 = vand.u32 4294901760, %v5201_v28  ;;  %v5233_v22 = vsub.f32 %v1796_v62, %v5208_v29  ;;  %v1785_v62 = vld [vmem:[%s6802_s3 + $0x10] sm:$0xff]  ;;  %v5386_v17 = vand.u32 4294901760, %v1813_v5 }
  0xd5   : > { %1759 = vmatpush.msrb.mxu3 %v5023_v9  ;;  %1615 = vmatpush.msrb.mxu0 %v5065_v63  ;;  %v704_v38 = vpop.f32.mrf.mxu0  ;;  %v6879_v37 = vand.u32 4294901760, %v5219_v34  ;;  %v5262_v63 = vsub.f32 %v1794_v21, %v5235_v49  ;;  %v6876_v45 = vand.u32 4294901760, %v5246_v42  ;;  %v5365_v21 = vand.u32 4294901760, %v1786_v53 }
  0xd6   : > { %1564 = vmatmul.f32.vlgmr.msra.gmra.mxu3 %v7005_v18  ;;  %1645 = vmatpush.msrb.mxu1 %v4977_v55  ;;  %v705_v19 = vadd.f32 %v704_v38, %v636_v39  ;;  %v1895_v41 = vsub.f32 %v5201_v28, %v6881_v13  ;;  %v6878_v30 = vand.u32 4294901760, %v5233_v22  ;;  %v6869_v38 = vand.u32 4294901760, %v5327_v27 }
  0xd7   : > { %1720 = vmatpush.msrb.mxu2 %v1553_v46  ;;  %1761 = vmatpush.msrb.mxu3 %v5044_v8  ;;  %v741_v0 = vpop.f32.mrf.mxu1  ;;  %v5248_v46 = vand.u32 4294901760, %v1793_v7  ;;  %v6874_v56 = vand.u32 4294901760, %v5262_v63  ;;  %v1913_v23 = vsub.f32 %v5246_v42, %v6876_v45  ;;  %7024 = vst [vmem:[#allocation2_spill] sm:$0xff] %v5365_v21 }
  0xd8   : > { %1852 = vmatpush.msra.mxu0 %v5180_v47  ;;  %v742_v55 = vadd.f32 %v741_v0, %v705_v19  ;;  %1647 = vmatpush.msrb.mxu1 %v4992_v24  ;;  %v1791_v24 = vld [vmem:[%s6802_s3 + $0x40] sm:$0xff]  ;;  %v1896_v14 = vand.u32 4294901760, %v1895_v41  ;;  %v1907_v3 = vsub.f32 %v5233_v22, %v6878_v30 }
  0xd9   : > { %2048 = vmatpush.msra.mxu3 %v5180_v47  ;;  %1724 = vmatpush.msrb.mxu2 %v1559_v12  ;;  %v5264_v12 = vand.u32 4294901760, %v1792_v2  ;;  %v5278_v25 = vsub.f32 %v1793_v7, %v5248_v46  ;;  %v5280_v1 = vand.u32 4294901760, %v1791_v24  ;;  %v1919_v50 = vsub.f32 %v5262_v63, %v6874_v56 }
  0xda   : > { %1854 = vmatpush.msra.mxu0 %v5196_v20  ;;  %v1767_v60 = vmul.f32 0.5, %v742_v55  ;;  %1649 = vmatpush.msrb.mxu1 %v5004_v54  ;;  %v1901_v54 = vsub.f32 %v5219_v34, %v6879_v37  ;;  %v1908_v16 = vand.u32 4294901760, %v1907_v3  ;;  %v1914_v59 = vand.u32 4294901760, %v1913_v23  ;;  %v1812_v55 = vld [vmem:[%s6802_s3 + $0xe8] sm:$0xff]  ;;  %v1811_v23 = vld [vmem:[%s6802_s3 + $0xe0] sm:$0xff] }
  0xdb   : > { %1995 = vmatpush.msra.mxu2 %v5201_v28  ;;  %2050 = vmatpush.msra.mxu3 %v5196_v20  ;;  %v5294_v36 = vsub.f32 %v1792_v2, %v5264_v12  ;;  %v5312_v58 = vsub.f32 %v1791_v24, %v5280_v1  ;;  %v6873_v6 = vand.u32 4294901760, %v5278_v25  ;;  %v1920_v33 = vand.u32 4294901760, %v1919_v50  ;;  %v1784_v24 = vld [vmem:[%s6802_s3 + $0x8] sm:$0xff]  ;;  %v1783_v50 = vld [vmem:[%s6802_s3] sm:$0xff] }
  0xdc   : > { %1726 = vmatmul.f32.vlgmr.msrb.gmra.mxu2 %v7005_v18  ;;  %1856 = vmatpush.msra.mxu0 %v5208_v29  ;;  %3916 = vtanh.f32 %v1767_v60  ;;  %v5371_v7 = vsub.f32 %v1787_v44, %v5338_v32  ;;  %v5381_v60 = vand.u32 4294901760, %v1785_v62  ;;  %v1943_v3 = vsub.f32 %v5327_v27, %v6869_v38 }
  0xdd   : > { %1998 = vmatpush.msra.mxu2 %v5219_v34  ;;  %2052 = vmatpush.msra.mxu3 %v5208_v29  ;;  %v6872_v43 = vand.u32 4294901760, %v5294_v36  ;;  %v1925_v31 = vsub.f32 %v5278_v25, %v6873_v6  ;;  %v6871_v15 = vand.u32 4294901760, %v5312_v58 }
  0xde   : > { %1651 = vmatpush.msrb.mxu1 %v5023_v9  ;;  %1618 = vmatmul.f32.vlgmr.msrb.gmra.mxu0 %v4463_v40  ;;  %v1788_v40 = vld [vmem:[%s6802_s3 + $0x28] sm:$0xff]  ;;  %v5304_v9 = vand.u32 4294901760, %v1789_v51  ;;  %7025 = vst [vmem:[#allocation4_spill] sm:$0xff] %v5381_v60 }
  0xdf   : > { %1763 = vmatmul.f32.vlgmr.msrb.gmra.mxu3 %v7005_v18  ;;  %1858 = vmatpush.msra.mxu0 %v5221_v26  ;;  %v1902_v18 = vand.u32 4294901760, %v1901_v54  ;;  %v1931_v39 = vsub.f32 %v5294_v36, %v6872_v43  ;;  %v1926_v2 = vand.u32 4294901760, %v1925_v31  ;;  %v1937_v41 = vsub.f32 %v5312_v58, %v6871_v15 }
  0xe0   : > { %2001 = vmatpush.msra.mxu2 %v5233_v22  ;;  %2054 = vmatpush.msra.mxu3 %v5221_v26  ;;  %v5336_v10 = vsub.f32 %v1789_v51, %v5304_v9  ;;  %v396_v31 = vperm.slane %v5152_v61, 1 }
  0xe1   : > { %1653 = vmatpush.msrb.mxu1 %v5044_v8  ;;  %1860 = vmatpush.msra.mxu0 %v5235_v49  ;;  %v5320_v8 = vand.u32 4294901760, %v1788_v40 }
  0xe2   : > { %v3917_v52 = vpop.eup %3916  ;;  %1657 = vmatmul.f32.vlgmr.msrb.gmra.mxu1 %v4485_v48  ;;  %2004 = vmatpush.msra.mxu2 %v5246_v42  ;;  %v1814_v48 = vld [vmem:[%s6802_s3 + $0xf8] sm:$0xff]  ;;  %v6868_v0 = vand.u32 4294901760, %v5336_v10 }
  0xe3   : > { %1897 = vmatpush.msra.mxu1 %v1896_v14  ;;  %2056 = vmatpush.msra.mxu3 %v5235_v49  ;;  %v1775_v57 = vadd.f32 1.0, %v3917_v52  ;;  %v5351_v35 = vsub.f32 %v1788_v40, %v5320_v8  ;;  %v5356_v4 = vand.u32 4294901760, %v1814_v48  ;;  %v1932_v14 = vand.u32 4294901760, %v1931_v39 }
  0xe4   : > { %1862 = vmatpush.msra.mxu0 %v5248_v46  ;;  %2007 = vmatpush.msra.mxu2 %v5262_v63  ;;  %v5399_v40 = vsub.f32 %v1786_v53, %v5365_v21  ;;  %v1949_v52 = vsub.f32 %v5336_v10, %v6868_v0  ;;  %v5421_v53 = vsub.f32 %v1785_v62, %v5381_v60  ;;  %v1810_v62 = vld [vmem:[%s6802_s3 + $0xd8] sm:$0xff] }
  0xe5   : > { %1903 = vmatpush.msra.mxu1 %v1902_v18  ;;  %2058 = vmatpush.msra.mxu3 %v5248_v46  ;;  %v1779_v19 = vmul.f32 0.5, %v1775_v57  ;;  %v6870_v54 = vand.u32 4294901760, %v5351_v35  ;;  %v5392_v51 = vsub.f32 %v1814_v48, %v5356_v4  ;;  %v5401_v18 = vand.u32 4294901760, %v1812_v55 }
  0xe6   : > { %1864 = vmatpush.msra.mxu0 %v5264_v12  ;;  %2010 = vmatpush.msra.mxu2 %v5278_v25  ;;  %v6875_v48 = vand.u32 4294901760, %v5371_v7  ;;  %v1938_v57 = vand.u32 4294901760, %v1937_v41  ;;  %v5439_v41 = vand.u32 4294901760, %v1783_v50  ;;  %v6880_v0 = vand.u32 4294901760, %v5399_v40 }
  0xe7   : > { %1909 = vmatpush.msra.mxu1 %v1908_v16  ;;  %2060 = vmatpush.msra.mxu3 %v5264_v12  ;;  %7026 = vst [vmem:[#allocation5_spill] sm:$0xff] %v5392_v51  ;;  %v5406_v44 = vand.u32 4294901760, %v1779_v19  ;;  %v5413_v16 = vand.u32 4294901760, %v1784_v24  ;;  %v6877_v39 = vand.u32 4294901760, %v5392_v51  ;;  %v5443_v38 = vsub.f32 %v1812_v55, %v5401_v18  ;;  %v1809_v55 = vld [vmem:[%s6802_s3 + $0xd0] sm:$0xff] }
  0xe8   : > { %1866 = vmatpush.msra.mxu0 %v5280_v1  ;;  %2013 = vmatpush.msra.mxu2 %v5294_v36  ;;  %7029 = vst [vmem:[#allocation10_spill] sm:$0xff] %v5439_v41  ;;  %v1950_v15 = vand.u32 4294901760, %v1949_v52  ;;  %v6885_v52 = vand.u32 4294901760, %v5421_v53  ;;  %v5462_v56 = vand.u32 4294901760, %v1810_v62  ;;  %v5483_v30 = vand.u32 4294901760, %v1809_v55 }
  0xe9   : > { %1915 = vmatpush.msra.mxu1 %v1914_v59  ;;  %2062 = vmatpush.msra.mxu3 %v5280_v1  ;;  %7027 = vst [vmem:[#allocation9_spill] sm:$0xff] %v5413_v16  ;;  %v5424_v59 = vsub.f32 %v1813_v5, %v5386_v17  ;;  %v1944_v5 = vand.u32 4294901760, %v1943_v3  ;;  %v5454_v3 = vsub.f32 %v1784_v24, %v5413_v16 }
  0xea   : > { %1868 = vmatpush.msra.mxu0 %v5296_v11  ;;  %2016 = vmatpush.msra.mxu2 %v5312_v58  ;;  %7030 = vst [vmem:[#allocation8_spill] sm:$0xff] %v5443_v38  ;;  %v1973_v45 = vsub.f32 %v5421_v53, %v6885_v52  ;;  %v7031_v52 = vand.u32 4294901760, %v5443_v38 }
  0xeb   : > { %1921 = vmatpush.msra.mxu1 %v1920_v33  ;;  %2064 = vmatpush.msra.mxu3 %v5296_v11  ;;  %7028 = vst [vmem:[#allocation3_spill] sm:$0xff] %v5424_v59  ;;  %v1955_v33 = vsub.f32 %v5351_v35, %v6870_v54  ;;  %v5446_v54 = vsub.f32 %v1779_v19, %v5406_v44  ;;  %v6884_v19 = vand.u32 4294901760, %v5424_v59 }
  0xec   : > { %1870 = vmatpush.msra.mxu0 %v5304_v9  ;;  %2019 = vmatpush.msra.mxu2 %v5327_v27 }
  0xed   : > { %1927 = vmatpush.msra.mxu1 %v1926_v2  ;;  %2066 = vmatpush.msra.mxu3 %v5304_v9  ;;  %v5433_v2 = vand.u32 4294901760, %v1811_v23  ;;  %v1956_v24 = vand.u32 4294901760, %v1955_v33  ;;  %v5480_v33 = vsub.f32 %v1783_v50, %v5439_v41  ;;  %v2242_v13 = vsub.f32 %v5424_v59, %v6884_v19 }
  0xee   : > { %1872 = vmatpush.msra.mxu0 %v5320_v8  ;;  %2022 = vmatpush.msra.mxu2 %v5336_v10  ;;  %v5518_v59 = vsub.f32 %v1809_v55, %v5483_v30 }
  0xef   : > { %1933 = vmatpush.msra.mxu1 %v1932_v14  ;;  %2068 = vmatpush.msra.mxu3 %v5320_v8  ;;  %v1961_v14 = vsub.f32 %v5371_v7, %v6875_v48  ;;  %v2236_v48 = vsub.f32 %v5392_v51, %v6877_v39  ;;  %v2243_v55 = vand.u32 4294901760, %v2242_v13  ;;  %v1804_v13 = vld [vmem:[%s6802_s3 + $0xa8] sm:$0xff] }
  0xf0   : > { %1874 = vmatpush.msra.mxu0 %v5338_v32  ;;  %2025 = vmatpush.msra.mxu2 %v5351_v35  ;;  %v782_v43 = vpop.f32.mrf.mxu2 }
  0xf1   : > { %1939 = vmatpush.msra.mxu1 %v1938_v57  ;;  %2070 = vmatpush.msra.mxu3 %v5338_v32  ;;  %v783_v6 = vadd.f32 %v782_v43, %v396_v31  ;;  %v5470_v57 = vsub.f32 %v1811_v23, %v5433_v2  ;;  %v1808_v43 = vld [vmem:[%s6802_s3 + $0xc8] sm:$0xff]  ;;  %v1967_v31 = vsub.f32 %v5399_v40, %v6880_v0  ;;  %v1807_v23 = vld [vmem:[%s6802_s3 + $0xc0] sm:$0xff] }
  0xf2   : > { %1876 = vmatpush.msra.mxu0 %v5365_v21  ;;  %2028 = vmatpush.msra.mxu2 %v5371_v7  ;;  %v5510_v50 = vand.u32 4294901760, %v1807_v23  ;;  %v2248_v0 = vsub.f32 %v5443_v38, %v7031_v52  ;;  %v1805_v52 = vld [vmem:[%s6802_s3 + $0xb0] sm:$0xff] }
  0xf3   : > { %1945 = vmatpush.msra.mxu1 %v1944_v5  ;;  %2072 = vmatpush.msra.mxu3 %v5365_v21  ;;  %v883_v39 = vpop.f32.mrf.mxu3  ;;  %v1962_v5 = vand.u32 4294901760, %v1961_v14  ;;  %v5500_v21 = vsub.f32 %v1810_v62, %v5462_v56  ;;  %v1968_v62 = vand.u32 4294901760, %v1967_v31  ;;  %v7035_v51 = vand.u32 4294901760, %v5470_v57 }
  0xf4   : > { %1878 = vmatpush.msra.mxu0 %v5381_v60  ;;  %2031 = vmatpush.msra.mxu2 %v5399_v40  ;;  %v884_v37 = vadd.f32 %v883_v39, %v783_v6  ;;  %v5502_v6 = vand.u32 4294901760, %v1808_v43  ;;  %v2237_v39 = vand.u32 4294901760, %v2236_v48  ;;  %v7033_v48 = vand.u32 4294901760, %v5446_v54 }
  0xf5   : > { %1951 = vmatpush.msra.mxu1 %v1950_v15  ;;  %2074 = vmatpush.msra.mxu3 %v5381_v60  ;;  %v937_v61 = vpop.f32.mrf.mxu0  ;;  %v1806_v15 = vld [vmem:[%s6802_s3 + $0xb8] sm:$0xff]  ;;  %v1974_v60 = vand.u32 4294901760, %v1973_v45  ;;  %v2254_v32 = vsub.f32 %v5470_v57, %v7035_v51  ;;  %v2249_v45 = vand.u32 4294901760, %v2248_v0  ;;  %v7037_v51 = vand.u32 4294901760, %v5219_v34  ;;  %v1803_v0 = vld [vmem:[%s6802_s3 + $0xa0] sm:$0xff] }
  0xf6   : > { %1880 = vmatpush.msra.mxu0 %v5413_v16  ;;  %2034 = vmatpush.msra.mxu2 %v5421_v53  ;;  %v938_v19 = vadd.f32 %v937_v61, %v884_v37  ;;  %v7032_v61 = vand.u32 4294901760, %v5454_v3  ;;  %v5528_v31 = vand.u32 4294901760, %v1806_v15 }
  0xf7   : > { %1957 = vmatpush.msra.mxu1 %v1956_v24  ;;  %2076 = vmatpush.msra.mxu3 %v5413_v16  ;;  %v1886_v24 = vsub.f32 %v5446_v54, %v7033_v48  ;;  %v7034_v48 = vand.u32 4294901760, %v5201_v28  ;;  %v7036_v28 = vand.u32 4294901760, %v5480_v33 }
  0xf8   : > { %1882 = vmatpush.msra.mxu0 %v5439_v41  ;;  %2037 = vmatpush.msra.mxu2 %v5454_v3  ;;  %v1979_v37 = vsub.f32 %v5454_v3, %v7032_v61  ;;  %v5536_v61 = vsub.f32 %v1808_v43, %v5502_v6  ;;  %v5560_v14 = vsub.f32 %v1806_v15, %v5528_v31  ;;  %v2255_v15 = vand.u32 4294901760, %v2254_v32 }
  0xf9   : > { %1963 = vmatpush.msra.mxu1 %v1962_v5  ;;  %2078 = vmatpush.msra.mxu3 %v5439_v41  ;;  %v976_v16 = vpop.f32.mrf.mxu1  ;;  %v1045_v38 = vpop.f32.mrf.mxu2  ;;  %v5544_v41 = vsub.f32 %v1807_v23, %v5510_v50  ;;  %v1985_v43 = vsub.f32 %v5480_v33, %v7036_v28  ;;  %v7038_v28 = vand.u32 4294901760, %v5500_v21 }
  0xfa   : > { %2089 = vmatpush.msrb.mxu0 %v7034_v48  ;;  %v977_v5 = vadd.f32 %v976_v16, %v938_v19  ;;  %2040 = vmatpush.msra.mxu2 %v5480_v33  ;;  %v5554_v48 = vand.u32 4294901760, %v1805_v52  ;;  %v1980_v16 = vand.u32 4294901760, %v1979_v37  ;;  %v1887_v19 = vand.u32 4294901760, %v1886_v24 }
  0xfb   : > { %2238 = vmatpush.msrb.mxu3 %v2237_v39  ;;  %1969 = vmatpush.msra.mxu1 %v1968_v62  ;;  %v2260_v34 = vsub.f32 %v5500_v21, %v7038_v28  ;;  %v5569_v39 = vand.u32 4294901760, %v1804_v13  ;;  %v2277_v24 = vand.u32 4294901760, %v5544_v41 }
  0xfc   : > { %2093 = vmatpush.msrb.mxu0 %v7037_v51  ;;  %2193 = vmatpush.msrb.mxu2 %v5356_v4  ;;  %v1046_v23 = vadd.f32 %v1045_v38, %v977_v5  ;;  %v1082_v62 = vpop.f32.mrf.mxu3  ;;  %v7039_v38 = vand.u32 4294901760, %v5233_v22  ;;  %v7040_v5 = vand.u32 4294901760, %v5518_v59  ;;  %v5583_v51 = vsub.f32 %v1805_v52, %v5554_v48 }
  0xfd   : > { %2244 = vmatpush.msrb.mxu3 %v2243_v55  ;;  %1975 = vmatpush.msra.mxu1 %v1974_v60  ;;  %v1802_v60 = vld [vmem:[%s6802_s3 + $0x98] sm:$0xff]  ;;  %v1986_v55 = vand.u32 4294901760, %v1985_v43  ;;  %v5585_v22 = vand.u32 4294901760, %v1803_v0  ;;  %v7042_v43 = vand.u32 4294901760, %v5246_v42  ;;  %v7043_v52 = vand.u32 4294901760, %v5536_v61  ;;  %v1800_v42 = vld [vmem:[%s6802_s3 + $0x88] sm:$0xff] }
  0xfe   : > { %2043 = vmatmul.f32.vlgmr.msra.gmra.mxu2 %v5446_v54  ;;  %2097 = vmatpush.msrb.mxu0 %v7039_v38  ;;  %v1083_v37 = vadd.f32 %v1082_v62, %v1046_v23  ;;  %v2266_v28 = vsub.f32 %v5518_v59, %v7040_v5  ;;  %v6896_v23 = vand.u32 4294901760, %v5560_v14  ;;  %v1801_v62 = vld [vmem:[%s6802_s3 + $0x90] sm:$0xff]  ;;  %v2261_v38 = vand.u32 4294901760, %v2260_v34 }
  0xff   : > { %2195 = vmatpush.msrb.mxu2 %v5386_v17  ;;  %2250 = vmatpush.msrb.mxu3 %v2249_v45  ;;  %v7041_v45 = vand.u32 4294901760, %v5446_v54  ;;  %v2272_v5 = vsub.f32 %v5536_v61, %v7043_v52  ;;  %v2278_v54 = vsub.f32 %v5544_v41, %v2277_v24  ;;  %v7044_v34 = vand.u32 4294901760, %v5262_v63  ;;  %v1799_v63 = vld [vmem:[%s6802_s3 + $0x80] sm:$0xff] }
 0x100   : > { %1981 = vmatpush.msra.mxu1 %v1980_v16  ;;  %1888 = vmatmul.f32.vlgmr.msra.gmra.mxu0 %v1887_v19  ;;  %v1768_v32 = vmul.f32 0.5, %v1083_v37  ;;  %v5599_v16 = vsub.f32 %v1804_v13, %v5569_v39  ;;  %v5601_v19 = vand.u32 4294901760, %v1802_v60  ;;  %v2267_v13 = vand.u32 4294901760, %v2266_v28 }
 0x101   : > { %2082 = vmatmul.f32.vlgmr.msra.gmra.mxu3 %v7041_v45  ;;  %2101 = vmatpush.msrb.mxu0 %v7042_v43  ;;  %v6897_v37 = vand.u32 4294901760, %v5583_v51  ;;  %v5614_v45 = vsub.f32 %v1803_v0, %v5585_v22  ;;  %v5631_v43 = vand.u32 4294901760, %v1800_v42  ;;  %v7045_v52 = vand.u32 4294901760, %v5278_v25 }
 0x102   : > { %2197 = vmatpush.msrb.mxu2 %v5401_v18  ;;  %2256 = vmatpush.msrb.mxu3 %v2255_v15  ;;  %3918 = vtanh.f32 %v1768_v32  ;;  %v5616_v15 = vand.u32 4294901760, %v1801_v62  ;;  %v2284_v32 = vsub.f32 %v5560_v14, %v6896_v23  ;;  %v2295_v0 = vand.u32 4294901760, %v5599_v16 }
 0x103   : > { %1987 = vmatpush.msra.mxu1 %v1986_v55  ;;  %2105 = vmatpush.msrb.mxu0 %v7044_v34  ;;  %v2273_v55 = vand.u32 4294901760, %v2272_v5  ;;  %v5629_v28 = vsub.f32 %v1802_v60, %v5601_v19  ;;  %v2279_v34 = vand.u32 4294901760, %v2278_v54  ;;  %v5644_v5 = vand.u32 4294901760, %v1799_v63 }
 0x104   : > { %1989 = vmatmul.f32.vlgmr.msra.gmra.mxu1 %v5406_v44  ;;  %2199 = vmatpush.msrb.mxu2 %v5433_v2  ;;  %v5642_v60 = vsub.f32 %v1801_v62, %v5616_v15  ;;  %v7046_v25 = vand.u32 4294901760, %v5294_v36  ;;  %v2285_v54 = vand.u32 4294901760, %v2284_v32 }
 0x105   : > { %2156 = vmatpush.msrb.mxu1 %v5180_v47  ;;  %2262 = vmatpush.msrb.mxu3 %v2261_v38  ;;  %v2290_v47 = vsub.f32 %v5583_v51, %v6897_v37  ;;  %v2301_v38 = vand.u32 4294901760, %v5614_v45  ;;  %v2307_v62 = vand.u32 4294901760, %v5629_v28  ;;  %v7047_v37 = vand.u32 4294901760, %v5312_v58 }
 0x106   : > { %2109 = vmatpush.msrb.mxu0 %v7045_v52  ;;  %2201 = vmatpush.msrb.mxu2 %v5462_v56  ;;  %v5655_v52 = vsub.f32 %v1800_v42, %v5631_v43  ;;  %v5666_v32 = vsub.f32 %v1799_v63, %v5644_v5 }
 0x107   : > { %2158 = vmatpush.msrb.mxu1 %v5196_v20  ;;  %2268 = vmatpush.msrb.mxu3 %v2267_v13  ;;  %v2296_v13 = vsub.f32 %v5599_v16, %v2295_v0  ;;  %v2302_v36 = vsub.f32 %v5614_v45, %v2301_v38  ;;  %v2308_v58 = vsub.f32 %v5629_v28, %v2307_v62 }
 0x108   : > { %v3919_v23 = vpop.eup %3918  ;;  %2113 = vmatpush.msrb.mxu0 %v7046_v25  ;;  %2203 = vmatpush.msrb.mxu2 %v5483_v30  ;;  %v2325_v63 = vand.u32 4294901760, %v5666_v32  ;;  %v7050_v25 = vand.u32 4294901760, %v5351_v35 }
 0x109   : > { %2160 = vmatpush.msrb.mxu1 %v5208_v29  ;;  %2274 = vmatpush.msrb.mxu3 %v2273_v55  ;;  %v1776_v20 = vadd.f32 1.0, %v3919_v23  ;;  %v2291_v29 = vand.u32 4294901760, %v2290_v47  ;;  %v2313_v23 = vand.u32 4294901760, %v5642_v60  ;;  %v7048_v55 = vand.u32 4294901760, %v5327_v27 }
 0x10a   : > { %2117 = vmatpush.msrb.mxu0 %v7047_v37  ;;  %2205 = vmatpush.msrb.mxu2 %v5502_v6  ;;  %v2319_v37 = vand.u32 4294901760, %v5655_v52  ;;  %v2303_v27 = vand.u32 4294901760, %v2302_v36  ;;  %v7054_v36 = vand.u32 4294901760, %v5454_v3  ;;  %v7057_v3 = vld [vmem:[#allocation5_spill] sm:$0xff] }
 0x10b   : > { %2162 = vmatpush.msrb.mxu1 %v5221_v26  ;;  %2280 = vmatpush.msrb.mxu3 %v2279_v34  ;;  %v1780_v42 = vmul.f32 0.5, %v1776_v20  ;;  %v2297_v26 = vand.u32 4294901760, %v2296_v13  ;;  %v7049_v34 = vand.u32 4294901760, %v5336_v10  ;;  %v2309_v10 = vand.u32 4294901760, %v2308_v58  ;;  %v7062_v58 = vld [vmem:[#allocation8_spill] sm:$0xff] }
 0x10c   : > { %2121 = vmatpush.msrb.mxu0 %v7048_v55  ;;  %2207 = vmatpush.msrb.mxu2 %v5510_v50  ;;  %v2326_v20 = vsub.f32 %v5666_v32, %v2325_v63  ;;  %v7052_v13 = vand.u32 4294901760, %v5399_v40  ;;  %v7061_v55 = vld [vmem:[#allocation4_spill] sm:$0xff] }
 0x10d   : > { %2164 = vmatpush.msrb.mxu1 %v5235_v49  ;;  %2286 = vmatpush.msrb.mxu3 %v2285_v54  ;;  %v2314_v49 = vsub.f32 %v5642_v60, %v2313_v23  ;;  %v5684_v47 = vand.u32 4294901760, %v1780_v42  ;;  %v7051_v54 = vand.u32 4294901760, %v5371_v7 }
 0x10e   : > { %2125 = vmatpush.msrb.mxu0 %v7049_v34  ;;  %2209 = vmatpush.msrb.mxu2 %v5528_v31 }
 0x10f   : > { %2166 = vmatpush.msrb.mxu1 %v5248_v46  ;;  %2292 = vmatpush.msrb.mxu3 %v2291_v29  ;;  %v2320_v46 = vsub.f32 %v5655_v52, %v2319_v37  ;;  %v2315_v35 = vand.u32 4294901760, %v2314_v49  ;;  %v2327_v29 = vand.u32 4294901760, %v2326_v20  ;;  %v7065_v49 = vand.u32 4294901760, %v7062_v58 }
 0x110   : > { %2129 = vmatpush.msrb.mxu0 %v7050_v25  ;;  %2211 = vmatpush.msrb.mxu2 %v5554_v48  ;;  %v7066_v25 = vld [vmem:[#allocation10_spill] sm:$0xff] }
 0x111   : > { %2168 = vmatpush.msrb.mxu1 %v5264_v12  ;;  %2298 = vmatpush.msrb.mxu3 %v2297_v26  ;;  %v5701_v12 = vsub.f32 %v1780_v42, %v5684_v47  ;;  %v2321_v7 = vand.u32 4294901760, %v2320_v46  ;;  %v7060_v42 = vand.u32 4294901760, %v7057_v3  ;;  %v7068_v46 = vand.u32 4294901760, %v5500_v21 }
 0x112   : > { %2133 = vmatpush.msrb.mxu0 %v7051_v54  ;;  %2213 = vmatpush.msrb.mxu2 %v5569_v39 }
 0x113   : > { %2170 = vmatpush.msrb.mxu1 %v5280_v1  ;;  %2304 = vmatpush.msrb.mxu3 %v2303_v27  ;;  %v7053_v1 = vand.u32 4294901760, %v5421_v53  ;;  %v2226_v40 = vand.u32 4294901760, %v5701_v12  ;;  %v7056_v53 = vld [vmem:[#allocation6_spill] sm:$0xff]  ;;  %v7064_v27 = vld [vmem:[#allocation9_spill] sm:$0xff] }
 0x114   : > { %2137 = vmatpush.msrb.mxu0 %v7052_v13  ;;  %2215 = vmatpush.msrb.mxu2 %v5585_v22 }
 0x115   : > { %2172 = vmatpush.msrb.mxu1 %v5296_v11  ;;  %2310 = vmatpush.msrb.mxu3 %v2309_v10  ;;  %v7055_v11 = vand.u32 4294901760, %v5480_v33  ;;  %v7059_v33 = vld [vmem:[#allocation3_spill] sm:$0xff]  ;;  %v7067_v10 = vand.u32 4294901760, %v5470_v57 }
 0x116   : > { %2141 = vmatpush.msrb.mxu0 %v7053_v1  ;;  %2217 = vmatpush.msrb.mxu2 %v5601_v19  ;;  %v7063_v34 = vand.u32 4294901760, %v7059_v33 }
 0x117   : > { %2174 = vmatpush.msrb.mxu1 %v5304_v9  ;;  %2316 = vmatpush.msrb.mxu3 %v2315_v35  ;;  %v2227_v9 = vsub.f32 %v5701_v12, %v2226_v40  ;;  %v1826_v35 = vld [vmem:[%s6802_s3 + $0x158] sm:$0xff] }
 0x118   : > { %2145 = vmatpush.msrb.mxu0 %v7054_v36  ;;  %2219 = vmatpush.msrb.mxu2 %v5616_v15  ;;  %v5832_v20 = vand.u32 4294901760, %v1826_v35 }
 0x119   : > { %2176 = vmatpush.msrb.mxu1 %v5320_v8  ;;  %2322 = vmatpush.msrb.mxu3 %v2321_v7  ;;  %v7058_v8 = vld [vmem:[#allocation2_spill] sm:$0xff]  ;;  %v2228_v26 = vand.u32 4294901760, %v2227_v9 }
 0x11a   : > { %2149 = vmatpush.msrb.mxu0 %v7055_v11  ;;  %2221 = vmatpush.msrb.mxu2 %v5631_v43  ;;  %v5861_v36 = vsub.f32 %v1826_v35, %v5832_v20  ;;  %v1823_v11 = vld [vmem:[%s6802_s3 + $0x140] sm:$0xff] }
 0x11b   : > { %2178 = vmatpush.msrb.mxu1 %v7056_v53  ;;  %2328 = vmatpush.msrb.mxu3 %v2327_v29 }
 0x11c   : > { %2151 = vmatmul.f32.vlgmr.msrb.gmra.mxu0 %v5406_v44  ;;  %2223 = vmatpush.msrb.mxu2 %v5644_v5 }
 0x11d   : > { %2497 = vmatpush.msra.mxu3 %v5356_v4  ;;  %2336 = vmatpush.msra.mxu0 %v7057_v3  ;;  %v5887_v3 = vand.u32 4294901760, %v1823_v11 }
 0x11e   : > { %2180 = vmatpush.msrb.mxu1 %v7058_v8  ;;  %2430 = vmatpush.msra.mxu2 %v7060_v42 }
 0x11f   : > { %2499 = vmatpush.msra.mxu3 %v5386_v17  ;;  %2339 = vmatpush.msra.mxu0 %v7059_v33  ;;  %v1821_v33 = vld [vmem:[%s6802_s3 + $0x130] sm:$0xff] }
 0x120   : > { %2182 = vmatpush.msrb.mxu1 %v7061_v55  ;;  %2434 = vmatpush.msra.mxu2 %v7063_v34  ;;  %v1820_v34 = vld [vmem:[%s6802_s3 + $0x128] sm:$0xff] }
 0x121   : > { %2501 = vmatpush.msra.mxu3 %v5401_v18  ;;  %2342 = vmatpush.msra.mxu0 %v7062_v58 }
 0x122   : > { %2184 = vmatpush.msrb.mxu1 %v7064_v27  ;;  %2438 = vmatpush.msra.mxu2 %v7065_v49  ;;  %v1819_v27 = vld [vmem:[%s6802_s3 + $0x120] sm:$0xff] }
 0x123   : > { %2503 = vmatpush.msra.mxu3 %v5433_v2  ;;  %2345 = vmatpush.msra.mxu0 %v5470_v57  ;;  %v7073_v57 = vand.u32 4294901760, %v5583_v51 }
 0x124   : > { %2186 = vmatpush.msrb.mxu1 %v7066_v25  ;;  %2229 = vmatmul.f32.vlgmr.msrb.gmra.mxu2 %v2228_v26 }
 0x125   : > { %2188 = vmatmul.f32.vlgmr.msrb.gmra.mxu1 %v5406_v44  ;;  %2330 = vmatmul.f32.vlgmr.msrb.gmra.mxu3 %v5684_v47  ;;  %v7070_v44 = vld [vmem:[#allocation7_spill] sm:$0xff] }
 0x126   : > { %2348 = vmatpush.msra.mxu0 %v5500_v21  ;;  %2389 = vmatpush.msra.mxu1 %v5356_v4  ;;  %v7069_v4 = vand.u32 4294901760, %v5518_v59  ;;  %v7071_v21 = vand.u32 4294901760, %v5536_v61 }
 0x127   : > { %2442 = vmatpush.msra.mxu2 %v7067_v10  ;;  %2505 = vmatpush.msra.mxu3 %v5462_v56 }
 0x128   : > { %2351 = vmatpush.msra.mxu0 %v5518_v59  ;;  %2391 = vmatpush.msra.mxu1 %v5386_v17  ;;  %v397_v17 = vperm.slane %v7070_v44, 2  ;;  %v1846_v44 = vld [vmem:[%s6802_s3 + $0x1f8] sm:$0xff] }
 0x129   : > { %2446 = vmatpush.msra.mxu2 %v7068_v46  ;;  %2507 = vmatpush.msra.mxu3 %v5483_v30  ;;  %v5922_v46 = vsub.f32 %v1823_v11, %v5887_v3  ;;  %v1816_v11 = vld [vmem:[%s6802_s3 + $0x108] sm:$0xff] }
 0x12a   : > { %2354 = vmatpush.msra.mxu0 %v5536_v61  ;;  %2393 = vmatpush.msra.mxu1 %v5401_v18  ;;  %v1123_v18 = vpop.f32.mrf.mxu0  ;;  %v1278_v61 = vpop.f32.mrf.mxu2 }
 0x12b   : > { %2450 = vmatpush.msra.mxu2 %v7069_v4  ;;  %2509 = vmatpush.msra.mxu3 %v5502_v6  ;;  %v1124_v59 = vadd.f32 %v1123_v18, %v397_v17 }
 0x12c   : > { %2357 = vmatpush.msra.mxu0 %v5544_v41  ;;  %2395 = vmatpush.msra.mxu1 %v5433_v2  ;;  %v7072_v2 = vand.u32 4294901760, %v5560_v14 }
 0x12d   : > { %2454 = vmatpush.msra.mxu2 %v7071_v21  ;;  %2511 = vmatpush.msra.mxu3 %v5510_v50  ;;  %v5934_v21 = vand.u32 4294901760, %v1820_v34 }
 0x12e   : > { %2360 = vmatpush.msra.mxu0 %v5560_v14  ;;  %2397 = vmatpush.msra.mxu1 %v5462_v56  ;;  %v1830_v56 = vld [vmem:[%s6802_s3 + $0x178] sm:$0xff] }
 0x12f   : > { %2458 = vmatpush.msra.mxu2 %v2277_v24  ;;  %2513 = vmatpush.msra.mxu3 %v5528_v31  ;;  %v5792_v14 = vand.u32 4294901760, %v1830_v56  ;;  %7074 = vst [vmem:[#allocation6_spill] sm:$0xff] %v5934_v21 }
 0x130   : > { %2363 = vmatpush.msra.mxu0 %v5583_v51  ;;  %2399 = vmatpush.msra.mxu1 %v5483_v30 }
 0x131   : > { %2462 = vmatpush.msra.mxu2 %v7072_v2  ;;  %2515 = vmatpush.msra.mxu3 %v5554_v48 }
 0x132   : > { %2366 = vmatpush.msra.mxu0 %v5599_v16  ;;  %2401 = vmatpush.msra.mxu1 %v5502_v6  ;;  %v1224_v41 = vpop.f32.mrf.mxu1  ;;  %v1829_v6 = vld [vmem:[%s6802_s3 + $0x170] sm:$0xff] }
 0x133   : > { %2466 = vmatpush.msra.mxu2 %v7073_v57  ;;  %2517 = vmatpush.msra.mxu3 %v5569_v39  ;;  %v1225_v30 = vadd.f32 %v1224_v41, %v1124_v59  ;;  %v5802_v16 = vand.u32 4294901760, %v1829_v6  ;;  %v5951_v41 = vand.u32 4294901760, %v1846_v44 }
 0x134   : > { %2369 = vmatpush.msra.mxu0 %v5614_v45  ;;  %2403 = vmatpush.msra.mxu1 %v5510_v50  ;;  %v1828_v50 = vld [vmem:[%s6802_s3 + $0x168] sm:$0xff]  ;;  %v5813_v45 = vsub.f32 %v1830_v56, %v5792_v14  ;;  %v1818_v56 = vld [vmem:[%s6802_s3 + $0x118] sm:$0xff] }
 0x135   : > { %2470 = vmatpush.msra.mxu2 %v2295_v0  ;;  %2519 = vmatpush.msra.mxu3 %v5585_v22  ;;  %v1279_v51 = vadd.f32 %v1278_v61, %v1225_v30  ;;  %v6901_v61 = vand.u32 4294901760, %v5922_v46 }
 0x136   : > { %2372 = vmatpush.msra.mxu0 %v5629_v28  ;;  %2405 = vmatpush.msra.mxu1 %v5528_v31  ;;  %v1317_v24 = vpop.f32.mrf.mxu3  ;;  %v1827_v31 = vld [vmem:[%s6802_s3 + $0x160] sm:$0xff]  ;;  %v5826_v28 = vsub.f32 %v1829_v6, %v5802_v16 }
 0x137   : > { %2474 = vmatpush.msra.mxu2 %v2301_v38  ;;  %2521 = vmatpush.msra.mxu3 %v5601_v19  ;;  %v1318_v0 = vadd.f32 %v1317_v24, %v1279_v51  ;;  %v5815_v38 = vand.u32 4294901760, %v1828_v50  ;;  %v1817_v24 = vld [vmem:[%s6802_s3 + $0x110] sm:$0xff] }
 0x138   : > { %2375 = vmatpush.msra.mxu0 %v5642_v60  ;;  %2407 = vmatpush.msra.mxu1 %v5554_v48  ;;  %v6909_v29 = vand.u32 4294901760, %v5826_v28 }
 0x139   : > { %2478 = vmatpush.msra.mxu2 %v2307_v62  ;;  %2523 = vmatpush.msra.mxu3 %v5616_v15  ;;  %v1386_v54 = vpop.f32.mrf.mxu0  ;;  %v5828_v62 = vand.u32 4294901760, %v1827_v31  ;;  %v5841_v60 = vsub.f32 %v1828_v50, %v5815_v38  ;;  %v5961_v50 = vsub.f32 %v1820_v34, %v5934_v21 }
 0x13a   : > { %2378 = vmatpush.msra.mxu0 %v5655_v52  ;;  %2409 = vmatpush.msra.mxu1 %v5569_v39  ;;  %v1387_v48 = vadd.f32 %v1386_v54, %v1318_v0  ;;  %v1825_v39 = vld [vmem:[%s6802_s3 + $0x150] sm:$0xff]  ;;  %v5973_v54 = vand.u32 4294901760, %v1818_v56 }
 0x13b   : > { %2482 = vmatpush.msra.mxu2 %v2313_v23  ;;  %2525 = vmatpush.msra.mxu3 %v5631_v43  ;;  %v1423_v13 = vpop.f32.mrf.mxu1  ;;  %v6911_v23 = vand.u32 4294901760, %v5813_v45  ;;  %v5852_v52 = vsub.f32 %v1827_v31, %v5828_v62  ;;  %v5854_v1 = vand.u32 4294901760, %v1825_v39  ;;  %v1845_v0 = vld [vmem:[%s6802_s3 + $0x1f0] sm:$0xff] }
 0x13c   : > { %2381 = vmatpush.msra.mxu0 %v5666_v32  ;;  %2411 = vmatpush.msra.mxu1 %v5585_v22  ;;  %v1424_v7 = vadd.f32 %v1423_v13, %v1387_v48  ;;  %v1824_v22 = vld [vmem:[%s6802_s3 + $0x148] sm:$0xff]  ;;  %v6908_v32 = vand.u32 4294901760, %v5841_v60  ;;  %7076 = vst [vmem:[#allocation2_spill] sm:$0xff] %v5973_v54  ;;  %v6009_v34 = vsub.f32 %v1818_v56, %v5973_v54 }
 0x13d   : > { %2486 = vmatpush.msra.mxu2 %v2319_v37  ;;  %2527 = vmatpush.msra.mxu3 %v5644_v5  ;;  %v2577_v53 = vsub.f32 %v5813_v45, %v6911_v23  ;;  %v5885_v9 = vsub.f32 %v1825_v39, %v5854_v1  ;;  %v6907_v8 = vand.u32 4294901760, %v5852_v52  ;;  %v5983_v39 = vsub.f32 %v1846_v44, %v5951_v41  ;;  %v1815_v44 = vld [vmem:[%s6802_s3 + $0x100] sm:$0xff] }
 0x13e   : > { %2384 = vmatmul.f32.vlgmr.msra.gmra.mxu0 %v5701_v12  ;;  %2529 = vmatmul.f32.vlgmr.msra.gmra.mxu3 %v5684_v47  ;;  %v1769_v37 = vmul.f32 0.5, %v1424_v7  ;;  %v2589_v55 = vsub.f32 %v5841_v60, %v6908_v32  ;;  %v5941_v12 = vand.u32 4294901760, %v1819_v27 }
 0x13f   : > { %2534 = vmatpush.msrb.mxu0 %v5792_v14  ;;  %2730 = vmatpush.msrb.mxu3 %v5792_v14  ;;  %v2578_v42 = vand.u32 4294901760, %v2577_v53  ;;  %v2595_v10 = vsub.f32 %v5852_v52, %v6907_v8  ;;  %v6904_v4 = vand.u32 4294901760, %v5885_v9  ;;  %7077 = vst [vmem:[#allocation3_spill] sm:$0xff] %v5983_v39  ;;  %v5994_v53 = vand.u32 4294901760, %v1845_v0 }
 0x140   : > { %2413 = vmatpush.msra.mxu1 %v5601_v19  ;;  %2490 = vmatpush.msra.mxu2 %v2325_v63  ;;  %3920 = vtanh.f32 %v1769_v37  ;;  %v5871_v19 = vand.u32 4294901760, %v1824_v22  ;;  %v1822_v63 = vld [vmem:[%s6802_s3 + $0x138] sm:$0xff]  ;;  %v2590_v18 = vand.u32 4294901760, %v2589_v55  ;;  %7075 = vst [vmem:[#allocation5_spill] sm:$0xff] %v5941_v12  ;;  %v5977_v48 = vsub.f32 %v1819_v27, %v5941_v12 }
 0x141   : > { %2492 = vmatmul.f32.vlgmr.msra.gmra.mxu2 %v5684_v47  ;;  %2536 = vmatpush.msrb.mxu0 %v5802_v16  ;;  %v2583_v47 = vsub.f32 %v5826_v28, %v6909_v29  ;;  %v5904_v58 = vand.u32 4294901760, %v1822_v63  ;;  %v2596_v57 = vand.u32 4294901760, %v2595_v10  ;;  %v2607_v30 = vsub.f32 %v5885_v9, %v6904_v4 }
 0x142   : > { %2677 = vmatpush.msrb.mxu2 %v5813_v45  ;;  %2732 = vmatpush.msrb.mxu3 %v5802_v16  ;;  %v5902_v26 = vsub.f32 %v1824_v22, %v5871_v19  ;;  %v2619_v22 = vsub.f32 %v5922_v46, %v6901_v61  ;;  %v5989_v37 = vand.u32 4294901760, %v1817_v24  ;;  %v6902_v27 = vand.u32 4294901760, %v5977_v48 }
 0x143   : > { %2415 = vmatpush.msra.mxu1 %v5616_v15  ;;  %2538 = vmatpush.msrb.mxu0 %v5815_v38  ;;  %v6906_v15 = vand.u32 4294901760, %v5861_v36  ;;  %v2584_v25 = vand.u32 4294901760, %v2583_v47  ;;  %v5938_v59 = vsub.f32 %v1822_v63, %v5904_v58  ;;  %v2608_v7 = vand.u32 4294901760, %v2607_v30  ;;  %v1844_v63 = vld [vmem:[%s6802_s3 + $0x1e8] sm:$0xff]  ;;  %v3930_v30 = vld [vmem:[%s6801_s2] sm:$0xf] }
 0x144   : > { %2680 = vmatpush.msrb.mxu2 %v5826_v28  ;;  %2734 = vmatpush.msrb.mxu3 %v5815_v38  ;;  %v6903_v2 = vand.u32 4294901760, %v5902_v26  ;;  %7078 = vst [vmem:[#allocation4_spill] sm:$0xff] %v5989_v37  ;;  %v6020_v10 = vand.u32 4294901760, %v1816_v11  ;;  %v6030_v56 = vsub.f32 %v1817_v24, %v5989_v37 }
 0x145   : > { %2417 = vmatpush.msra.mxu1 %v5631_v43  ;;  %2540 = vmatpush.msrb.mxu0 %v5828_v62  ;;  %v5911_v43 = vand.u32 4294901760, %v1821_v33  ;;  %v2601_v17 = vsub.f32 %v5861_v36, %v6906_v15  ;;  %v6900_v35 = vand.u32 4294901760, %v5938_v59 }
 0x146   : > { %2683 = vmatpush.msrb.mxu2 %v5841_v60  ;;  %2736 = vmatpush.msrb.mxu3 %v5828_v62  ;;  %v3921_v49 = vpop.eup %3920  ;;  %v2613_v31 = vsub.f32 %v5902_v26, %v6903_v2  ;;  %7079 = vst [vmem:[#allocation8_spill] sm:$0xff] %v6020_v10  ;;  %v6914_v2 = vand.u32 4294901760, %v6030_v56 }
 0x147   : > { %2419 = vmatpush.msra.mxu1 %v5644_v5  ;;  %2542 = vmatpush.msrb.mxu0 %v5832_v20  ;;  %v1777_v5 = vadd.f32 1.0, %v3921_v49  ;;  %v2602_v51 = vand.u32 4294901760, %v2601_v17  ;;  %v2625_v55 = vsub.f32 %v5938_v59, %v6900_v35  ;;  %v1843_v49 = vld [vmem:[%s6802_s3 + $0x1e0] sm:$0xff]  ;;  %v6026_v17 = vand.u32 4294901760, %v1844_v63 }
 0x148   : > { %2423 = vmatmul.f32.vlgmr.msra.gmra.mxu1 %v2226_v40  ;;  %2686 = vmatpush.msrb.mxu2 %v5852_v52  ;;  %v5946_v40 = vsub.f32 %v1821_v33, %v5911_v43  ;;  %v6899_v33 = vand.u32 4294901760, %v5961_v50  ;;  %v6061_v35 = vsub.f32 %v1816_v11, %v6020_v10  ;;  %v2655_v23 = vsub.f32 %v6030_v56, %v6914_v2 }
 0x149   : > { %2579 = vmatpush.msrb.mxu1 %v2578_v42  ;;  %2738 = vmatpush.msrb.mxu3 %v5832_v20  ;;  %v1781_v6 = vmul.f32 0.5, %v1777_v5  ;;  %v2614_v42 = vand.u32 4294901760, %v2613_v31  ;;  %v6905_v5 = vand.u32 4294901760, %v5983_v39  ;;  %v6069_v61 = vsub.f32 %v1844_v63, %v6026_v17 }
 0x14a   : > { %2544 = vmatpush.msrb.mxu0 %v5854_v1  ;;  %2689 = vmatpush.msrb.mxu2 %v5861_v36  ;;  %v6898_v13 = vand.u32 4294901760, %v5946_v40  ;;  %v2637_v24 = vsub.f32 %v5961_v50, %v6899_v33 }
 0x14b   : > { %2585 = vmatpush.msrb.mxu1 %v2584_v25  ;;  %2740 = vmatpush.msrb.mxu3 %v5854_v1  ;;  %v5999_v47 = vand.u32 4294901760, %v1781_v6  ;;  %7081 = vst [vmem:[#allocation10_spill] sm:$0xff] %v6069_v61 }
 0x14c   : > { %2546 = vmatpush.msrb.mxu0 %v5871_v19  ;;  %2692 = vmatpush.msrb.mxu2 %v5885_v9  ;;  %v2631_v25 = vsub.f32 %v5946_v40, %v6898_v13  ;;  %v6910_v13 = vand.u32 4294901760, %v6009_v34  ;;  %v2638_v63 = vand.u32 4294901760, %v2637_v24 }
 0x14d   : > { %2591 = vmatpush.msrb.mxu1 %v2590_v18  ;;  %2742 = vmatpush.msrb.mxu3 %v5871_v19  ;;  %v2620_v18 = vand.u32 4294901760, %v2619_v22  ;;  %v6039_v31 = vsub.f32 %v1781_v6, %v5999_v47  ;;  %v2626_v22 = vand.u32 4294901760, %v2625_v55  ;;  %v6052_v6 = vand.u32 4294901760, %v1815_v44 }
 0x14e   : > { %2548 = vmatpush.msrb.mxu0 %v5887_v3  ;;  %2695 = vmatpush.msrb.mxu2 %v5902_v26  ;;  %v2632_v33 = vand.u32 4294901760, %v2631_v25 }
 0x14f   : > { %2597 = vmatpush.msrb.mxu1 %v2596_v57  ;;  %2744 = vmatpush.msrb.mxu3 %v5887_v3  ;;  %v6033_v57 = vsub.f32 %v1845_v0, %v5994_v53  ;;  %v1842_v0 = vld [vmem:[%s6802_s3 + $0x1d8] sm:$0xff]  ;;  %v6093_v8 = vsub.f32 %v1815_v44, %v6052_v6 }
 0x150   : > { %2550 = vmatpush.msrb.mxu0 %v5904_v58  ;;  %2698 = vmatpush.msrb.mxu2 %v5922_v46  ;;  %v6077_v4 = vand.u32 4294901760, %v1842_v0 }
 0x151   : > { %2603 = vmatpush.msrb.mxu1 %v2602_v51  ;;  %2746 = vmatpush.msrb.mxu3 %v5904_v58  ;;  %7080 = vst [vmem:[#allocation9_spill] sm:$0xff] %v6033_v57  ;;  %v398_v51 = vperm.slane %v3930_v30, 3  ;;  %v2643_v30 = vsub.f32 %v5977_v48, %v6902_v27  ;;  %v1841_v27 = vld [vmem:[%s6802_s3 + $0x1d0] sm:$0xff]  ;;  %v6913_v25 = vand.u32 4294901760, %v6033_v57 }
 0x152   : > { %2552 = vmatpush.msrb.mxu0 %v5911_v43  ;;  %2701 = vmatpush.msrb.mxu2 %v5938_v59  ;;  %v6095_v32 = vand.u32 4294901760, %v1841_v27 }
 0x153   : > { %2609 = vmatpush.msrb.mxu1 %v2608_v7  ;;  %2748 = vmatpush.msrb.mxu3 %v5911_v43  ;;  %v6046_v7 = vand.u32 4294901760, %v1843_v49  ;;  %v2924_v44 = vsub.f32 %v6033_v57, %v6913_v25 }
 0x154   : > { %2554 = vmatpush.msrb.mxu0 %v5934_v21  ;;  %2704 = vmatpush.msrb.mxu2 %v5946_v40 }
 0x155   : > { %2615 = vmatpush.msrb.mxu1 %v2614_v42  ;;  %2750 = vmatpush.msrb.mxu3 %v5934_v21  ;;  %v6066_v42 = vsub.f32 %v5983_v39, %v6905_v5  ;;  %v6083_v15 = vsub.f32 %v1843_v49, %v6046_v7  ;;  %v1839_v49 = vld [vmem:[%s6802_s3 + $0x1c0] sm:$0xff] }
 0x156   : > { %2556 = vmatpush.msrb.mxu0 %v5941_v12  ;;  %2707 = vmatpush.msrb.mxu2 %v5961_v50  ;;  %v1464_v55 = vpop.f32.mrf.mxu2 }
 0x157   : > { %2621 = vmatpush.msrb.mxu1 %v2620_v18  ;;  %2752 = vmatpush.msrb.mxu3 %v5941_v12  ;;  %v1465_v11 = vadd.f32 %v1464_v55, %v398_v51  ;;  %v1840_v18 = vld [vmem:[%s6802_s3 + $0x1c8] sm:$0xff]  ;;  %v2644_v51 = vand.u32 4294901760, %v2643_v30  ;;  %v2649_v55 = vsub.f32 %v6009_v34, %v6910_v13  ;;  %v6126_v13 = vand.u32 4294901760, %v1839_v49 }
 0x158   : > { %2558 = vmatpush.msrb.mxu0 %v5973_v54  ;;  %2710 = vmatpush.msrb.mxu2 %v5977_v48  ;;  %v2656_v30 = vand.u32 4294901760, %v2655_v23  ;;  %v7086_v12 = vand.u32 4294901760, %v6083_v15  ;;  %v1836_v23 = vld [vmem:[%s6802_s3 + $0x1a8] sm:$0xff] }
 0x159   : > { %2627 = vmatpush.msrb.mxu1 %v2626_v22  ;;  %2754 = vmatpush.msrb.mxu3 %v5973_v54  ;;  %v1565_v24 = vpop.f32.mrf.mxu3  ;;  %v2919_v22 = vand.u32 4294901760, %v6066_v42  ;;  %v6113_v54 = vsub.f32 %v1842_v0, %v6077_v4  ;;  %v6115_v42 = vand.u32 4294901760, %v1840_v18  ;;  %v2650_v0 = vand.u32 4294901760, %v2649_v55  ;;  %v1837_v55 = vld [vmem:[%s6802_s3 + $0x1b0] sm:$0xff] }
 0x15a   : > { %2560 = vmatpush.msrb.mxu0 %v5989_v37  ;;  %2713 = vmatpush.msrb.mxu2 %v6009_v34  ;;  %v1566_v29 = vadd.f32 %v1565_v24, %v1465_v11  ;;  %v7082_v11 = vand.u32 4294901760, %v6039_v31 }
 0x15b   : > { %2633 = vmatpush.msrb.mxu1 %v2632_v33  ;;  %2756 = vmatpush.msrb.mxu3 %v5989_v37  ;;  %v1619_v5 = vpop.f32.mrf.mxu0  ;;  %v1838_v33 = vld [vmem:[%s6802_s3 + $0x1b8] sm:$0xff]  ;;  %v6131_v37 = vsub.f32 %v1841_v27, %v6095_v32  ;;  %v2925_v27 = vand.u32 4294901760, %v2924_v44  ;;  %v6157_v44 = vsub.f32 %v1839_v49, %v6126_v13 }
 0x15c   : > { %2562 = vmatpush.msrb.mxu0 %v6020_v10  ;;  %2716 = vmatpush.msrb.mxu2 %v6030_v56  ;;  %v2568_v24 = vsub.f32 %v6039_v31, %v7082_v11  ;;  %v1620_v2 = vadd.f32 %v1619_v5, %v1566_v29  ;;  %v7083_v11 = vand.u32 4294901760, %v6069_v61  ;;  %v7084_v29 = vand.u32 4294901760, %v6061_v35 }
 0x15d   : > { %2639 = vmatpush.msrb.mxu1 %v2638_v63  ;;  %2758 = vmatpush.msrb.mxu3 %v6020_v10  ;;  %v6141_v63 = vand.u32 4294901760, %v1838_v33  ;;  %v6925_v10 = vand.u32 4294901760, %v6113_v54 }
 0x15e   : > { %2564 = vmatpush.msrb.mxu0 %v6052_v6  ;;  %2719 = vmatpush.msrb.mxu2 %v6061_v35  ;;  %v2930_v25 = vsub.f32 %v6069_v61, %v7083_v11  ;;  %v2661_v5 = vsub.f32 %v6061_v35, %v7084_v29  ;;  %v6149_v11 = vsub.f32 %v1840_v18, %v6115_v42  ;;  %v7085_v29 = vand.u32 4294901760, %v5813_v45 }
 0x15f   : > { %2645 = vmatpush.msrb.mxu1 %v2644_v51  ;;  %2760 = vmatpush.msrb.mxu3 %v6052_v6  ;;  %v1658_v57 = vpop.f32.mrf.mxu1  ;;  %v1727_v39 = vpop.f32.mrf.mxu2  ;;  %v2569_v61 = vand.u32 4294901760, %v2568_v24  ;;  %v2936_v51 = vsub.f32 %v6083_v15, %v7086_v12  ;;  %v7087_v45 = vand.u32 4294901760, %v6093_v8  ;;  %v6167_v24 = vand.u32 4294901760, %v1837_v55 }
 0x160   : > { %2771 = vmatpush.msra.mxu0 %v7085_v29  ;;  %v1659_v21 = vadd.f32 %v1658_v57, %v1620_v2  ;;  %2722 = vmatpush.msrb.mxu2 %v6093_v8  ;;  %v7088_v2 = vand.u32 4294901760, %v5826_v28  ;;  %v2931_v12 = vand.u32 4294901760, %v2930_v25  ;;  %v2662_v57 = vand.u32 4294901760, %v2661_v5 }
 0x161   : > { %2920 = vmatpush.msra.mxu3 %v2919_v22  ;;  %2651 = vmatpush.msrb.mxu1 %v2650_v0  ;;  %v2667_v18 = vsub.f32 %v6093_v8, %v7087_v45  ;;  %v6173_v0 = vsub.f32 %v1838_v33, %v6141_v63  ;;  %v1835_v45 = vld [vmem:[%s6802_s3 + $0x1a0] sm:$0xff]  ;;  %v2942_v28 = vsub.f32 %v6113_v54, %v6925_v10  ;;  %v6182_v22 = vand.u32 4294901760, %v1836_v23  ;;  %v1834_v33 = vld [vmem:[%s6802_s3 + $0x198] sm:$0xff] }
 0x162   : > { %2775 = vmatpush.msra.mxu0 %v7088_v2  ;;  %2875 = vmatpush.msra.mxu2 %v5951_v41  ;;  %v1728_v49 = vadd.f32 %v1727_v39, %v1659_v21  ;;  %v1764_v29 = vpop.f32.mrf.mxu3  ;;  %v2953_v2 = vand.u32 4294901760, %v6149_v11  ;;  %v2937_v21 = vand.u32 4294901760, %v2936_v51  ;;  %v6927_v25 = vand.u32 4294901760, %v6157_v44 }
 0x163   : > { %2926 = vmatpush.msra.mxu3 %v2925_v27  ;;  %2657 = vmatpush.msrb.mxu1 %v2656_v30  ;;  %v7089_v30 = vand.u32 4294901760, %v5841_v60  ;;  %v2668_v5 = vand.u32 4294901760, %v2667_v18  ;;  %v7090_v27 = vand.u32 4294901760, %v6131_v37  ;;  %v6196_v10 = vsub.f32 %v1837_v55, %v6167_v24  ;;  %v1833_v60 = vld [vmem:[%s6802_s3 + $0x190] sm:$0xff] }
 0x164   : > { %2570 = vmatmul.f32.vlgmr.msrb.gmra.mxu0 %v2569_v61  ;;  %2725 = vmatmul.f32.vlgmr.msrb.gmra.mxu2 %v6039_v31  ;;  %v1765_v39 = vadd.f32 %v1764_v29, %v1728_v49  ;;  %v6198_v51 = vand.u32 4294901760, %v1835_v45  ;;  %v6926_v29 = vand.u32 4294901760, %v6173_v0  ;;  %v7091_v18 = vand.u32 4294901760, %v6039_v31 }
 0x165   : > { %2779 = vmatpush.msra.mxu0 %v7089_v30  ;;  %2877 = vmatpush.msra.mxu2 %v5994_v53  ;;  %v2948_v61 = vsub.f32 %v6131_v37, %v7090_v27  ;;  %v7092_v30 = vand.u32 4294901760, %v5852_v52  ;;  %v2943_v27 = vand.u32 4294901760, %v2942_v28  ;;  %v2954_v55 = vsub.f32 %v6149_v11, %v2953_v2  ;;  %v1832_v52 = vld [vmem:[%s6802_s3 + $0x188] sm:$0xff] }
 0x166   : > { %2932 = vmatpush.msra.mxu3 %v2931_v12  ;;  %2663 = vmatpush.msrb.mxu1 %v2662_v57  ;;  %v1770_v49 = vmul.f32 0.5, %v1765_v39  ;;  %v6212_v12 = vsub.f32 %v1836_v23, %v6182_v22  ;;  %v6214_v57 = vand.u32 4294901760, %v1834_v33  ;;  %v2960_v31 = vsub.f32 %v6157_v44, %v6927_v25 }
 0x167   : > { %2764 = vmatmul.f32.vlgmr.msrb.gmra.mxu3 %v7091_v18  ;;  %2783 = vmatpush.msra.mxu0 %v7092_v30  ;;  %v7093_v28 = vand.u32 4294901760, %v5861_v36  ;;  %v2949_v23 = vand.u32 4294901760, %v2948_v61  ;;  %v6928_v39 = vand.u32 4294901760, %v6196_v10  ;;  %v6227_v18 = vsub.f32 %v1835_v45, %v6198_v51  ;;  %v1831_v36 = vld [vmem:[%s6802_s3 + $0x180] sm:$0xff] }
 0x168   : > { %2879 = vmatpush.msra.mxu2 %v6026_v17  ;;  %2938 = vmatpush.msra.mxu3 %v2937_v21  ;;  %3922 = vtanh.f32 %v1770_v49  ;;  %v6229_v21 = vand.u32 4294901760, %v1833_v60  ;;  %v2966_v49 = vsub.f32 %v6173_v0, %v6926_v29  ;;  %v2977_v45 = vand.u32 4294901760, %v6212_v12 }
 0x169   : > { %2669 = vmatpush.msrb.mxu1 %v2668_v5  ;;  %2787 = vmatpush.msra.mxu0 %v7093_v28  ;;  %v2955_v5 = vand.u32 4294901760, %v2954_v55  ;;  %v6242_v61 = vsub.f32 %v1834_v33, %v6214_v57  ;;  %v6244_v30 = vand.u32 4294901760, %v1832_v52  ;;  %v7094_v28 = vand.u32 4294901760, %v5885_v9 }
 0x16a   : > { %2671 = vmatmul.f32.vlgmr.msrb.gmra.mxu1 %v5999_v47  ;;  %2881 = vmatpush.msra.mxu2 %v6046_v7  ;;  %v2961_v29 = vand.u32 4294901760, %v2960_v31  ;;  %v6255_v33 = vsub.f32 %v1833_v60, %v6229_v21  ;;  %v6257_v55 = vand.u32 4294901760, %v1831_v36  ;;  %v7095_v9 = vand.u32 4294901760, %v5902_v26 }
 0x16b   : > { %2838 = vmatpush.msra.mxu1 %v5792_v14  ;;  %2944 = vmatpush.msra.mxu3 %v2943_v27  ;;  %v2972_v14 = vsub.f32 %v6196_v10, %v6928_v39  ;;  %v2983_v27 = vand.u32 4294901760, %v6227_v18  ;;  %v2967_v31 = vand.u32 4294901760, %v2966_v49  ;;  %v2989_v60 = vand.u32 4294901760, %v6242_v61 }
 0x16c   : > { %2791 = vmatpush.msra.mxu0 %v7094_v28  ;;  %2883 = vmatpush.msra.mxu2 %v6077_v4  ;;  %v6268_v28 = vsub.f32 %v1832_v52, %v6244_v30  ;;  %v7096_v39 = vand.u32 4294901760, %v5922_v46  ;;  %v6279_v49 = vsub.f32 %v1831_v36, %v6257_v55 }
 0x16d   : > { %2840 = vmatpush.msra.mxu1 %v5802_v16  ;;  %2950 = vmatpush.msra.mxu3 %v2949_v23  ;;  %v2978_v23 = vsub.f32 %v6212_v12, %v2977_v45  ;;  %v2984_v26 = vsub.f32 %v6227_v18, %v2983_v27  ;;  %v2990_v46 = vsub.f32 %v6242_v61, %v2989_v60 }
 0x16e   : > { %v3923_v25 = vpop.eup %3922  ;;  %2795 = vmatpush.msra.mxu0 %v7095_v9  ;;  %2885 = vmatpush.msra.mxu2 %v6095_v32  ;;  %v3007_v36 = vand.u32 4294901760, %v6279_v49  ;;  %v7099_v9 = vand.u32 4294901760, %v5961_v50 }
 0x16f   : > { %2842 = vmatpush.msra.mxu1 %v5815_v38  ;;  %2956 = vmatpush.msra.mxu3 %v2955_v5  ;;  %v1778_v16 = vadd.f32 1.0, %v3923_v25  ;;  %v2973_v38 = vand.u32 4294901760, %v2972_v14  ;;  %v2995_v25 = vand.u32 4294901760, %v6255_v33  ;;  %v7097_v5 = vand.u32 4294901760, %v5938_v59 }
 0x170   : > { %2799 = vmatpush.msra.mxu0 %v7096_v39  ;;  %2887 = vmatpush.msra.mxu2 %v6115_v42  ;;  %v7098_v39 = vand.u32 4294901760, %v5946_v40  ;;  %v2985_v59 = vand.u32 4294901760, %v2984_v26  ;;  %v2991_v40 = vand.u32 4294901760, %v2990_v46  ;;  %v7103_v26 = vand.u32 4294901760, %v6061_v35  ;;  %v7107_v35 = vld [vmem:[#allocation3_spill] sm:$0xff]  ;;  %v7111_v46 = vld [vmem:[#allocation4_spill] sm:$0xff] }
 0x171   : > { %2844 = vmatpush.msra.mxu1 %v5828_v62  ;;  %2962 = vmatpush.msra.mxu3 %v2961_v29  ;;  %v1782_v52 = vmul.f32 0.5, %v1778_v16  ;;  %v2979_v62 = vand.u32 4294901760, %v2978_v23  ;;  %v3001_v29 = vand.u32 4294901760, %v6268_v28  ;;  %v3008_v16 = vsub.f32 %v6279_v49, %v3007_v36 }
 0x172   : > { %2803 = vmatpush.msra.mxu0 %v7097_v5  ;;  %2889 = vmatpush.msra.mxu2 %v6126_v13  ;;  %v7101_v23 = vand.u32 4294901760, %v6009_v34  ;;  %v7108_v5 = vld [vmem:[#allocation2_spill] sm:$0xff] }
 0x173   : > { %2846 = vmatpush.msra.mxu1 %v5832_v20  ;;  %2968 = vmatpush.msra.mxu3 %v2967_v31  ;;  %v2996_v20 = vsub.f32 %v6255_v33, %v2995_v25  ;;  %v6297_v14 = vand.u32 4294901760, %v1782_v52  ;;  %v7100_v31 = vand.u32 4294901760, %v5977_v48 }
 0x174   : > { %2807 = vmatpush.msra.mxu0 %v7098_v39  ;;  %2891 = vmatpush.msra.mxu2 %v6141_v63 }
 0x175   : > { %2848 = vmatpush.msra.mxu1 %v5854_v1  ;;  %2974 = vmatpush.msra.mxu3 %v2973_v38  ;;  %v3002_v1 = vsub.f32 %v6268_v28, %v3001_v29  ;;  %v2997_v50 = vand.u32 4294901760, %v2996_v20  ;;  %v3009_v38 = vand.u32 4294901760, %v3008_v16 }
 0x176   : > { %2811 = vmatpush.msra.mxu0 %v7099_v9  ;;  %2893 = vmatpush.msra.mxu2 %v6167_v24  ;;  %v7114_v9 = vld [vmem:[#allocation8_spill] sm:$0xff] }
 0x177   : > { %2850 = vmatpush.msra.mxu1 %v5871_v19  ;;  %2980 = vmatpush.msra.mxu3 %v2979_v62  ;;  %v6314_v19 = vsub.f32 %v1782_v52, %v6297_v14  ;;  %v3003_v48 = vand.u32 4294901760, %v3002_v1  ;;  %v7104_v52 = vld [vmem:[#allocation6_spill] sm:$0xff]  ;;  %v7110_v62 = vand.u32 4294901760, %v7107_v35  ;;  %v7116_v1 = vand.u32 4294901760, %v6083_v15 }
 0x178   : > { %2815 = vmatpush.msra.mxu0 %v7100_v31  ;;  %2895 = vmatpush.msra.mxu2 %v6182_v22  ;;  %v3227_v31 = vld [vmem:[%s6804_s5 + $0x40] sm:$0xff] }
 0x179   : > { %2852 = vmatpush.msra.mxu1 %v5887_v3  ;;  %2986 = vmatpush.msra.mxu3 %v2985_v59  ;;  %v7102_v3 = vand.u32 4294901760, %v6030_v56  ;;  %v2908_v34 = vand.u32 4294901760, %v6314_v19  ;;  %v7106_v56 = vld [vmem:[#allocation5_spill] sm:$0xff]  ;;  %v7112_v59 = vld [vmem:[#allocation10_spill] sm:$0xff] }
 0x17a   : > { %2819 = vmatpush.msra.mxu0 %v7101_v23  ;;  %2897 = vmatpush.msra.mxu2 %v6198_v51  ;;  %v6525_v23 = vand.u32 4294901760, %v3227_v31 }
 0x17b   : > { %2854 = vmatpush.msra.mxu1 %v5904_v58  ;;  %2992 = vmatpush.msra.mxu3 %v2991_v40  ;;  %v7105_v58 = vand.u32 4294901760, %v6093_v8  ;;  %v7109_v8 = vld [vmem:[#allocation9_spill] sm:$0xff]  ;;  %v7115_v40 = vand.u32 4294901760, %v7112_v59 }
 0x17c   : > { %2823 = vmatpush.msra.mxu0 %v7102_v3  ;;  %2899 = vmatpush.msra.mxu2 %v6214_v57  ;;  %v7113_v20 = vand.u32 4294901760, %v7109_v8 }
 0x17d   : > { %2856 = vmatpush.msra.mxu1 %v5911_v43  ;;  %2998 = vmatpush.msra.mxu3 %v2997_v50  ;;  %v2909_v43 = vsub.f32 %v6314_v19, %v2908_v34 }
 0x17e   : > { %2827 = vmatpush.msra.mxu0 %v7103_v26  ;;  %2901 = vmatpush.msra.mxu2 %v6229_v21 }
 0x17f   : > { %2858 = vmatpush.msra.mxu1 %v7104_v52  ;;  %3004 = vmatpush.msra.mxu3 %v3003_v48  ;;  %v2910_v39 = vand.u32 4294901760, %v2909_v43 }
 0x180   : > { %2831 = vmatpush.msra.mxu0 %v7105_v58  ;;  %2903 = vmatpush.msra.mxu2 %v6244_v30  ;;  %v6541_v58 = vsub.f32 %v3227_v31, %v6525_v23 }
 0x181   : > { %2860 = vmatpush.msra.mxu1 %v7106_v56  ;;  %3010 = vmatpush.msra.mxu3 %v3009_v38  ;;  %v3226_v38 = vld [vmem:[%s6804_s5 + $0x38] sm:$0xff]  ;;  %v1990_v26 = vpop.f32.mrf.mxu1 }
 0x182   : > { %2833 = vmatmul.f32.vlgmr.msra.gmra.mxu0 %v5999_v47  ;;  %2905 = vmatpush.msra.mxu2 %v6257_v55  ;;  %v6543_v56 = vand.u32 4294901760, %v3226_v38 }
 0x183   : > { %3179 = vmatpush.msrb.mxu3 %v5951_v41  ;;  %3018 = vmatpush.msrb.mxu0 %v7107_v35  ;;  %v3225_v35 = vld [vmem:[%s6804_s5 + $0x30] sm:$0xff] }
 0x184   : > { %2862 = vmatpush.msra.mxu1 %v7108_v5  ;;  %3112 = vmatpush.msrb.mxu2 %v7110_v62  ;;  %v3224_v5 = vld [vmem:[%s6804_s5 + $0x28] sm:$0xff] }
 0x185   : > { %3181 = vmatpush.msrb.mxu3 %v5994_v53  ;;  %3021 = vmatpush.msrb.mxu0 %v7109_v8  ;;  %v3223_v8 = vld [vmem:[%s6804_s5 + $0x20] sm:$0xff] }
 0x186   : > { %2864 = vmatpush.msra.mxu1 %v7111_v46  ;;  %3116 = vmatpush.msrb.mxu2 %v7113_v20 }
 0x187   : > { %3183 = vmatpush.msrb.mxu3 %v6026_v17  ;;  %3024 = vmatpush.msrb.mxu0 %v7112_v59  ;;  %v6562_v59 = vsub.f32 %v3226_v38, %v6543_v56 }
 0x188   : > { %2866 = vmatpush.msra.mxu1 %v7114_v9  ;;  %3120 = vmatpush.msrb.mxu2 %v7115_v40  ;;  %v6565_v9 = vand.u32 4294901760, %v3225_v35  ;;  %v6567_v40 = vand.u32 4294901760, %v3224_v5 }
 0x189   : > { %3185 = vmatpush.msrb.mxu3 %v6046_v7  ;;  %3027 = vmatpush.msrb.mxu0 %v6083_v15  ;;  %v7119_v15 = vand.u32 4294901760, %v6157_v44 }
 0x18a   : > { %2868 = vmatpush.msra.mxu1 %v6052_v6  ;;  %2911 = vmatmul.f32.vlgmr.msra.gmra.mxu2 %v2910_v39  ;;  %v7117_v6 = vand.u32 4294901760, %v6113_v54  ;;  %v3324_v39 = vand.u32 4294901760, %v6541_v58 }
 0x18b   : > { %2870 = vmatmul.f32.vlgmr.msra.gmra.mxu1 %v5999_v47  ;;  %3012 = vmatmul.f32.vlgmr.msra.gmra.mxu3 %v6297_v14 }
 0x18c   : > { %3030 = vmatpush.msrb.mxu0 %v6113_v54  ;;  %3071 = vmatpush.msrb.mxu1 %v5951_v41  ;;  %v7118_v41 = vand.u32 4294901760, %v6131_v37  ;;  %v7120_v54 = vand.u32 4294901760, %v6173_v0 }
 0x18d   : > { %3124 = vmatpush.msrb.mxu2 %v7116_v1  ;;  %3187 = vmatpush.msrb.mxu3 %v6077_v4  ;;  %v6569_v1 = vand.u32 4294901760, %v3223_v8 }
 0x18e   : > { %3033 = vmatpush.msrb.mxu0 %v6131_v37  ;;  %3073 = vmatpush.msrb.mxu1 %v5994_v53  ;;  %v3233_v37 = vld [vmem:[%s6804_s5 + $0x70] sm:$0xff] }
 0x18f   : > { %3128 = vmatpush.msrb.mxu2 %v7117_v6  ;;  %3189 = vmatpush.msrb.mxu3 %v6095_v32  ;;  %v6440_v47 = vand.u32 4294901760, %v3233_v37  ;;  %v2044_v6 = vpop.f32.mrf.mxu2 }
 0x190   : > { %3036 = vmatpush.msrb.mxu0 %v6149_v11  ;;  %3075 = vmatpush.msrb.mxu1 %v6026_v17 }
 0x191   : > { %3132 = vmatpush.msrb.mxu2 %v7118_v41  ;;  %3191 = vmatpush.msrb.mxu3 %v6115_v42 }
 0x192   : > { %3039 = vmatpush.msrb.mxu0 %v6157_v44  ;;  %3077 = vmatpush.msrb.mxu1 %v6046_v7  ;;  %v6449_v7 = vsub.f32 %v3233_v37, %v6440_v47  ;;  %v6585_v37 = vsub.f32 %v3223_v8, %v6569_v1 }
 0x193   : > { %3136 = vmatpush.msrb.mxu2 %v2953_v2  ;;  %3193 = vmatpush.msrb.mxu3 %v6126_v13 }
 0x194   : > { %3042 = vmatpush.msrb.mxu0 %v6173_v0  ;;  %3079 = vmatpush.msrb.mxu1 %v6077_v4  ;;  %v7121_v4 = vand.u32 4294901760, %v6196_v10  ;;  %v3288_v44 = vand.u32 4294901760, %v6449_v7  ;;  %v3230_v0 = vld [vmem:[%s6804_s5 + $0x58] sm:$0xff] }
 0x195   : > { %3140 = vmatpush.msrb.mxu2 %v7119_v15  ;;  %3195 = vmatpush.msrb.mxu3 %v6141_v63  ;;  %v3325_v15 = vsub.f32 %v6541_v58, %v3324_v39 }
 0x196   : > { %3045 = vmatpush.msrb.mxu0 %v6196_v10  ;;  %3081 = vmatpush.msrb.mxu1 %v6095_v32  ;;  %v3234_v32 = vld [vmem:[%s6804_s5 + $0x78] sm:$0xff]  ;;  %v3232_v10 = vld [vmem:[%s6804_s5 + $0x68] sm:$0xff] }
 0x197   : > { %3144 = vmatpush.msrb.mxu2 %v7120_v54  ;;  %3197 = vmatpush.msrb.mxu3 %v6167_v24  ;;  %v3330_v54 = vand.u32 4294901760, %v6562_v59 }
 0x198   : > { %3048 = vmatpush.msrb.mxu0 %v6212_v12  ;;  %3083 = vmatpush.msrb.mxu1 %v6115_v42  ;;  %v6451_v42 = vand.u32 4294901760, %v3232_v10 }
 0x199   : > { %3148 = vmatpush.msrb.mxu2 %v7121_v4  ;;  %3199 = vmatpush.msrb.mxu3 %v6182_v22  ;;  %v6579_v4 = vsub.f32 %v3225_v35, %v6565_v9 }
 0x19a   : > { %3051 = vmatpush.msrb.mxu0 %v6227_v18  ;;  %3085 = vmatpush.msrb.mxu1 %v6126_v13  ;;  %v6432_v13 = vand.u32 4294901760, %v3234_v32  ;;  %v6483_v18 = vand.u32 4294901760, %v3230_v0 }
 0x19b   : > { %3152 = vmatpush.msrb.mxu2 %v2977_v45  ;;  %3201 = vmatpush.msrb.mxu3 %v6198_v51 }
 0x19c   : > { %3054 = vmatpush.msrb.mxu0 %v6242_v61  ;;  %3087 = vmatpush.msrb.mxu1 %v6141_v63  ;;  %v6438_v53 = vsub.f32 %v3234_v32, %v6432_v13  ;;  %v3231_v63 = vld [vmem:[%s6804_s5 + $0x60] sm:$0xff]  ;;  %v6582_v32 = vsub.f32 %v3224_v5, %v6567_v40 }
 0x19d   : > { %3156 = vmatpush.msrb.mxu2 %v2983_v27  ;;  %3203 = vmatpush.msrb.mxu3 %v6214_v57 }
 0x19e   : > { %3057 = vmatpush.msrb.mxu0 %v6255_v33  ;;  %3089 = vmatpush.msrb.mxu1 %v6167_v24  ;;  %v3282_v17 = vand.u32 4294901760, %v6438_v53  ;;  %v6466_v24 = vand.u32 4294901760, %v3231_v63  ;;  %v3913_v33 = vld [vmem:[%s6803_s4] ss:$0 sm:$0xff] }
 0x19f   : > { %3160 = vmatpush.msrb.mxu2 %v2989_v60  ;;  %3205 = vmatpush.msrb.mxu3 %v6229_v21  ;;  %v3228_v60 = vld [vmem:[%s6804_s5 + $0x48] sm:$0xff] }
 0x1a0   : > { %3060 = vmatpush.msrb.mxu0 %v6268_v28  ;;  %3091 = vmatpush.msrb.mxu1 %v6182_v22  ;;  %v3283_v11 = vsub.f32 %v6438_v53, %v3282_v17  ;;  %v6464_v22 = vsub.f32 %v3232_v10, %v6451_v42  ;;  %v1889_v28 = vpop.f32.mrf.mxu0  ;;  %v3326_v10 = vand.u32 4294901760, %v3325_v15 }
 0x1a1   : > { %3164 = vmatpush.msrb.mxu2 %v2995_v25  ;;  %3207 = vmatpush.msrb.mxu3 %v6244_v30  ;;  %v1890_v48 = vadd.f32 %v3913_v33, %v1889_v28 }
 0x1a2   : > { %3063 = vmatpush.msrb.mxu0 %v6279_v49  ;;  %3093 = vmatpush.msrb.mxu1 %v6198_v51  ;;  %v3284_v2 = vand.u32 4294901760, %v3283_v11  ;;  %v3289_v51 = vsub.f32 %v6449_v7, %v3288_v44  ;;  %v3294_v12 = vand.u32 4294901760, %v6464_v22 }
 0x1a3   : > { %3168 = vmatpush.msrb.mxu2 %v3001_v29  ;;  %3209 = vmatpush.msrb.mxu3 %v6257_v55  ;;  %v1991_v20 = vadd.f32 %v1990_v26, %v1890_v48 }
 0x1a4   : > { %3066 = vmatmul.f32.vlgmr.msrb.gmra.mxu0 %v6314_v19  ;;  %3211 = vmatmul.f32.vlgmr.msrb.gmra.mxu3 %v6297_v14  ;;  %v3290_v45 = vand.u32 4294901760, %v3289_v51  ;;  %v3295_v61 = vsub.f32 %v6464_v22, %v3294_v12  ;;  %v3348_v51 = vand.u32 4294901760, %v6585_v37 }
 0x1a5   : > { %3095 = vmatpush.msrb.mxu1 %v6214_v57  ;;  %3172 = vmatpush.msrb.mxu2 %v3007_v36  ;;  %v6479_v57 = vsub.f32 %v3231_v63, %v6466_v24  ;;  %v6513_v36 = vand.u32 4294901760, %v3228_v60  ;;  %v3331_v63 = vsub.f32 %v6562_v59, %v3330_v54  ;;  %v2045_v11 = vadd.f32 %v2044_v6, %v1991_v20  ;;  %v3219_v20 = vld [vmem:[%s6804_s5] sm:$0xff] }
 0x1a6   : > { %3174 = vmatmul.f32.vlgmr.msrb.gmra.mxu2 %v6297_v14  ;;  %3240 = vmatpush.msra.mxu0 %v6432_v13  ;;  %v3296_v25 = vand.u32 4294901760, %v3295_v61 }
 0x1a7   : > { %3097 = vmatpush.msrb.mxu1 %v6229_v21  ;;  %3436 = vmatpush.msra.mxu3 %v6432_v13  ;;  %v3229_v21 = vld [vmem:[%s6804_s5 + $0x50] sm:$0xff]  ;;  %v6523_v19 = vsub.f32 %v3228_v60, %v6513_v36  ;;  %v3332_v61 = vand.u32 4294901760, %v3331_v63  ;;  %v2230_v6 = vpop.f32.mrf.mxu2  ;;  %v6647_v63 = vand.u32 4294901760, %v3219_v20 }
 0x1a8   : > { %3242 = vmatpush.msra.mxu0 %v6440_v47  ;;  %3383 = vmatpush.msra.mxu2 %v6438_v53  ;;  %v6493_v27 = vand.u32 4294901760, %v3229_v21  ;;  %v2152_v31 = vpop.f32.mrf.mxu0 }
 0x1a9   : > { %3099 = vmatpush.msrb.mxu1 %v6244_v30  ;;  %3438 = vmatpush.msra.mxu3 %v6440_v47  ;;  %v3300_v30 = vand.u32 4294901760, %v6479_v57  ;;  %v3318_v52 = vand.u32 4294901760, %v6523_v19 }
 0x1aa   : > { %3244 = vmatpush.msra.mxu0 %v6451_v42  ;;  %3386 = vmatpush.msra.mxu2 %v6449_v7  ;;  %v6511_v29 = vsub.f32 %v3229_v21, %v6493_v27  ;;  %v3222_v21 = vld [vmem:[%s6804_s5 + $0x18] sm:$0xff] }
 0x1ab   : > { %3101 = vmatpush.msrb.mxu1 %v6257_v55  ;;  %3440 = vmatpush.msra.mxu3 %v6451_v42  ;;  %v6500_v55 = vsub.f32 %v3230_v0, %v6483_v18  ;;  %v3301_v49 = vsub.f32 %v6479_v57, %v3300_v30  ;;  %v3319_v46 = vsub.f32 %v6523_v19, %v3318_v52  ;;  %v3336_v0 = vand.u32 4294901760, %v6579_v4 }
 0x1ac   : > { %3105 = vmatmul.f32.vlgmr.msrb.gmra.mxu1 %v2908_v34  ;;  %3246 = vmatpush.msra.mxu0 %v6466_v24  ;;  %v3312_v16 = vand.u32 4294901760, %v6511_v29  ;;  %v6600_v33 = vand.u32 4294901760, %v3222_v21 }
 0x1ad   : > { %3389 = vmatpush.msra.mxu2 %v6464_v22  ;;  %3442 = vmatpush.msra.mxu3 %v6466_v24  ;;  %v3306_v14 = vand.u32 4294901760, %v6500_v55  ;;  %v3302_v50 = vand.u32 4294901760, %v3301_v49  ;;  %v3320_v41 = vand.u32 4294901760, %v3319_v46  ;;  %v3337_v60 = vsub.f32 %v6579_v4, %v3336_v0  ;;  %v3221_v49 = vld [vmem:[%s6804_s5 + $0x10] sm:$0xff] }
 0x1ae   : > { %3285 = vmatpush.msra.mxu1 %v3284_v2  ;;  %3248 = vmatpush.msra.mxu0 %v6483_v18  ;;  %v3313_v34 = vsub.f32 %v6511_v29, %v3312_v16  ;;  %v3342_v2 = vand.u32 4294901760, %v6582_v32  ;;  %v6620_v48 = vand.u32 4294901760, %v3221_v49 }
 0x1af   : > { %3392 = vmatpush.msra.mxu2 %v6479_v57  ;;  %3444 = vmatpush.msra.mxu3 %v6483_v18  ;;  %v3307_v3 = vsub.f32 %v6500_v55, %v3306_v14  ;;  %v3338_v38 = vand.u32 4294901760, %v3337_v60  ;;  %v6657_v60 = vsub.f32 %v3219_v20, %v6647_v63 }
 0x1b0   : > { %3291 = vmatpush.msra.mxu1 %v3290_v45  ;;  %3250 = vmatpush.msra.mxu0 %v6493_v27  ;;  %v3314_v62 = vand.u32 4294901760, %v3313_v34  ;;  %v2083_v45 = vpop.f32.mrf.mxu3  ;;  %v3343_v28 = vsub.f32 %v6582_v32, %v3342_v2  ;;  %v3220_v34 = vld [vmem:[%s6804_s5 + $0x8] sm:$0xff]  ;;  %v6630_v5 = vsub.f32 %v3221_v49, %v6620_v48 }
 0x1b1   : > { %3395 = vmatpush.msra.mxu2 %v6500_v55  ;;  %3446 = vmatpush.msra.mxu3 %v6493_v27  ;;  %v3308_v43 = vand.u32 4294901760, %v3307_v3  ;;  %v2084_v3 = vadd.f32 %v2083_v45, %v2045_v11  ;;  %v6632_v8 = vand.u32 4294901760, %v3220_v34 }
 0x1b2   : > { %3297 = vmatpush.msra.mxu1 %v3296_v25  ;;  %3252 = vmatpush.msra.mxu0 %v6513_v36  ;;  %v3349_v25 = vsub.f32 %v6585_v37, %v3348_v51  ;;  %v3344_v26 = vand.u32 4294901760, %v3343_v28  ;;  %v3360_v15 = vand.u32 4294901760, %v6630_v5 }
 0x1b3   : > { %3398 = vmatpush.msra.mxu2 %v6511_v29  ;;  %3448 = vmatpush.msra.mxu3 %v6513_v36 }
 0x1b4   : > { %3303 = vmatpush.msra.mxu1 %v3302_v50  ;;  %3254 = vmatpush.msra.mxu0 %v6525_v23  ;;  %v6618_v50 = vsub.f32 %v3222_v21, %v6600_v33  ;;  %v3350_v46 = vand.u32 4294901760, %v3349_v25  ;;  %v3361_v45 = vsub.f32 %v6630_v5, %v3360_v15 }
 0x1b5   : > { %3401 = vmatpush.msra.mxu2 %v6523_v19  ;;  %3450 = vmatpush.msra.mxu3 %v6525_v23 }
 0x1b6   : > { %3309 = vmatpush.msra.mxu1 %v3308_v43  ;;  %3256 = vmatpush.msra.mxu0 %v6543_v56  ;;  %v2189_v43 = vpop.f32.mrf.mxu1  ;;  %v3354_v35 = vand.u32 4294901760, %v6618_v50  ;;  %v3362_v25 = vand.u32 4294901760, %v3361_v45 }
 0x1b7   : > { %3404 = vmatpush.msra.mxu2 %v6541_v58  ;;  %3452 = vmatpush.msra.mxu3 %v6543_v56 }
 0x1b8   : > { %3315 = vmatpush.msra.mxu1 %v3314_v62  ;;  %3258 = vmatpush.msra.mxu0 %v6565_v9  ;;  %v2153_v62 = vadd.f32 %v2152_v31, %v2084_v3  ;;  %v3372_v31 = vand.u32 4294901760, %v6657_v60  ;;  %v2331_v3 = vpop.f32.mrf.mxu3 }
 0x1b9   : > { %3407 = vmatpush.msra.mxu2 %v6562_v59  ;;  %3454 = vmatpush.msra.mxu3 %v6565_v9 }
 0x1ba   : > { %3321 = vmatpush.msra.mxu1 %v3320_v41  ;;  %3260 = vmatpush.msra.mxu0 %v6567_v40  ;;  %v3355_v41 = vsub.f32 %v6618_v50, %v3354_v35  ;;  %v2190_v11 = vadd.f32 %v2189_v43, %v2153_v62 }
 0x1bb   : > { %3410 = vmatpush.msra.mxu2 %v6579_v4  ;;  %3456 = vmatpush.msra.mxu3 %v6567_v40 }
 0x1bc   : > { %3327 = vmatpush.msra.mxu1 %v3326_v10  ;;  %3262 = vmatpush.msra.mxu0 %v6569_v1  ;;  %v6645_v10 = vsub.f32 %v3220_v34, %v6632_v8  ;;  %v3356_v21 = vand.u32 4294901760, %v3355_v41  ;;  %v2231_v28 = vadd.f32 %v2230_v6, %v2190_v11  ;;  %v3373_v34 = vsub.f32 %v6657_v60, %v3372_v31  ;;  %v3589_v41 = vld [vmem:[%s6806_s7 + $0x28] sm:$0xff]  ;;  %v3588_v11 = vld [vmem:[%s6806_s7 + $0x20] sm:$0xff] }
 0x1bd   : > { %3413 = vmatpush.msra.mxu2 %v6582_v32  ;;  %3458 = vmatpush.msra.mxu3 %v6569_v1 }
 0x1be   : > { %3333 = vmatpush.msra.mxu1 %v3332_v61  ;;  %3264 = vmatpush.msra.mxu0 %v6600_v33  ;;  %v3366_v61 = vand.u32 4294901760, %v6645_v10  ;;  %v2332_v43 = vadd.f32 %v2331_v3, %v2231_v28  ;;  %v3374_v53 = vand.u32 4294901760, %v3373_v34  ;;  %v3587_v28 = vld [vmem:[%s6806_s7 + $0x18] sm:$0xff] }
 0x1bf   : > { %3416 = vmatpush.msra.mxu2 %v6585_v37  ;;  %3460 = vmatpush.msra.mxu3 %v6600_v33 }
 0x1c0   : > { %3339 = vmatpush.msra.mxu1 %v3338_v38  ;;  %3266 = vmatpush.msra.mxu0 %v6620_v48  ;;  %v3367_v49 = vsub.f32 %v6645_v10, %v3366_v61  ;;  %v2385_v38 = vpop.f32.mrf.mxu0 }
 0x1c1   : > { %3419 = vmatpush.msra.mxu2 %v6618_v50  ;;  %3462 = vmatpush.msra.mxu3 %v6620_v48  ;;  %v2530_v22 = vpop.f32.mrf.mxu3 }
 0x1c2   : > { %3345 = vmatpush.msra.mxu1 %v3344_v26  ;;  %3268 = vmatpush.msra.mxu0 %v6632_v8  ;;  %v3368_v26 = vand.u32 4294901760, %v3367_v49 }
 0x1c3   : > { %3422 = vmatpush.msra.mxu2 %v6630_v5  ;;  %3464 = vmatpush.msra.mxu3 %v6632_v8 }
 0x1c4   : > { %3351 = vmatpush.msra.mxu1 %v3350_v46  ;;  %3270 = vmatpush.msra.mxu0 %v6647_v63  ;;  %v2493_v7 = vpop.f32.mrf.mxu2 }
 0x1c5   : > { %3425 = vmatpush.msra.mxu2 %v6645_v10  ;;  %3466 = vmatpush.msra.mxu3 %v6647_v63  ;;  %v2424_v62 = vpop.f32.mrf.mxu1 }
 0x1c6   : > { %3477 = vmatpush.msrb.mxu0 %v3282_v17  ;;  %3357 = vmatpush.msra.mxu1 %v3356_v21  ;;  %v2386_v17 = vadd.f32 %v2385_v38, %v2332_v43  ;;  %v6761_v38 = vand.u32 4294901760, %v3587_v28 }
 0x1c7   : > { %3428 = vmatpush.msra.mxu2 %v6657_v60  ;;  %v6750_v60 = vand.u32 4294901760, %v3588_v11 }
 0x1c8   : > { %3481 = vmatpush.msrb.mxu0 %v3288_v44  ;;  %3363 = vmatpush.msra.mxu1 %v3362_v25  ;;  %v2425_v46 = vadd.f32 %v2424_v62, %v2386_v17  ;;  %v3666_v17 = vsub.f32 %v3587_v28, %v6761_v38 }
 0x1c9   : > { %v3660_v3 = vsub.f32 %v3588_v11, %v6750_v60 }
 0x1ca   : > { %3485 = vmatpush.msrb.mxu0 %v3294_v12  ;;  %3369 = vmatpush.msra.mxu1 %v3368_v26  ;;  %v2494_v44 = vadd.f32 %v2493_v7, %v2425_v46  ;;  %v3586_v26 = vld [vmem:[%s6806_s7 + $0x10] sm:$0xff]  ;;  %v3585_v46 = vld [vmem:[%s6806_s7 + $0x8] sm:$0xff] }
 0x1cb   : > { %v3661_v62 = vand.u32 4294901760, %v3660_v3 }
 0x1cc   : > { %3489 = vmatpush.msrb.mxu0 %v3300_v30  ;;  %3375 = vmatpush.msra.mxu1 %v3374_v53  ;;  %v3618_v53 = vand.u32 4294901760, %v3586_v26 }
 0x1ce   : > { %3544 = vmatpush.msrb.mxu1 %v6432_v13  ;;  %3493 = vmatpush.msrb.mxu0 %v3306_v14  ;;  %v2531_v13 = vadd.f32 %v2530_v22, %v2494_v44  ;;  %v3662_v44 = vsub.f32 %v3660_v3, %v3661_v62  ;;  %v3672_v22 = vsub.f32 %v3586_v26, %v3618_v53 }
 0x1d0   : > { %3546 = vmatpush.msrb.mxu1 %v6440_v47  ;;  %3497 = vmatpush.msrb.mxu0 %v3312_v16 }
 0x1d2   : > { %3548 = vmatpush.msrb.mxu1 %v6451_v42  ;;  %3501 = vmatpush.msrb.mxu0 %v3318_v52 }
 0x1d4   : > { %3550 = vmatpush.msrb.mxu1 %v6466_v24  ;;  %3505 = vmatpush.msrb.mxu0 %v3324_v39 }
 0x1d6   : > { %3552 = vmatpush.msrb.mxu1 %v6483_v18  ;;  %3509 = vmatpush.msrb.mxu0 %v3330_v54 }
 0x1d8   : > { %3554 = vmatpush.msrb.mxu1 %v6493_v27  ;;  %3513 = vmatpush.msrb.mxu0 %v3336_v0 }
 0x1da   : > { %3556 = vmatpush.msrb.mxu1 %v6513_v36  ;;  %3517 = vmatpush.msrb.mxu0 %v3342_v2 }
 0x1dc   : > { %3558 = vmatpush.msrb.mxu1 %v6525_v23  ;;  %3521 = vmatpush.msrb.mxu0 %v3348_v51 }
 0x1de   : > { %3560 = vmatpush.msrb.mxu1 %v6543_v56  ;;  %3525 = vmatpush.msrb.mxu0 %v3354_v35  ;;  %v3591_v35 = vld [vmem:[%s6806_s7 + $0x38] sm:$0xff] }
 0x1df   : > { %v6719_v5 = vand.u32 4294901760, %v3591_v35 }
 0x1e0   : > { %3562 = vmatpush.msrb.mxu1 %v6565_v9  ;;  %3529 = vmatpush.msrb.mxu0 %v3360_v15 }
 0x1e1   : > { %v2571_v12 = vpop.f32.mrf.mxu0  ;;  %v6725_v20 = vsub.f32 %v3591_v35, %v6719_v5  ;;  %3609 = vmatpush.msrb.mxu2 %v6719_v5 }
 0x1e2   : > { %v2572_v47 = vadd.f32 %v2571_v12, %v2531_v13  ;;  %3564 = vmatpush.msrb.mxu1 %v6567_v40  ;;  %3533 = vmatpush.msrb.mxu0 %v3366_v61  ;;  %v3620_v12 = vand.u32 4294901760, %v3585_v46  ;;  %v3667_v13 = vand.u32 4294901760, %v3666_v17 }
 0x1e3   : > { %v3643_v15 = vand.u32 4294901760, %v6725_v20 }
 0x1e4   : > { %3566 = vmatpush.msrb.mxu1 %v6569_v1  ;;  %3537 = vmatpush.msrb.mxu0 %v3372_v31 }
 0x1e5   : > { %v3644_v21 = vsub.f32 %v6725_v20, %v3643_v15 }
 0x1e6   : > { %3568 = vmatpush.msrb.mxu1 %v6600_v33 }
 0x1e7   : > { %v2672_v57 = vpop.f32.mrf.mxu1  ;;  %v2726_v30 = vpop.f32.mrf.mxu2  ;;  %v3645_v25 = vand.u32 4294901760, %v3644_v21 }
 0x1e8   : > { %v2673_v42 = vadd.f32 %v2672_v57, %v2572_v47  ;;  %3570 = vmatpush.msrb.mxu1 %v6620_v48  ;;  %v3584_v57 = vld [vmem:[%s6806_s7] sm:$0xff]  ;;  %v3663_v47 = vand.u32 4294901760, %v3662_v44 }
 0x1e9   : > { %3646 = vmatpush.msrb.mxu3 %v3645_v25 }
 0x1ea   : > { %v2727_v24 = vadd.f32 %v2726_v30, %v2673_v42  ;;  %v2765_v18 = vpop.f32.mrf.mxu3  ;;  %3572 = vmatpush.msrb.mxu1 %v6632_v8  ;;  %v3590_v8 = vld [vmem:[%s6806_s7 + $0x30] sm:$0xff]  ;;  %v3673_v42 = vand.u32 4294901760, %v3672_v22  ;;  %v3678_v30 = vsub.f32 %v3585_v46, %v3620_v12 }
 0x1eb   : > { %v6727_v6 = vand.u32 4294901760, %v3590_v8 }
 0x1ec   : > { %v2766_v55 = vadd.f32 %v2765_v18, %v2727_v24  ;;  %3574 = vmatpush.msrb.mxu1 %v6647_v63  ;;  %v6738_v63 = vand.u32 4294901760, %v3589_v41  ;;  %v3622_v24 = vand.u32 4294901760, %v3584_v57  ;;  %v3668_v18 = vsub.f32 %v3666_v17, %v3667_v13 }
 0x1ed   : > { %v6736_v10 = vsub.f32 %v3590_v8, %v6727_v6  ;;  %3611 = vmatpush.msrb.mxu2 %v6727_v6 }
 0x1ee   : > { %v6748_v61 = vsub.f32 %v3589_v41, %v6738_v63 }
 0x1ef   : > { %v3649_v45 = vand.u32 4294901760, %v6736_v10  ;;  %3613 = vmatpush.msrb.mxu2 %v6738_v63 }
 0x1f0   : > { %v3655_v31 = vand.u32 4294901760, %v6748_v61 }
 0x1f1   : > { %v3650_v49 = vsub.f32 %v6736_v10, %v3649_v45  ;;  %3615 = vmatpush.msrb.mxu2 %v6750_v60 }
 0x1f2   : > { %v3656_v43 = vsub.f32 %v6748_v61, %v3655_v31 }
 0x1f3   : > { %v3651_v34 = vand.u32 4294901760, %v3650_v49  ;;  %3617 = vmatpush.msrb.mxu2 %v6761_v38 }
 0x1f4   : > { %v3657_v7 = vand.u32 4294901760, %v3656_v43 }
 0x1f5   : > { %3652 = vmatpush.msrb.mxu3 %v3651_v34  ;;  %3619 = vmatpush.msrb.mxu2 %v3618_v53 }
 0x1f7   : > { %3658 = vmatpush.msrb.mxu3 %v3657_v7  ;;  %3621 = vmatpush.msrb.mxu2 %v3620_v12 }
 0x1f9   : > { %3664 = vmatpush.msrb.mxu3 %v3663_v47  ;;  %3623 = vmatpush.msrb.mxu2 %v3622_v24 }
 0x1ff   : > { %v2834_v27 = vpop.f32.mrf.mxu0 }
 0x200   : > { %v2835_v36 = vadd.f32 %v2834_v27, %v2766_v55  ;;  %v3674_v27 = vsub.f32 %v3672_v22, %v3673_v42  ;;  %v3679_v55 = vand.u32 4294901760, %v3678_v30 }
 0x208   : > { %v2871_v29 = vpop.f32.mrf.mxu1 }
 0x209   : > { %v2872_v16 = vadd.f32 %v2871_v29, %v2835_v36  ;;  %v3684_v29 = vsub.f32 %v3584_v57, %v3622_v24  ;;  %v3669_v36 = vand.u32 4294901760, %v3668_v18 }
 0x20b   : > { %3670 = vmatpush.msrb.mxu3 %v3669_v36 }
 0x20d   : > { %v2912_v14 = vpop.f32.mrf.mxu2 }
 0x20e   : > { %v2913_v19 = vadd.f32 %v2912_v14, %v2872_v16  ;;  %v3013_v23 = vpop.f32.mrf.mxu3  ;;  %v3675_v14 = vand.u32 4294901760, %v3674_v27  ;;  %v3680_v16 = vsub.f32 %v3678_v30, %v3679_v55 }
 0x210   : > { %v3014_v58 = vadd.f32 %v3013_v23, %v2913_v19  ;;  %v3685_v19 = vand.u32 4294901760, %v3684_v29  ;;  %v3681_v23 = vand.u32 4294901760, %v3680_v16  ;;  %3676 = vmatpush.msrb.mxu3 %v3675_v14 }
 0x212   : > { %3682 = vmatpush.msrb.mxu3 %v3681_v23 }
 0x221   : > { %v3067_v52 = vpop.f32.mrf.mxu0 }
 0x222   : > { %v3068_v56 = vadd.f32 %v3067_v52, %v3014_v58  ;;  %v3686_v52 = vsub.f32 %v3684_v29, %v3685_v19 }
 0x224   : > { %v3687_v58 = vand.u32 4294901760, %v3686_v52 }
 0x226   : > { %3688 = vmatpush.msrb.mxu3 %v3687_v58 }
 0x227   : > { %v3212_v1 = vpop.f32.mrf.mxu3 }
 0x229   : > { %v3106_v39 = vpop.f32.mrf.mxu1  ;;  %v3175_v9 = vpop.f32.mrf.mxu2 }
 0x22a   : > { %v3107_v59 = vadd.f32 %v3106_v39, %v3068_v56  ;;  %v3914_v56 = vld [vmem:[%s6805_s6] ss:$0 sm:$0xff] }
 0x22c   : > { %v3176_v40 = vadd.f32 %v3175_v9, %v3107_v59 }
 0x22e   : > { %v3213_v54 = vadd.f32 %v3212_v1, %v3176_v40 }
 0x230   : > { %v3215_v4 = vmul.f32 0.5, %v3213_v54 }
 0x232   : > { %3924 = vtanh.f32 %v3215_v4 }
 0x238   : > { %v3925_v32 = vpop.eup %3924 }
 0x239   : > { %v3217_v37 = vadd.f32 1.0, %v3925_v32 }
 0x23b   : > { %v3218_v0 = vmul.f32 0.5, %v3217_v37 }
 0x23d   : > { %v3271_v2 = vand.u32 4294901760, %v3218_v0 }
 0x23f   : > { %3377 = vmatmul.f32.vlgmr.msra.gmra.mxu1 %v3271_v2  ;;  %v3272_v51 = vsub.f32 %v3218_v0, %v3271_v2 }
 0x240   : > { %3817 = vmatpush.msra.mxu1 %v6719_v5 }
 0x241   : > { %3431 = vmatmul.f32.vlgmr.msra.gmra.mxu2 %v3272_v51  ;;  %v3273_v33 = vand.u32 4294901760, %v3272_v51 }
 0x242   : > { %3819 = vmatpush.msra.mxu1 %v6727_v6  ;;  %3704 = vmatpush.msra.mxu2 %v6725_v20 }
 0x243   : > { %3470 = vmatmul.f32.vlgmr.msra.gmra.mxu3 %v3273_v33  ;;  %v3274_v50 = vsub.f32 %v3272_v51, %v3273_v33 }
 0x244   : > { %3821 = vmatpush.msra.mxu1 %v6738_v63  ;;  %3707 = vmatpush.msra.mxu2 %v6736_v10  ;;  %v3915_v10 = vld [vmem:[%s6807_s8] ss:$0 sm:$0xff] }
 0x245   : > { %v3275_v48 = vand.u32 4294901760, %v3274_v50  ;;  %3741 = vmatpush.msra.mxu3 %v6719_v5 }
 0x246   : > { %3823 = vmatpush.msra.mxu1 %v6750_v60  ;;  %3710 = vmatpush.msra.mxu2 %v6748_v61 }
 0x247   : > { %3276 = vmatmul.f32.vlgmr.msra.gmra.mxu0 %v3275_v48  ;;  %3576 = vmatmul.f32.vlgmr.msrb.gmra.mxu1 %v3271_v2 }
 0x248   : > { %3774 = vmatpush.msra.mxu0 %v3643_v15  ;;  %3825 = vmatpush.msra.mxu1 %v6761_v38 }
 0x249   : > { %3713 = vmatpush.msra.mxu2 %v3660_v3  ;;  %3743 = vmatpush.msra.mxu3 %v6727_v6 }
 0x24a   : > { %3778 = vmatpush.msra.mxu0 %v3649_v45  ;;  %3827 = vmatpush.msra.mxu1 %v3618_v53 }
 0x24b   : > { %3716 = vmatpush.msra.mxu2 %v3666_v17  ;;  %3745 = vmatpush.msra.mxu3 %v6738_v63 }
 0x24c   : > { %3782 = vmatpush.msra.mxu0 %v3655_v31  ;;  %3829 = vmatpush.msra.mxu1 %v3620_v12 }
 0x24d   : > { %3719 = vmatpush.msra.mxu2 %v3672_v22  ;;  %3747 = vmatpush.msra.mxu3 %v6750_v60 }
 0x24e   : > { %3786 = vmatpush.msra.mxu0 %v3661_v62  ;;  %3831 = vmatpush.msra.mxu1 %v3622_v24 }
 0x24f   : > { %3539 = vmatmul.f32.vlgmr.msrb.gmra.mxu0 %v3271_v2  ;;  %3722 = vmatpush.msra.mxu2 %v3678_v30 }
 0x250   : > { %3790 = vmatpush.msra.mxu0 %v3667_v13  ;;  %3749 = vmatpush.msra.mxu3 %v6761_v38 }
 0x251   : > { %3725 = vmatpush.msra.mxu2 %v3684_v29 }
 0x252   : > { %3794 = vmatpush.msra.mxu0 %v3673_v42  ;;  %3751 = vmatpush.msra.mxu3 %v3618_v53 }
 0x254   : > { %3798 = vmatpush.msra.mxu0 %v3679_v55  ;;  %3753 = vmatpush.msra.mxu3 %v3620_v12 }
 0x256   : > { %3802 = vmatpush.msra.mxu0 %v3685_v19  ;;  %3755 = vmatpush.msra.mxu3 %v3622_v24 }
 0x2bc   : > { %v3378_v39 = vpop.f32.mrf.mxu1 }
 0x2c4   : > { %v3277_v59 = vpop.f32.mrf.mxu0  ;;  %v3432_v1 = vpop.f32.mrf.mxu2 }
 0x2c5   : > { %v3278_v9 = vadd.f32 %v3914_v56, %v3277_v59  ;;  %v3577_v2 = vpop.f32.mrf.mxu1 }
 0x2c6   : > { %v3471_v4 = vpop.f32.mrf.mxu3 }
 0x2c7   : > { %v3379_v40 = vadd.f32 %v3378_v39, %v3278_v9 }
 0x2c9   : > { %v3433_v54 = vadd.f32 %v3432_v1, %v3379_v40 }
 0x2cb   : > { %v3472_v32 = vadd.f32 %v3471_v4, %v3433_v54 }
 0x2cc   : > { %v3540_v37 = vpop.f32.mrf.mxu0 }
 0x2cd   : > { %v3541_v0 = vadd.f32 %v3540_v37, %v3472_v32 }
 0x2cf   : > { %v3578_v51 = vadd.f32 %v3577_v2, %v3541_v0 }
 0x2d1   : > { %v3580_v33 = vmul.f32 0.5, %v3578_v51 }
 0x2d3   : > { %3926 = vtanh.f32 %v3580_v33 }
 0x2d9   : > { %v3927_v50 = vpop.eup %3926 }
 0x2da   : > { %v3582_v48 = vadd.f32 1.0, %v3927_v50 }
 0x2dc   : > { %v3583_v35 = vmul.f32 0.5, %v3582_v48 }
 0x2de   : > { %v3598_v5 = vsel %vm3596_vm0, %v3583_v35, 0 }
 0x2df   : > { %v3624_v8 = vand.u32 4294901760, %v3598_v5 }
 0x2e1   : > { %3690 = vmatmul.f32.vlgmr.msrb.gmra.mxu3 %v3624_v8  ;;  %3804 = vmatmul.f32.vlgmr.msra.gmra.mxu0 %v3624_v8  ;;  %v3625_v20 = vsub.f32 %v3598_v5, %v3624_v8 }
 0x2e2   : > { %3833 = vmatmul.f32.vlgmr.msra.gmra.mxu1 %v3624_v8 }
 0x2e3   : > { %v3626_v6 = vand.u32 4294901760, %v3625_v20 }
 0x2e5   : > { %v3627_v41 = vsub.f32 %v3625_v20, %v3626_v6 }
 0x2e7   : > { %v3628_v15 = vand.u32 4294901760, %v3627_v41 }
 0x2e9   : > { %3629 = vmatmul.f32.vlgmr.msrb.gmra.mxu2 %v3628_v15  ;;  %3759 = vmatmul.f32.vlgmr.msra.gmra.mxu3 %v3626_v6 }
 0x2f1   : > { %3728 = vmatmul.f32.vlgmr.msra.gmra.mxu2 %v3625_v20 }
 0x35e   : > { %v3805_v49 = vpop.f32.mrf.mxu0 }
 0x35f   : > { %v3834_v3 = vpop.f32.mrf.mxu1 }
 0x364   : > { %v3691_v63 = vpop.f32.mrf.mxu3 }
 0x36c   : > { %v3630_v11 = vpop.f32.mrf.mxu2  ;;  %v3760_v28 = vpop.f32.mrf.mxu3 }
 0x36d   : > { %v3631_v21 = vadd.f32 %v3915_v10, %v3630_v11 }
 0x36f   : > { %v3692_v45 = vadd.f32 %v3691_v63, %v3631_v21 }
 0x374   : > { %v3729_v61 = vpop.f32.mrf.mxu2 }
 0x375   : > { %v3730_v60 = vadd.f32 %v3729_v61, %v3692_v45 }
 0x377   : > { %v3761_v25 = vadd.f32 %v3760_v28, %v3730_v60 }
 0x379   : > { %v3806_v31 = vadd.f32 %v3805_v49, %v3761_v25 }
 0x37b   : > { %v3835_v38 = vadd.f32 %v3834_v3, %v3806_v31 }
 0x37d   : > { %v3837_v26 = vmul.f32 0.5, %v3835_v38 }
 0x37f   : > { %3928 = vtanh.f32 %v3837_v26 }
 0x385   : > { %v3929_v34 = vpop.eup %3928 }
 0x386   : > { %v3839_v43 = vadd.f32 1.0, %v3929_v34 }
 0x388   : > { %v3840_v62 = vmul.f32 0.5, %v3839_v43 }
 0x38a   : > { %3842 = vst.msk [vmem:[%s327_s23] sm:$0xff] %vm3841_vm1, %v3840_v62 }
 0x38b PF: > { %s19_s30 = sadd.s32 1, %s3937_s30  }
 0x38c   : > { %p16_p4 = scmp.ge.s32.totalorder %s19_s30, 4  }
 0x38e   :  { %18 = sbr.rel (!%p16_p4) target bundleno = 1 (0x1), region = 86 }

</bundles_post_ra>
